<compile_context>
chip_gen: v7x
topology: tpu7x:2x2x1
jax: 0.10.0
libtpu: 0.0.40
codegen_flags: <defaults>
</compile_context>

<pallas_src>
import math

import jax
import jax.numpy as jnp
from jax import lax
from jax.experimental import pallas as pl
from jax.experimental.pallas import tpu as pltpu

NUM_GROUPS = 16
EMBED_T = 256
VMEM_LIMIT_BYTES = 32 * 1024 * 1024


# ----------------------------------------------------------------------------
# In-kernel helpers (traced inside Pallas kernels)
# ----------------------------------------------------------------------------
def _group_norm_t(h, gamma, beta, num_groups, eps):
    """GroupNorm on a channels-first (C, S) tensor of one sample (biased var)."""
    C, S = h.shape
    cg = C // num_groups
    n = float(S * cg)
    s1 = jnp.sum(h, axis=1, keepdims=True)                       # (C, 1)
    if cg > 1:  # static branch: groups span several channels
        g1 = jnp.sum(s1.reshape(num_groups, cg), axis=1, keepdims=True)
        s1 = jnp.broadcast_to(g1, (num_groups, cg)).reshape(C, 1)
    mean = s1 / n
    d = h - mean                                                  # two-pass (centered) var
    s2 = jnp.sum(d * d, axis=1, keepdims=True)
    if cg > 1:
        g2 = jnp.sum(s2.reshape(num_groups, cg), axis=1, keepdims=True)
        s2 = jnp.broadcast_to(g2, (num_groups, cg)).reshape(C, 1)
    var = s2 / n
    return d * lax.rsqrt(var + eps) * gamma + beta


# ----------------------------------------------------------------------------
# Kernel factories
# ----------------------------------------------------------------------------
def make_resblock_kernel(H, W, Ca, Cb, Cout, num_groups, has_res_conv, upsample,
                         eps=1e-6):
    """Fused ResBlock on one sample, channels-first lane-dense (C, H*W) layout:
       [upsample 2x] -> conv1(3x3) [+res_conv fused] -> GroupNorm -> +temb
       -> SiLU -> (dropout=id) -> conv2(3x3) -> +residual."""
    HW = H * W
    Cin = Ca + Cb
    taps = [(kh - 1, kw - 1) for kh in range(3) for kw in range(3)]  # (dy, dx)

    def shifted_taps(img, masks):
        """img: (C, HW) bf16 -> 9 shifted/zero-padded copies (tap row-major).
        A tap shift is a static lane slice + concat with zeros (cheap on 2-4
        vregs); horizontal edge wrap is killed by the precomputed dx masks."""
        C = img.shape[0]
        outs = []
        for dy, dx in taps:
            d = dy * W + dx
            if d == 0:
                s = img
            elif d > 0:
                s = jnp.concatenate(
                    [img[:, d:], jnp.zeros((C, d), img.dtype)], axis=1)
            else:
                s = jnp.concatenate(
                    [jnp.zeros((C, -d), img.dtype), img[:, :HW + d]], axis=1)
            if dx == -1:
                s = s * masks[0:1, :]
            elif dx == 1:
                s = s * masks[1:2, :]
            outs.append(s)
        return outs

    def kernel(*refs):
        if upsample:
            (xa_ref, xb_ref, temb_ref, masks_ref, ups_ref,
             w1_ref, b1_ref, w2_ref, b2_ref, gamma_ref, beta_ref, out_ref) = refs
        else:
            (xa_ref, xb_ref, temb_ref, masks_ref,
             w1_ref, b1_ref, w2_ref, b2_ref, gamma_ref, beta_ref, out_ref) = refs

        masks = masks_ref[...]                                    # (2, HW) bf16
        xa = xa_ref[0].astype(jnp.bfloat16)                       # (Ca, Pa)
        xb = xb_ref[0].astype(jnp.bfloat16)                       # (Cb, HW)
        if upsample:
            # nearest 2x upsample fused in VMEM: 0/1 selector matmul (exact)
            xa = jnp.dot(xa, ups_ref[...],
                         preferred_element_type=jnp.float32).astype(jnp.bfloat16)

        # conv1 (+res_conv fused along output rows) as one (rows, 9*Cin)x(9*Cin, HW)
        ta = shifted_taps(xa, masks)
        tb = shifted_taps(xb, masks)
        parts = []
        for t in range(9):                                        # tap-major, xa||xb channels
            parts.append(ta[t])
            parts.append(tb[t])
        xcat = jnp.concatenate(parts, axis=0)                     # (9*Cin, HW) bf16
        y = jnp.dot(w1_ref[...], xcat,
                    preferred_element_type=jnp.float32) + b1_ref[...]
        if has_res_conv:
            h1 = y[:Cout]                                         # conv1 output
            res = y[Cout:2 * Cout]                                # res_conv output
        else:
            h1 = y
            res = jnp.concatenate([xa, xb], axis=0).astype(jnp.float32)

        # GroupNorm -> + t_emb -> SiLU (f32 elementwise)
        hn = _group_norm_t(h1, gamma_ref[...], beta_ref[...], num_groups, eps)
        hh = hn + temb_ref[0]                                     # (Cout,1) lane-broadcast
        hh = hh * jax.nn.sigmoid(hh)                              # SiLU
        # nn.Dropout(p=0.1): identity in eval mode.
        # TODO(synk): training-mode dropout randomness not reproduced.

        # conv2, then residual add
        t2 = shifted_taps(hh.astype(jnp.bfloat16), masks)
        xcat2 = jnp.concatenate(t2, axis=0)                       # (9*Cout, HW)
        y2 = jnp.dot(w2_ref[...], xcat2,
                     preferred_element_type=jnp.float32) + b2_ref[...]
        out_ref[0] = (y2 + res).astype(out_ref.dtype)             # lane-dense store

    return kernel


def make_attn_kernel(C, HW, num_groups, eps=1e-6):
    """GroupNorm -> fused QKV (1x1) -> softmax(Q^T K / sqrt(C)) -> V W^T -> proj -> +x."""
    scale = float(C) ** (-0.5)

    def kernel(x_ref, gamma_ref, beta_ref, wqkv_ref, bqkv_ref, wp_ref, bp_ref,
               out_ref):
        x = x_ref[0].astype(jnp.float32)                          # (C, HW)
        h = _group_norm_t(x, gamma_ref[...], beta_ref[...], num_groups, eps)

        qkv = jnp.dot(wqkv_ref[...], h.astype(jnp.bfloat16),
                      preferred_element_type=jnp.float32) + bqkv_ref[...]  # (3C, HW)
        q = qkv[:C]
        k = qkv[C:2 * C]
        v = qkv[2 * C:3 * C]

        # logits[i, j] = sum_c q[c, i] * k[c, j]
        # TODO(synk): dense (HW, HW) softmax; switch to a KV-tiled online-softmax
        # (flash) accumulator before using at large resolutions.
        qT = jnp.transpose(q).astype(jnp.bfloat16)                # (HW, C)
        logits = jnp.dot(qT, k.astype(jnp.bfloat16),
                         preferred_element_type=jnp.float32) * scale
        m = jnp.max(logits, axis=-1, keepdims=True)
        p = jnp.exp(logits - m)
        denom = jnp.sum(p, axis=-1, keepdims=True)
        w_ = p * pl.reciprocal(denom, approx=True)                # softmax rows (EUP recip)

        # h_[c, i] = sum_j v[c, j] * w_[i, j]
        att = lax.dot_general(v.astype(jnp.bfloat16), w_.astype(jnp.bfloat16),
                              (((1,), (1,)), ((), ())),
                              preferred_element_type=jnp.float32)  # (C, HW)
        o = jnp.dot(wp_ref[...], att.astype(jnp.bfloat16),
                    preferred_element_type=jnp.float32) + bp_ref[...]
        out_ref[0] = (x + o).astype(out_ref.dtype)                # lane-dense store

    return kernel


# ----------------------------------------------------------------------------
# Host-side constant helpers (tiny, built once under jit)
# ----------------------------------------------------------------------------
def _edge_masks(H, W):
    """(2, H*W) bf16 {0,1} lane masks killing horizontal wrap for dx=-1 / dx=+1."""
    w_idx = jnp.arange(H * W, dtype=jnp.int32) % W
    left = (w_idx >= 1)
    right = (w_idx <= W - 2)
    return jnp.stack([left, right]).astype(jnp.bfloat16)


def _upsample_selector(H0, W0):
    """(H0*W0, 4*H0*W0) bf16 0/1 matrix: x_up = x0 @ U (nearest 2x, NCHW flat)."""
    H, W = 2 * H0, 2 * W0
    p = jnp.arange(H * W, dtype=jnp.int32)
    src = (p // W) // 2 * W0 + (p % W) // 2
    return (jnp.arange(H0 * W0, dtype=jnp.int32)[:, None] == src[None, :]
            ).astype(jnp.bfloat16)


# ----------------------------------------------------------------------------
# Pallas-call wrappers
# ----------------------------------------------------------------------------
def res_block_forward(xa, xb, emb, p, out_channels, H, W, upsample, out_dtype):
    """xa, xb: channel-concat operands, channels-first flat (N, C*, P).  If
    `upsample`, xa is the PRE-upsample block (P = H*W/4) and the 2x nearest
    upsample is fused into the kernel.  Returns (N, Cout, H*W)."""
    N, Ca, Pa = xa.shape
    Cb, HW = xb.shape[1], xb.shape[2]
    Cin = Ca + Cb
    Cout = out_channels
    assert HW == H * W and (Pa == (H // 2) * (W // 2) if upsample else Pa == HW)
    has_res_conv = p["has_res_conv"]
    assert has_res_conv or Cin == Cout
    rows1 = p["w1"].shape[0]

    # t_emb_proj for the whole batch: one small dense XLA dot outside the kernel.
    temb = (emb @ p["wt"] + p["bt"])[:, :, None].astype(jnp.float32)  # (N, Cout, 1)
    masks = _edge_masks(H, W)

    args = [xa, xb, temb, masks]
    in_specs = [
        pl.BlockSpec((1, Ca, Pa), lambda b: (b, 0, 0)),           # xa (lane-dense)
        pl.BlockSpec((1, Cb, HW), lambda b: (b, 0, 0)),           # xb (lane-dense)
        pl.BlockSpec((1, Cout, 1), lambda b: (b, 0, 0)),          # temb (per batch)
        pl.BlockSpec((2, HW), lambda b: (0, 0)),                  # edge masks
    ]
    if upsample:
        args.append(_upsample_selector(H // 2, W // 2))
        in_specs.append(pl.BlockSpec((Pa, HW), lambda b: (0, 0)))  # upsample selector
    args += [p["w1"], p["b1"], p["w2"], p["b2"], p["gamma"], p["beta"]]
    in_specs += [
        pl.BlockSpec((rows1, 9 * Cin), lambda b: (0, 0)),         # conv1 || res_conv (bf16)
        pl.BlockSpec((rows1, 1), lambda b: (0, 0)),
        pl.BlockSpec((Cout, 9 * Cout), lambda b: (0, 0)),         # conv2 (bf16)
        pl.BlockSpec((Cout, 1), lambda b: (0, 0)),
        pl.BlockSpec((Cout, 1), lambda b: (0, 0)),                # gamma
        pl.BlockSpec((Cout, 1), lambda b: (0, 0)),                # beta
    ]

    kernel = make_resblock_kernel(H, W, Ca, Cb, Cout, NUM_GROUPS, has_res_conv,
                                  upsample, eps=1e-6)
    return pl.pallas_call(
        kernel,
        out_shape=jax.ShapeDtypeStruct((N, Cout, HW), out_dtype),
        grid=(N,),
        in_specs=in_specs,
        out_specs=pl.BlockSpec((1, Cout, HW), lambda b: (b, 0, 0)),
        compiler_params=pltpu.CompilerParams(
            dimension_semantics=("parallel",),
            vmem_limit_bytes=VMEM_LIMIT_BYTES),
    )(*args)


def attn_block_forward(x, p, H, W):
    """x: (N, C, H*W) channels-first flat.  Returns f32 (N, C, H*W)."""
    N, C, HW = x.shape
    # VMEM guard for the dense (HW, HW) softmax (v7x has the smallest VMEM).
    assert HW <= 1024, "dense softmax too large for VMEM"  # TODO(synk): flash-tile

    kernel = make_attn_kernel(C, HW, NUM_GROUPS, eps=1e-6)
    return pl.pallas_call(
        kernel,
        out_shape=jax.ShapeDtypeStruct((N, C, HW), jnp.float32),
        grid=(N,),
        in_specs=[pl.BlockSpec((1, C, HW), lambda b: (b, 0, 0)),  # x (lane-dense)
                  pl.BlockSpec((C, 1), lambda b: (0, 0)),         # gamma
                  pl.BlockSpec((C, 1), lambda b: (0, 0)),         # beta
                  pl.BlockSpec((3 * C, C), lambda b: (0, 0)),     # wqkv (bf16)
                  pl.BlockSpec((3 * C, 1), lambda b: (0, 0)),     # bqkv
                  pl.BlockSpec((C, C), lambda b: (0, 0)),         # proj w (bf16)
                  pl.BlockSpec((C, 1), lambda b: (0, 0))],        # proj b
        out_specs=pl.BlockSpec((1, C, HW), lambda b: (b, 0, 0)),
        compiler_params=pltpu.CompilerParams(
            dimension_semantics=("parallel",),
            vmem_limit_bytes=VMEM_LIMIT_BYTES),
    )(x, p["gamma"], p["beta"], p["wqkv"], p["bqkv"], p["wp"], p["bp"])


def up_block_forward(x, embeddings, skips, params, out_channels):
    """x: NCHW (N, C0, H0, W0); skips: list of NCHW (N, Cs, 2*H0, 2*W0)."""
    N, C0, H0, W0 = x.shape
    H, W = 2 * H0, 2 * W0
    HW = H * W
    has_attn = params.get("attn") is not None

    skip = skips.pop()                                            # torch.cat([x_up, skip])
    x1 = res_block_forward(x.reshape(N, C0, H0 * W0),
                           skip.reshape(N, skip.shape[1], HW),
                           embeddings, params["res1"], out_channels, H, W,
                           upsample=True, out_dtype=jnp.bfloat16)

    skip = skips.pop()
    x2 = res_block_forward(x1,
                           skip.reshape(N, skip.shape[1], HW),
                           embeddings, params["res2"], out_channels, H, W,
                           upsample=False,
                           out_dtype=jnp.bfloat16 if has_attn else jnp.float32)

    out = attn_block_forward(x2, params["attn"], H, W) if has_attn else x2
    return out.reshape(N, out_channels, H, W).astype(jnp.float32)


# ----------------------------------------------------------------------------
# Deterministic parameter initialization (mirrors shapes of the nn.Module)
# ----------------------------------------------------------------------------
def _conv3x3_params(key, cin, cout):
    kw, kb = jax.random.split(key)
    bound = 1.0 / math.sqrt(cin * 9)
    w = jax.random.uniform(kw, (cout, 3, 3, cin), jnp.float32, -bound, bound)
    b = jax.random.uniform(kb, (cout, 1), jnp.float32, -bound, bound)
    return w.reshape(cout, 9 * cin), b          # [co, (kh*3+kw)*cin + ci]


def _conv1x1_params(key, cin, cout):
    kw, kb = jax.random.split(key)
    bound = 1.0 / math.sqrt(cin)
    w = jax.random.uniform(kw, (cout, cin), jnp.float32, -bound, bound)
    b = jax.random.uniform(kb, (cout, 1), jnp.float32, -bound, bound)
    return w, b


def _linear_params(key, cin, cout):
    kw, kb = jax.random.split(key)
    bound = 1.0 / math.sqrt(cin)
    w = jax.random.uniform(kw, (cin, cout), jnp.float32, -bound, bound)   # transposed
    b = jax.random.uniform(kb, (1, cout), jnp.float32, -bound, bound)
    return w, b


def init_resblock_params(key, cin, cout):
    ks = jax.random.split(key, 5)
    w1, b1 = _conv3x3_params(ks[0], cin, cout)
    has_res_conv = cin != cout
    if has_res_conv:                            # reference res_conv is a 3x3 conv
        wr, br = _conv3x3_params(ks[1], cin, cout)
        w1 = jnp.concatenate([w1, wr], axis=0)  # (2*cout, 9*cin)
        b1 = jnp.concatenate([b1, br], axis=0)
    wt, bt = _linear_params(ks[2], EMBED_T, cout)
    w2, b2 = _conv3x3_params(ks[3], cout, cout)
    return {
        "has_res_conv": has_res_conv,
        "w1": w1.astype(jnp.bfloat16), "b1": b1,
        "w2": w2.astype(jnp.bfloat16), "b2": b2,
        "gamma": jnp.ones((cout, 1), jnp.float32),
        "beta": jnp.zeros((cout, 1), jnp.float32),
        "wt": wt, "bt": bt,
    }


def init_attn_params(key, c):
    ks = jax.random.split(key, 4)
    wq, bq = _conv1x1_params(ks[0], c, c)       # 1x1 conv == per-pixel linear
    wk, bk = _conv1x1_params(ks[1], c, c)
    wv, bv = _conv1x1_params(ks[2], c, c)
    wp, bp = _conv1x1_params(ks[3], c, c)
    return {
        "gamma": jnp.ones((c, 1), jnp.float32),
        "beta": jnp.zeros((c, 1), jnp.float32),
        "wqkv": jnp.concatenate([wq, wk, wv], axis=0).astype(jnp.bfloat16),
        "bqkv": jnp.concatenate([bq, bk, bv], axis=0),
        "wp": wp.astype(jnp.bfloat16), "bp": bp,
    }


def init_upblock_params(key, in_channels, out_channels, attention):
    k1, k2, k3 = jax.random.split(key, 3)
    return {
        "res1": init_resblock_params(k1, in_channels, out_channels),
        "res2": init_resblock_params(k2, in_channels // 2 + out_channels, out_channels),
        "attn": init_attn_params(k3, out_channels) if attention else None,
    }


# ----------------------------------------------------------------------------
if __name__ == "__main__":
    key = jax.random.PRNGKey(0)
    ks = jax.random.split(key, 5)

    in_channels, out_channels = 32, 16          # GroupNorm(16) needs multiples of 16
    N, H0, W0 = 2, 8, 8                         # input spatial; upsampled to 16x16

    # NCHW like the PyTorch reference: x (2,16,8,8), skips (2,16,16,16), emb (2,256)
    x = jax.random.normal(ks[0], (N, in_channels // 2, H0, W0), jnp.float32)
    embeddings = jax.random.normal(ks[1], (N, EMBED_T), jnp.float32)
    skip_second = jax.random.normal(ks[2], (N, in_channels // 2, 2 * H0, 2 * W0), jnp.float32)
    skip_first = jax.random.normal(ks[3], (N, in_channels // 2, 2 * H0, 2 * W0), jnp.float32)

    params = init_upblock_params(ks[4], in_channels, out_channels, attention=True)

    @jax.jit
    def forward(x, emb, s_first, s_second):
        # skips.pop() yields s_first, then s_second (matches torch list semantics)
        return up_block_forward(x, emb, [s_second, s_first], params, out_channels)

    y = forward(x, embeddings, skip_first, skip_second)
    y = jax.block_until_ready(y)

    assert y.shape == (N, out_channels, 2 * H0, 2 * W0), y.shape
    assert bool(jnp.all(jnp.isfinite(y)))
    print("KERNEL_OK")
</pallas_src>

<mosaic_0001>
module attributes {stable_mosaic.version = 11 : i64} {
  func.func @kernel(%arg0: i32, %arg1: memref<1x16x64xf32, #tpu.memory_space<vmem>>, %arg2: memref<1x16x256xf32, #tpu.memory_space<vmem>>, %arg3: memref<1x16x1xf32, #tpu.memory_space<vmem>>, %arg4: memref<2x256xbf16, #tpu.memory_space<vmem>>, %arg5: memref<64x256xbf16, #tpu.memory_space<vmem>>, %arg6: memref<32x288xbf16, #tpu.memory_space<vmem>>, %arg7: memref<32x1xf32, #tpu.memory_space<vmem>>, %arg8: memref<16x144xbf16, #tpu.memory_space<vmem>>, %arg9: memref<16x1xf32, #tpu.memory_space<vmem>>, %arg10: memref<16x1xf32, #tpu.memory_space<vmem>>, %arg11: memref<16x1xf32, #tpu.memory_space<vmem>>, %arg12: memref<1x16x256xbf16, #tpu.memory_space<vmem>>) attributes {dimension_semantics = [#tpu.dimension_semantics<parallel>], iteration_bounds = array<i64: 2>, scalar_prefetch = 0 : i64, scratch_operands = 0 : i64, tpu.core_type = #tpu.core_type<tc>, window_params = [{transform_indices = @transform_0, window_bounds = array<i64: 1, 16, 64>}, {transform_indices = @transform_1, window_bounds = array<i64: 1, 16, 256>}, {transform_indices = @transform_2, window_bounds = array<i64: 1, 16, 1>}, {pipeline_mode = #tpu.pipeline_mode<synchronous>, transform_indices = @transform_3, window_bounds = array<i64: 2, 256>}, {pipeline_mode = #tpu.pipeline_mode<synchronous>, transform_indices = @transform_4, window_bounds = array<i64: 64, 256>}, {pipeline_mode = #tpu.pipeline_mode<synchronous>, transform_indices = @transform_5, window_bounds = array<i64: 32, 288>}, {pipeline_mode = #tpu.pipeline_mode<synchronous>, transform_indices = @transform_6, window_bounds = array<i64: 32, 1>}, {pipeline_mode = #tpu.pipeline_mode<synchronous>, transform_indices = @transform_7, window_bounds = array<i64: 16, 144>}, {pipeline_mode = #tpu.pipeline_mode<synchronous>, transform_indices = @transform_8, window_bounds = array<i64: 16, 1>}, {pipeline_mode = #tpu.pipeline_mode<synchronous>, transform_indices = @transform_9, window_bounds = array<i64: 16, 1>}, {pipeline_mode = #tpu.pipeline_mode<synchronous>, transform_indices = @transform_10, window_bounds = array<i64: 16, 1>}, {transform_indices = @transform_11, window_bounds = array<i64: 1, 16, 256>}]} {
    %c0 = arith.constant 0 : index
    %c0_0 = arith.constant 0 : index
    %0 = vector.load %arg4[%c0, %c0_0] : memref<2x256xbf16, #tpu.memory_space<vmem>>, vector<2x256xbf16>
    %c0_1 = arith.constant 0 : index
    %c0_2 = arith.constant 0 : index
    %c0_3 = arith.constant 0 : index
    %1 = vector.load %arg1[%c0_1, %c0_2, %c0_3] : memref<1x16x64xf32, #tpu.memory_space<vmem>>, vector<1x16x64xf32>
    %2 = vector.shape_cast %1 : vector<1x16x64xf32> to vector<16x64xf32>
    %3 = arith.truncf %2 : vector<16x64xf32> to vector<16x64xbf16>
    %c0_4 = arith.constant 0 : index
    %c0_5 = arith.constant 0 : index
    %c0_6 = arith.constant 0 : index
    %4 = vector.load %arg2[%c0_4, %c0_5, %c0_6] : memref<1x16x256xf32, #tpu.memory_space<vmem>>, vector<1x16x256xf32>
    %5 = vector.shape_cast %4 : vector<1x16x256xf32> to vector<16x256xf32>
    %6 = arith.truncf %5 : vector<16x256xf32> to vector<16x256xbf16>
    %c0_7 = arith.constant 0 : index
    %c0_8 = arith.constant 0 : index
    %7 = vector.load %arg5[%c0_7, %c0_8] : memref<64x256xbf16, #tpu.memory_space<vmem>>, vector<64x256xbf16>
    %cst = arith.constant dense<0.000000e+00> : vector<16x256xf32>
    %8 = tpu.matmul %3, %7, %cst {dimension_numbers = #tpu.dot_dimension_numbers<[1], [0], [0], [1], [0, 0, 1, 1], [], []>} : vector<16x64xbf16>, vector<64x256xbf16>, vector<16x256xf32> -> vector<16x256xf32>
    %9 = arith.truncf %8 : vector<16x256xf32> to vector<16x256xbf16>
    %cst_9 = arith.constant 0.000000e+00 : bf16
    %10 = vector.broadcast %cst_9 : bf16 to vector<16x17xbf16>
    %11 = vector.extract_strided_slice %9 {offsets = [0, 0], sizes = [16, 239], strides = [1, 1]} : vector<16x256xbf16> to vector<16x239xbf16>
    %12 = tpu.concatenate %10, %11 in 1 : vector<16x17xbf16>, vector<16x239xbf16> -> vector<16x256xbf16>
    %13 = vector.extract_strided_slice %0 {offsets = [0, 0], sizes = [1, 256], strides = [1, 1]} : vector<2x256xbf16> to vector<1x256xbf16>
    %14 = vector.broadcast %13 : vector<1x256xbf16> to vector<16x256xbf16>
    %15 = arith.mulf %12, %14 : vector<16x256xbf16>
    %cst_10 = arith.constant 0.000000e+00 : bf16
    %16 = vector.broadcast %cst_10 : bf16 to vector<16x16xbf16>
    %17 = vector.extract_strided_slice %9 {offsets = [0, 0], sizes = [16, 240], strides = [1, 1]} : vector<16x256xbf16> to vector<16x240xbf16>
    %18 = tpu.concatenate %16, %17 in 1 : vector<16x16xbf16>, vector<16x240xbf16> -> vector<16x256xbf16>
    %cst_11 = arith.constant 0.000000e+00 : bf16
    %19 = vector.broadcast %cst_11 : bf16 to vector<16x15xbf16>
    %20 = vector.extract_strided_slice %9 {offsets = [0, 0], sizes = [16, 241], strides = [1, 1]} : vector<16x256xbf16> to vector<16x241xbf16>
    %21 = tpu.concatenate %19, %20 in 1 : vector<16x15xbf16>, vector<16x241xbf16> -> vector<16x256xbf16>
    %22 = vector.extract_strided_slice %0 {offsets = [1, 0], sizes = [1, 256], strides = [1, 1]} : vector<2x256xbf16> to vector<1x256xbf16>
    %23 = vector.broadcast %22 : vector<1x256xbf16> to vector<16x256xbf16>
    %24 = arith.mulf %21, %23 : vector<16x256xbf16>
    %cst_12 = arith.constant 0.000000e+00 : bf16
    %25 = vector.broadcast %cst_12 : bf16 to vector<16x1xbf16>
    %26 = vector.extract_strided_slice %9 {offsets = [0, 0], sizes = [16, 255], strides = [1, 1]} : vector<16x256xbf16> to vector<16x255xbf16>
    %27 = tpu.concatenate %25, %26 in 1 : vector<16x1xbf16>, vector<16x255xbf16> -> vector<16x256xbf16>
    %28 = vector.extract_strided_slice %0 {offsets = [0, 0], sizes = [1, 256], strides = [1, 1]} : vector<2x256xbf16> to vector<1x256xbf16>
    %29 = vector.broadcast %28 : vector<1x256xbf16> to vector<16x256xbf16>
    %30 = arith.mulf %27, %29 : vector<16x256xbf16>
    %31 = vector.extract_strided_slice %9 {offsets = [0, 1], sizes = [16, 255], strides = [1, 1]} : vector<16x256xbf16> to vector<16x255xbf16>
    %cst_13 = arith.constant 0.000000e+00 : bf16
    %32 = vector.broadcast %cst_13 : bf16 to vector<16x1xbf16>
    %33 = tpu.concatenate %31, %32 in 1 : vector<16x255xbf16>, vector<16x1xbf16> -> vector<16x256xbf16>
    %34 = vector.extract_strided_slice %0 {offsets = [1, 0], sizes = [1, 256], strides = [1, 1]} : vector<2x256xbf16> to vector<1x256xbf16>
    %35 = vector.broadcast %34 : vector<1x256xbf16> to vector<16x256xbf16>
    %36 = arith.mulf %33, %35 : vector<16x256xbf16>
    %37 = vector.extract_strided_slice %9 {offsets = [0, 15], sizes = [16, 241], strides = [1, 1]} : vector<16x256xbf16> to vector<16x241xbf16>
    %cst_14 = arith.constant 0.000000e+00 : bf16
    %38 = vector.broadcast %cst_14 : bf16 to vector<16x15xbf16>
    %39 = tpu.concatenate %37, %38 in 1 : vector<16x241xbf16>, vector<16x15xbf16> -> vector<16x256xbf16>
    %40 = vector.extract_strided_slice %0 {offsets = [0, 0], sizes = [1, 256], strides = [1, 1]} : vector<2x256xbf16> to vector<1x256xbf16>
    %41 = vector.broadcast %40 : vector<1x256xbf16> to vector<16x256xbf16>
    %42 = arith.mulf %39, %41 : vector<16x256xbf16>
    %43 = vector.extract_strided_slice %9 {offsets = [0, 16], sizes = [16, 240], strides = [1, 1]} : vector<16x256xbf16> to vector<16x240xbf16>
    %cst_15 = arith.constant 0.000000e+00 : bf16
    %44 = vector.broadcast %cst_15 : bf16 to vector<16x16xbf16>
    %45 = tpu.concatenate %43, %44 in 1 : vector<16x240xbf16>, vector<16x16xbf16> -> vector<16x256xbf16>
    %46 = vector.extract_strided_slice %9 {offsets = [0, 17], sizes = [16, 239], strides = [1, 1]} : vector<16x256xbf16> to vector<16x239xbf16>
    %cst_16 = arith.constant 0.000000e+00 : bf16
    %47 = vector.broadcast %cst_16 : bf16 to vector<16x17xbf16>
    %48 = tpu.concatenate %46, %47 in 1 : vector<16x239xbf16>, vector<16x17xbf16> -> vector<16x256xbf16>
    %49 = vector.extract_strided_slice %0 {offsets = [1, 0], sizes = [1, 256], strides = [1, 1]} : vector<2x256xbf16> to vector<1x256xbf16>
    %50 = vector.broadcast %49 : vector<1x256xbf16> to vector<16x256xbf16>
    %51 = arith.mulf %48, %50 : vector<16x256xbf16>
    %cst_17 = arith.constant 0.000000e+00 : bf16
    %52 = vector.broadcast %cst_17 : bf16 to vector<16x17xbf16>
    %53 = vector.extract_strided_slice %6 {offsets = [0, 0], sizes = [16, 239], strides = [1, 1]} : vector<16x256xbf16> to vector<16x239xbf16>
    %54 = tpu.concatenate %52, %53 in 1 : vector<16x17xbf16>, vector<16x239xbf16> -> vector<16x256xbf16>
    %55 = vector.extract_strided_slice %0 {offsets = [0, 0], sizes = [1, 256], strides = [1, 1]} : vector<2x256xbf16> to vector<1x256xbf16>
    %56 = vector.broadcast %55 : vector<1x256xbf16> to vector<16x256xbf16>
    %57 = arith.mulf %54, %56 : vector<16x256xbf16>
    %cst_18 = arith.constant 0.000000e+00 : bf16
    %58 = vector.broadcast %cst_18 : bf16 to vector<16x16xbf16>
    %59 = vector.extract_strided_slice %6 {offsets = [0, 0], sizes = [16, 240], strides = [1, 1]} : vector<16x256xbf16> to vector<16x240xbf16>
    %60 = tpu.concatenate %58, %59 in 1 : vector<16x16xbf16>, vector<16x240xbf16> -> vector<16x256xbf16>
    %cst_19 = arith.constant 0.000000e+00 : bf16
    %61 = vector.broadcast %cst_19 : bf16 to vector<16x15xbf16>
    %62 = vector.extract_strided_slice %6 {offsets = [0, 0], sizes = [16, 241], strides = [1, 1]} : vector<16x256xbf16> to vector<16x241xbf16>
    %63 = tpu.concatenate %61, %62 in 1 : vector<16x15xbf16>, vector<16x241xbf16> -> vector<16x256xbf16>
    %64 = vector.extract_strided_slice %0 {offsets = [1, 0], sizes = [1, 256], strides = [1, 1]} : vector<2x256xbf16> to vector<1x256xbf16>
    %65 = vector.broadcast %64 : vector<1x256xbf16> to vector<16x256xbf16>
    %66 = arith.mulf %63, %65 : vector<16x256xbf16>
    %cst_20 = arith.constant 0.000000e+00 : bf16
    %67 = vector.broadcast %cst_20 : bf16 to vector<16x1xbf16>
    %68 = vector.extract_strided_slice %6 {offsets = [0, 0], sizes = [16, 255], strides = [1, 1]} : vector<16x256xbf16> to vector<16x255xbf16>
    %69 = tpu.concatenate %67, %68 in 1 : vector<16x1xbf16>, vector<16x255xbf16> -> vector<16x256xbf16>
    %70 = vector.extract_strided_slice %0 {offsets = [0, 0], sizes = [1, 256], strides = [1, 1]} : vector<2x256xbf16> to vector<1x256xbf16>
    %71 = vector.broadcast %70 : vector<1x256xbf16> to vector<16x256xbf16>
    %72 = arith.mulf %69, %71 : vector<16x256xbf16>
    %73 = vector.extract_strided_slice %6 {offsets = [0, 1], sizes = [16, 255], strides = [1, 1]} : vector<16x256xbf16> to vector<16x255xbf16>
    %cst_21 = arith.constant 0.000000e+00 : bf16
    %74 = vector.broadcast %cst_21 : bf16 to vector<16x1xbf16>
    %75 = tpu.concatenate %73, %74 in 1 : vector<16x255xbf16>, vector<16x1xbf16> -> vector<16x256xbf16>
    %76 = vector.extract_strided_slice %0 {offsets = [1, 0], sizes = [1, 256], strides = [1, 1]} : vector<2x256xbf16> to vector<1x256xbf16>
    %77 = vector.broadcast %76 : vector<1x256xbf16> to vector<16x256xbf16>
    %78 = arith.mulf %75, %77 : vector<16x256xbf16>
    %79 = vector.extract_strided_slice %6 {offsets = [0, 15], sizes = [16, 241], strides = [1, 1]} : vector<16x256xbf16> to vector<16x241xbf16>
    %cst_22 = arith.constant 0.000000e+00 : bf16
    %80 = vector.broadcast %cst_22 : bf16 to vector<16x15xbf16>
    %81 = tpu.concatenate %79, %80 in 1 : vector<16x241xbf16>, vector<16x15xbf16> -> vector<16x256xbf16>
    %82 = vector.extract_strided_slice %0 {offsets = [0, 0], sizes = [1, 256], strides = [1, 1]} : vector<2x256xbf16> to vector<1x256xbf16>
    %83 = vector.broadcast %82 : vector<1x256xbf16> to vector<16x256xbf16>
    %84 = arith.mulf %81, %83 : vector<16x256xbf16>
    %85 = vector.extract_strided_slice %6 {offsets = [0, 16], sizes = [16, 240], strides = [1, 1]} : vector<16x256xbf16> to vector<16x240xbf16>
    %cst_23 = arith.constant 0.000000e+00 : bf16
    %86 = vector.broadcast %cst_23 : bf16 to vector<16x16xbf16>
    %87 = tpu.concatenate %85, %86 in 1 : vector<16x240xbf16>, vector<16x16xbf16> -> vector<16x256xbf16>
    %88 = vector.extract_strided_slice %6 {offsets = [0, 17], sizes = [16, 239], strides = [1, 1]} : vector<16x256xbf16> to vector<16x239xbf16>
    %cst_24 = arith.constant 0.000000e+00 : bf16
    %89 = vector.broadcast %cst_24 : bf16 to vector<16x17xbf16>
    %90 = tpu.concatenate %88, %89 in 1 : vector<16x239xbf16>, vector<16x17xbf16> -> vector<16x256xbf16>
    %91 = vector.extract_strided_slice %0 {offsets = [1, 0], sizes = [1, 256], strides = [1, 1]} : vector<2x256xbf16> to vector<1x256xbf16>
    %92 = vector.broadcast %91 : vector<1x256xbf16> to vector<16x256xbf16>
    %93 = arith.mulf %90, %92 : vector<16x256xbf16>
    %94 = tpu.concatenate %15, %57, %18, %60, %24, %66, %30, %72, %9, %6, %36, %78, %42, %84, %45, %87 in 0 : vector<16x256xbf16>, vector<16x256xbf16>, vector<16x256xbf16>, vector<16x256xbf16>, vector<16x256xbf16>, vector<16x256xbf16>, vector<16x256xbf16>, vector<16x256xbf16>, vector<16x256xbf16>, vector<16x256xbf16>, vector<16x256xbf16>, vector<16x256xbf16>, vector<16x256xbf16>, vector<16x256xbf16>, vector<16x256xbf16>, vector<16x256xbf16> -> vector<256x256xbf16>
    %95 = tpu.concatenate %51, %93 in 0 : vector<16x256xbf16>, vector<16x256xbf16> -> vector<32x256xbf16>
    %96 = tpu.concatenate %94, %95 in 0 : vector<256x256xbf16>, vector<32x256xbf16> -> vector<288x256xbf16>
    %c0_25 = arith.constant 0 : index
    %c0_26 = arith.constant 0 : index
    %97 = vector.load %arg6[%c0_25, %c0_26] : memref<32x288xbf16, #tpu.memory_space<vmem>>, vector<32x288xbf16>
    %cst_27 = arith.constant dense<0.000000e+00> : vector<32x256xf32>
    %98 = tpu.matmul %97, %96, %cst_27 {dimension_numbers = #tpu.dot_dimension_numbers<[1], [0], [0], [1], [0, 0, 1, 1], [], []>} : vector<32x288xbf16>, vector<288x256xbf16>, vector<32x256xf32> -> vector<32x256xf32>
    %c0_28 = arith.constant 0 : index
    %c0_29 = arith.constant 0 : index
    %99 = vector.load %arg7[%c0_28, %c0_29] : memref<32x1xf32, #tpu.memory_space<vmem>>, vector<32x1xf32>
    %100 = vector.broadcast %99 : vector<32x1xf32> to vector<32x256xf32>
    %101 = arith.addf %98, %100 : vector<32x256xf32>
    %102 = vector.extract_strided_slice %101 {offsets = [0, 0], sizes = [16, 256], strides = [1, 1]} : vector<32x256xf32> to vector<16x256xf32>
    %103 = vector.extract_strided_slice %101 {offsets = [16, 0], sizes = [16, 256], strides = [1, 1]} : vector<32x256xf32> to vector<16x256xf32>
    %c0_30 = arith.constant 0 : index
    %c0_31 = arith.constant 0 : index
    %104 = vector.load %arg10[%c0_30, %c0_31] : memref<16x1xf32, #tpu.memory_space<vmem>>, vector<16x1xf32>
    %c0_32 = arith.constant 0 : index
    %c0_33 = arith.constant 0 : index
    %105 = vector.load %arg11[%c0_32, %c0_33] : memref<16x1xf32, #tpu.memory_space<vmem>>, vector<16x1xf32>
    %cst_34 = arith.constant dense<0.000000e+00> : vector<16xf32>
    %106 = vector.multi_reduction <add>, %102, %cst_34 [1] : vector<16x256xf32> to vector<16xf32>
    %107 = vector.shape_cast %106 : vector<16xf32> to vector<16x1xf32>
    %cst_35 = arith.constant 2.560000e+02 : f32
    %108 = vector.broadcast %cst_35 : f32 to vector<16x1xf32>
    %109 = arith.divf %107, %108 : vector<16x1xf32>
    %110 = vector.broadcast %109 : vector<16x1xf32> to vector<16x256xf32>
    %111 = arith.subf %102, %110 : vector<16x256xf32>
    %112 = arith.mulf %111, %111 : vector<16x256xf32>
    %cst_36 = arith.constant dense<0.000000e+00> : vector<16xf32>
    %113 = vector.multi_reduction <add>, %112, %cst_36 [1] : vector<16x256xf32> to vector<16xf32>
    %114 = vector.shape_cast %113 : vector<16xf32> to vector<16x1xf32>
    %cst_37 = arith.constant 2.560000e+02 : f32
    %115 = vector.broadcast %cst_37 : f32 to vector<16x1xf32>
    %116 = arith.divf %114, %115 : vector<16x1xf32>
    %cst_38 = arith.constant 9.99999997E-7 : f32
    %117 = vector.broadcast %cst_38 : f32 to vector<16x1xf32>
    %118 = arith.addf %116, %117 : vector<16x1xf32>
    %119 = math.rsqrt %118 : vector<16x1xf32>
    %120 = vector.broadcast %119 : vector<16x1xf32> to vector<16x256xf32>
    %121 = arith.mulf %111, %120 : vector<16x256xf32>
    %122 = vector.broadcast %104 : vector<16x1xf32> to vector<16x256xf32>
    %123 = arith.mulf %121, %122 : vector<16x256xf32>
    %124 = vector.broadcast %105 : vector<16x1xf32> to vector<16x256xf32>
    %125 = arith.addf %123, %124 : vector<16x256xf32>
    %c0_39 = arith.constant 0 : index
    %c0_40 = arith.constant 0 : index
    %c0_41 = arith.constant 0 : index
    %126 = vector.load %arg3[%c0_39, %c0_40, %c0_41] : memref<1x16x1xf32, #tpu.memory_space<vmem>>, vector<1x16x1xf32>
    %127 = vector.shape_cast %126 : vector<1x16x1xf32> to vector<16x1xf32>
    %128 = vector.broadcast %127 : vector<16x1xf32> to vector<16x256xf32>
    %129 = arith.addf %125, %128 : vector<16x256xf32>
    %130 = arith.negf %129 : vector<16x256xf32>
    %131 = math.exp %130 : vector<16x256xf32>
    %cst_42 = arith.constant 1.000000e+00 : f32
    %132 = vector.broadcast %cst_42 : f32 to vector<16x256xf32>
    %133 = arith.addf %132, %131 : vector<16x256xf32>
    %134 = arith.divf %132, %133 : vector<16x256xf32>
    %135 = arith.mulf %129, %134 : vector<16x256xf32>
    %136 = arith.truncf %135 : vector<16x256xf32> to vector<16x256xbf16>
    %cst_43 = arith.constant 0.000000e+00 : bf16
    %137 = vector.broadcast %cst_43 : bf16 to vector<16x17xbf16>
    %138 = vector.extract_strided_slice %136 {offsets = [0, 0], sizes = [16, 239], strides = [1, 1]} : vector<16x256xbf16> to vector<16x239xbf16>
    %139 = tpu.concatenate %137, %138 in 1 : vector<16x17xbf16>, vector<16x239xbf16> -> vector<16x256xbf16>
    %140 = vector.extract_strided_slice %0 {offsets = [0, 0], sizes = [1, 256], strides = [1, 1]} : vector<2x256xbf16> to vector<1x256xbf16>
    %141 = vector.broadcast %140 : vector<1x256xbf16> to vector<16x256xbf16>
    %142 = arith.mulf %139, %141 : vector<16x256xbf16>
    %cst_44 = arith.constant 0.000000e+00 : bf16
    %143 = vector.broadcast %cst_44 : bf16 to vector<16x16xbf16>
    %144 = vector.extract_strided_slice %136 {offsets = [0, 0], sizes = [16, 240], strides = [1, 1]} : vector<16x256xbf16> to vector<16x240xbf16>
    %145 = tpu.concatenate %143, %144 in 1 : vector<16x16xbf16>, vector<16x240xbf16> -> vector<16x256xbf16>
    %cst_45 = arith.constant 0.000000e+00 : bf16
    %146 = vector.broadcast %cst_45 : bf16 to vector<16x15xbf16>
    %147 = vector.extract_strided_slice %136 {offsets = [0, 0], sizes = [16, 241], strides = [1, 1]} : vector<16x256xbf16> to vector<16x241xbf16>
    %148 = tpu.concatenate %146, %147 in 1 : vector<16x15xbf16>, vector<16x241xbf16> -> vector<16x256xbf16>
    %149 = vector.extract_strided_slice %0 {offsets = [1, 0], sizes = [1, 256], strides = [1, 1]} : vector<2x256xbf16> to vector<1x256xbf16>
    %150 = vector.broadcast %149 : vector<1x256xbf16> to vector<16x256xbf16>
    %151 = arith.mulf %148, %150 : vector<16x256xbf16>
    %cst_46 = arith.constant 0.000000e+00 : bf16
    %152 = vector.broadcast %cst_46 : bf16 to vector<16x1xbf16>
    %153 = vector.extract_strided_slice %136 {offsets = [0, 0], sizes = [16, 255], strides = [1, 1]} : vector<16x256xbf16> to vector<16x255xbf16>
    %154 = tpu.concatenate %152, %153 in 1 : vector<16x1xbf16>, vector<16x255xbf16> -> vector<16x256xbf16>
    %155 = vector.extract_strided_slice %0 {offsets = [0, 0], sizes = [1, 256], strides = [1, 1]} : vector<2x256xbf16> to vector<1x256xbf16>
    %156 = vector.broadcast %155 : vector<1x256xbf16> to vector<16x256xbf16>
    %157 = arith.mulf %154, %156 : vector<16x256xbf16>
    %158 = vector.extract_strided_slice %136 {offsets = [0, 1], sizes = [16, 255], strides = [1, 1]} : vector<16x256xbf16> to vector<16x255xbf16>
    %cst_47 = arith.constant 0.000000e+00 : bf16
    %159 = vector.broadcast %cst_47 : bf16 to vector<16x1xbf16>
    %160 = tpu.concatenate %158, %159 in 1 : vector<16x255xbf16>, vector<16x1xbf16> -> vector<16x256xbf16>
    %161 = vector.extract_strided_slice %0 {offsets = [1, 0], sizes = [1, 256], strides = [1, 1]} : vector<2x256xbf16> to vector<1x256xbf16>
    %162 = vector.broadcast %161 : vector<1x256xbf16> to vector<16x256xbf16>
    %163 = arith.mulf %160, %162 : vector<16x256xbf16>
    %164 = vector.extract_strided_slice %136 {offsets = [0, 15], sizes = [16, 241], strides = [1, 1]} : vector<16x256xbf16> to vector<16x241xbf16>
    %cst_48 = arith.constant 0.000000e+00 : bf16
    %165 = vector.broadcast %cst_48 : bf16 to vector<16x15xbf16>
    %166 = tpu.concatenate %164, %165 in 1 : vector<16x241xbf16>, vector<16x15xbf16> -> vector<16x256xbf16>
    %167 = vector.extract_strided_slice %0 {offsets = [0, 0], sizes = [1, 256], strides = [1, 1]} : vector<2x256xbf16> to vector<1x256xbf16>
    %168 = vector.broadcast %167 : vector<1x256xbf16> to vector<16x256xbf16>
    %169 = arith.mulf %166, %168 : vector<16x256xbf16>
    %170 = vector.extract_strided_slice %136 {offsets = [0, 16], sizes = [16, 240], strides = [1, 1]} : vector<16x256xbf16> to vector<16x240xbf16>
    %cst_49 = arith.constant 0.000000e+00 : bf16
    %171 = vector.broadcast %cst_49 : bf16 to vector<16x16xbf16>
    %172 = tpu.concatenate %170, %171 in 1 : vector<16x240xbf16>, vector<16x16xbf16> -> vector<16x256xbf16>
    %173 = vector.extract_strided_slice %136 {offsets = [0, 17], sizes = [16, 239], strides = [1, 1]} : vector<16x256xbf16> to vector<16x239xbf16>
    %cst_50 = arith.constant 0.000000e+00 : bf16
    %174 = vector.broadcast %cst_50 : bf16 to vector<16x17xbf16>
    %175 = tpu.concatenate %173, %174 in 1 : vector<16x239xbf16>, vector<16x17xbf16> -> vector<16x256xbf16>
    %176 = vector.extract_strided_slice %0 {offsets = [1, 0], sizes = [1, 256], strides = [1, 1]} : vector<2x256xbf16> to vector<1x256xbf16>
    %177 = vector.broadcast %176 : vector<1x256xbf16> to vector<16x256xbf16>
    %178 = arith.mulf %175, %177 : vector<16x256xbf16>
    %179 = tpu.concatenate %142, %145, %151, %157, %136, %163, %169, %172, %178 in 0 : vector<16x256xbf16>, vector<16x256xbf16>, vector<16x256xbf16>, vector<16x256xbf16>, vector<16x256xbf16>, vector<16x256xbf16>, vector<16x256xbf16>, vector<16x256xbf16>, vector<16x256xbf16> -> vector<144x256xbf16>
    %c0_51 = arith.constant 0 : index
    %c0_52 = arith.constant 0 : index
    %180 = vector.load %arg8[%c0_51, %c0_52] : memref<16x144xbf16, #tpu.memory_space<vmem>>, vector<16x144xbf16>
    %cst_53 = arith.constant dense<0.000000e+00> : vector<16x256xf32>
    %181 = tpu.matmul %180, %179, %cst_53 {dimension_numbers = #tpu.dot_dimension_numbers<[1], [0], [0], [1], [0, 0, 1, 1], [], []>} : vector<16x144xbf16>, vector<144x256xbf16>, vector<16x256xf32> -> vector<16x256xf32>
    %c0_54 = arith.constant 0 : index
    %c0_55 = arith.constant 0 : index
    %182 = vector.load %arg9[%c0_54, %c0_55] : memref<16x1xf32, #tpu.memory_space<vmem>>, vector<16x1xf32>
    %183 = vector.broadcast %182 : vector<16x1xf32> to vector<16x256xf32>
    %184 = arith.addf %181, %183 : vector<16x256xf32>
    %185 = arith.addf %184, %103 : vector<16x256xf32>
    %186 = arith.truncf %185 : vector<16x256xf32> to vector<16x256xbf16>
    %c0_56 = arith.constant 0 : index
    %c0_57 = arith.constant 0 : index
    %c0_58 = arith.constant 0 : index
    %187 = vector.load %arg12[%c0_56, %c0_57, %c0_58] : memref<1x16x256xbf16, #tpu.memory_space<vmem>>, vector<1x16x256xbf16>
    %188 = vector.shape_cast %187 : vector<1x16x256xbf16> to vector<16x256xbf16>
    %189 = vector.shape_cast %186 : vector<16x256xbf16> to vector<1x16x256xbf16>
    tpu.vector_store %arg12[%c0_56, %c0_57, %c0_58], %189 {strides = array<i32>} : memref<1x16x256xbf16, #tpu.memory_space<vmem>>, vector<1x16x256xbf16>,
    return
  }
  func.func @transform_0(%arg0: i32) -> (i32, i32, i32) {
    %c0_i32 = arith.constant 0 : i32
    %c0_i32_0 = arith.constant 0 : i32
    %c0_i32_1 = arith.constant 0 : i32
    return %arg0, %c0_i32, %c0_i32_0 : i32, i32, i32
  }
  func.func @transform_1(%arg0: i32) -> (i32, i32, i32) {
    %c0_i32 = arith.constant 0 : i32
    %c0_i32_0 = arith.constant 0 : i32
    %c0_i32_1 = arith.constant 0 : i32
    return %arg0, %c0_i32, %c0_i32_0 : i32, i32, i32
  }
  func.func @transform_2(%arg0: i32) -> (i32, i32, i32) {
    %c0_i32 = arith.constant 0 : i32
    %c0_i32_0 = arith.constant 0 : i32
    %c0_i32_1 = arith.constant 0 : i32
    return %arg0, %c0_i32, %c0_i32_0 : i32, i32, i32
  }
  func.func @transform_3(%arg0: i32) -> (i32, i32) {
    %c0_i32 = arith.constant 0 : i32
    %c0_i32_0 = arith.constant 0 : i32
    %c0_i32_1 = arith.constant 0 : i32
    return %c0_i32, %c0_i32_0 : i32, i32
  }
  func.func @transform_4(%arg0: i32) -> (i32, i32) {
    %c0_i32 = arith.constant 0 : i32
    %c0_i32_0 = arith.constant 0 : i32
    %c0_i32_1 = arith.constant 0 : i32
    return %c0_i32, %c0_i32_0 : i32, i32
  }
  func.func @transform_5(%arg0: i32) -> (i32, i32) {
    %c0_i32 = arith.constant 0 : i32
    %c0_i32_0 = arith.constant 0 : i32
    %c0_i32_1 = arith.constant 0 : i32
    return %c0_i32, %c0_i32_0 : i32, i32
  }
  func.func @transform_6(%arg0: i32) -> (i32, i32) {
    %c0_i32 = arith.constant 0 : i32
    %c0_i32_0 = arith.constant 0 : i32
    %c0_i32_1 = arith.constant 0 : i32
    return %c0_i32, %c0_i32_0 : i32, i32
  }
  func.func @transform_7(%arg0: i32) -> (i32, i32) {
    %c0_i32 = arith.constant 0 : i32
    %c0_i32_0 = arith.constant 0 : i32
    %c0_i32_1 = arith.constant 0 : i32
    return %c0_i32, %c0_i32_0 : i32, i32
  }
  func.func @transform_8(%arg0: i32) -> (i32, i32) {
    %c0_i32 = arith.constant 0 : i32
    %c0_i32_0 = arith.constant 0 : i32
    %c0_i32_1 = arith.constant 0 : i32
    return %c0_i32, %c0_i32_0 : i32, i32
  }
  func.func @transform_9(%arg0: i32) -> (i32, i32) {
    %c0_i32 = arith.constant 0 : i32
    %c0_i32_0 = arith.constant 0 : i32
    %c0_i32_1 = arith.constant 0 : i32
    return %c0_i32, %c0_i32_0 : i32, i32
  }
  func.func @transform_10(%arg0: i32) -> (i32, i32) {
    %c0_i32 = arith.constant 0 : i32
    %c0_i32_0 = arith.constant 0 : i32
    %c0_i32_1 = arith.constant 0 : i32
    return %c0_i32, %c0_i32_0 : i32, i32
  }
  func.func @transform_11(%arg0: i32) -> (i32, i32, i32) {
    %c0_i32 = arith.constant 0 : i32
    %c0_i32_0 = arith.constant 0 : i32
    %c0_i32_1 = arith.constant 0 : i32
    return %arg0, %c0_i32, %c0_i32_0 : i32, i32, i32
  }
}

module attributes {stable_mosaic.version = 11 : i64} {
  func.func @kernel(%arg0: i32, %arg1: memref<1x16x256xbf16, #tpu.memory_space<vmem>>, %arg2: memref<1x16x256xf32, #tpu.memory_space<vmem>>, %arg3: memref<1x16x1xf32, #tpu.memory_space<vmem>>, %arg4: memref<2x256xbf16, #tpu.memory_space<vmem>>, %arg5: memref<32x288xbf16, #tpu.memory_space<vmem>>, %arg6: memref<32x1xf32, #tpu.memory_space<vmem>>, %arg7: memref<16x144xbf16, #tpu.memory_space<vmem>>, %arg8: memref<16x1xf32, #tpu.memory_space<vmem>>, %arg9: memref<16x1xf32, #tpu.memory_space<vmem>>, %arg10: memref<16x1xf32, #tpu.memory_space<vmem>>, %arg11: memref<1x16x256xbf16, #tpu.memory_space<vmem>>) attributes {dimension_semantics = [#tpu.dimension_semantics<parallel>], iteration_bounds = array<i64: 2>, scalar_prefetch = 0 : i64, scratch_operands = 0 : i64, tpu.core_type = #tpu.core_type<tc>, window_params = [{transform_indices = @transform_0, window_bounds = array<i64: 1, 16, 256>}, {transform_indices = @transform_1, window_bounds = array<i64: 1, 16, 256>}, {transform_indices = @transform_2, window_bounds = array<i64: 1, 16, 1>}, {pipeline_mode = #tpu.pipeline_mode<synchronous>, transform_indices = @transform_3, window_bounds = array<i64: 2, 256>}, {pipeline_mode = #tpu.pipeline_mode<synchronous>, transform_indices = @transform_4, window_bounds = array<i64: 32, 288>}, {pipeline_mode = #tpu.pipeline_mode<synchronous>, transform_indices = @transform_5, window_bounds = array<i64: 32, 1>}, {pipeline_mode = #tpu.pipeline_mode<synchronous>, transform_indices = @transform_6, window_bounds = array<i64: 16, 144>}, {pipeline_mode = #tpu.pipeline_mode<synchronous>, transform_indices = @transform_7, window_bounds = array<i64: 16, 1>}, {pipeline_mode = #tpu.pipeline_mode<synchronous>, transform_indices = @transform_8, window_bounds = array<i64: 16, 1>}, {pipeline_mode = #tpu.pipeline_mode<synchronous>, transform_indices = @transform_9, window_bounds = array<i64: 16, 1>}, {transform_indices = @transform_10, window_bounds = array<i64: 1, 16, 256>}]} {
    %c0 = arith.constant 0 : index
    %c0_0 = arith.constant 0 : index
    %0 = vector.load %arg4[%c0, %c0_0] : memref<2x256xbf16, #tpu.memory_space<vmem>>, vector<2x256xbf16>
    %c0_1 = arith.constant 0 : index
    %c0_2 = arith.constant 0 : index
    %c0_3 = arith.constant 0 : index
    %1 = vector.load %arg1[%c0_1, %c0_2, %c0_3] : memref<1x16x256xbf16, #tpu.memory_space<vmem>>, vector<1x16x256xbf16>
    %2 = vector.shape_cast %1 : vector<1x16x256xbf16> to vector<16x256xbf16>
    %c0_4 = arith.constant 0 : index
    %c0_5 = arith.constant 0 : index
    %c0_6 = arith.constant 0 : index
    %3 = vector.load %arg2[%c0_4, %c0_5, %c0_6] : memref<1x16x256xf32, #tpu.memory_space<vmem>>, vector<1x16x256xf32>
    %4 = vector.shape_cast %3 : vector<1x16x256xf32> to vector<16x256xf32>
    %5 = arith.truncf %4 : vector<16x256xf32> to vector<16x256xbf16>
    %cst = arith.constant 0.000000e+00 : bf16
    %6 = vector.broadcast %cst : bf16 to vector<16x17xbf16>
    %7 = vector.extract_strided_slice %2 {offsets = [0, 0], sizes = [16, 239], strides = [1, 1]} : vector<16x256xbf16> to vector<16x239xbf16>
    %8 = tpu.concatenate %6, %7 in 1 : vector<16x17xbf16>, vector<16x239xbf16> -> vector<16x256xbf16>
    %9 = vector.extract_strided_slice %0 {offsets = [0, 0], sizes = [1, 256], strides = [1, 1]} : vector<2x256xbf16> to vector<1x256xbf16>
    %10 = vector.broadcast %9 : vector<1x256xbf16> to vector<16x256xbf16>
    %11 = arith.mulf %8, %10 : vector<16x256xbf16>
    %cst_7 = arith.constant 0.000000e+00 : bf16
    %12 = vector.broadcast %cst_7 : bf16 to vector<16x16xbf16>
    %13 = vector.extract_strided_slice %2 {offsets = [0, 0], sizes = [16, 240], strides = [1, 1]} : vector<16x256xbf16> to vector<16x240xbf16>
    %14 = tpu.concatenate %12, %13 in 1 : vector<16x16xbf16>, vector<16x240xbf16> -> vector<16x256xbf16>
    %cst_8 = arith.constant 0.000000e+00 : bf16
    %15 = vector.broadcast %cst_8 : bf16 to vector<16x15xbf16>
    %16 = vector.extract_strided_slice %2 {offsets = [0, 0], sizes = [16, 241], strides = [1, 1]} : vector<16x256xbf16> to vector<16x241xbf16>
    %17 = tpu.concatenate %15, %16 in 1 : vector<16x15xbf16>, vector<16x241xbf16> -> vector<16x256xbf16>
    %18 = vector.extract_strided_slice %0 {offsets = [1, 0], sizes = [1, 256], strides = [1, 1]} : vector<2x256xbf16> to vector<1x256xbf16>
    %19 = vector.broadcast %18 : vector<1x256xbf16> to vector<16x256xbf16>
    %20 = arith.mulf %17, %19 : vector<16x256xbf16>
    %cst_9 = arith.constant 0.000000e+00 : bf16
    %21 = vector.broadcast %cst_9 : bf16 to vector<16x1xbf16>
    %22 = vector.extract_strided_slice %2 {offsets = [0, 0], sizes = [16, 255], strides = [1, 1]} : vector<16x256xbf16> to vector<16x255xbf16>
    %23 = tpu.concatenate %21, %22 in 1 : vector<16x1xbf16>, vector<16x255xbf16> -> vector<16x256xbf16>
    %24 = vector.extract_strided_slice %0 {offsets = [0, 0], sizes = [1, 256], strides = [1, 1]} : vector<2x256xbf16> to vector<1x256xbf16>
    %25 = vector.broadcast %24 : vector<1x256xbf16> to vector<16x256xbf16>
    %26 = arith.mulf %23, %25 : vector<16x256xbf16>
    %27 = vector.extract_strided_slice %2 {offsets = [0, 1], sizes = [16, 255], strides = [1, 1]} : vector<16x256xbf16> to vector<16x255xbf16>
    %cst_10 = arith.constant 0.000000e+00 : bf16
    %28 = vector.broadcast %cst_10 : bf16 to vector<16x1xbf16>
    %29 = tpu.concatenate %27, %28 in 1 : vector<16x255xbf16>, vector<16x1xbf16> -> vector<16x256xbf16>
    %30 = vector.extract_strided_slice %0 {offsets = [1, 0], sizes = [1, 256], strides = [1, 1]} : vector<2x256xbf16> to vector<1x256xbf16>
    %31 = vector.broadcast %30 : vector<1x256xbf16> to vector<16x256xbf16>
    %32 = arith.mulf %29, %31 : vector<16x256xbf16>
    %33 = vector.extract_strided_slice %2 {offsets = [0, 15], sizes = [16, 241], strides = [1, 1]} : vector<16x256xbf16> to vector<16x241xbf16>
    %cst_11 = arith.constant 0.000000e+00 : bf16
    %34 = vector.broadcast %cst_11 : bf16 to vector<16x15xbf16>
    %35 = tpu.concatenate %33, %34 in 1 : vector<16x241xbf16>, vector<16x15xbf16> -> vector<16x256xbf16>
    %36 = vector.extract_strided_slice %0 {offsets = [0, 0], sizes = [1, 256], strides = [1, 1]} : vector<2x256xbf16> to vector<1x256xbf16>
    %37 = vector.broadcast %36 : vector<1x256xbf16> to vector<16x256xbf16>
    %38 = arith.mulf %35, %37 : vector<16x256xbf16>
    %39 = vector.extract_strided_slice %2 {offsets = [0, 16], sizes = [16, 240], strides = [1, 1]} : vector<16x256xbf16> to vector<16x240xbf16>
    %cst_12 = arith.constant 0.000000e+00 : bf16
    %40 = vector.broadcast %cst_12 : bf16 to vector<16x16xbf16>
    %41 = tpu.concatenate %39, %40 in 1 : vector<16x240xbf16>, vector<16x16xbf16> -> vector<16x256xbf16>
    %42 = vector.extract_strided_slice %2 {offsets = [0, 17], sizes = [16, 239], strides = [1, 1]} : vector<16x256xbf16> to vector<16x239xbf16>
    %cst_13 = arith.constant 0.000000e+00 : bf16
    %43 = vector.broadcast %cst_13 : bf16 to vector<16x17xbf16>
    %44 = tpu.concatenate %42, %43 in 1 : vector<16x239xbf16>, vector<16x17xbf16> -> vector<16x256xbf16>
    %45 = vector.extract_strided_slice %0 {offsets = [1, 0], sizes = [1, 256], strides = [1, 1]} : vector<2x256xbf16> to vector<1x256xbf16>
    %46 = vector.broadcast %45 : vector<1x256xbf16> to vector<16x256xbf16>
    %47 = arith.mulf %44, %46 : vector<16x256xbf16>
    %cst_14 = arith.constant 0.000000e+00 : bf16
    %48 = vector.broadcast %cst_14 : bf16 to vector<16x17xbf16>
    %49 = vector.extract_strided_slice %5 {offsets = [0, 0], sizes = [16, 239], strides = [1, 1]} : vector<16x256xbf16> to vector<16x239xbf16>
    %50 = tpu.concatenate %48, %49 in 1 : vector<16x17xbf16>, vector<16x239xbf16> -> vector<16x256xbf16>
    %51 = vector.extract_strided_slice %0 {offsets = [0, 0], sizes = [1, 256], strides = [1, 1]} : vector<2x256xbf16> to vector<1x256xbf16>
    %52 = vector.broadcast %51 : vector<1x256xbf16> to vector<16x256xbf16>
    %53 = arith.mulf %50, %52 : vector<16x256xbf16>
    %cst_15 = arith.constant 0.000000e+00 : bf16
    %54 = vector.broadcast %cst_15 : bf16 to vector<16x16xbf16>
    %55 = vector.extract_strided_slice %5 {offsets = [0, 0], sizes = [16, 240], strides = [1, 1]} : vector<16x256xbf16> to vector<16x240xbf16>
    %56 = tpu.concatenate %54, %55 in 1 : vector<16x16xbf16>, vector<16x240xbf16> -> vector<16x256xbf16>
    %cst_16 = arith.constant 0.000000e+00 : bf16
    %57 = vector.broadcast %cst_16 : bf16 to vector<16x15xbf16>
    %58 = vector.extract_strided_slice %5 {offsets = [0, 0], sizes = [16, 241], strides = [1, 1]} : vector<16x256xbf16> to vector<16x241xbf16>
    %59 = tpu.concatenate %57, %58 in 1 : vector<16x15xbf16>, vector<16x241xbf16> -> vector<16x256xbf16>
    %60 = vector.extract_strided_slice %0 {offsets = [1, 0], sizes = [1, 256], strides = [1, 1]} : vector<2x256xbf16> to vector<1x256xbf16>
    %61 = vector.broadcast %60 : vector<1x256xbf16> to vector<16x256xbf16>
    %62 = arith.mulf %59, %61 : vector<16x256xbf16>
    %cst_17 = arith.constant 0.000000e+00 : bf16
    %63 = vector.broadcast %cst_17 : bf16 to vector<16x1xbf16>
    %64 = vector.extract_strided_slice %5 {offsets = [0, 0], sizes = [16, 255], strides = [1, 1]} : vector<16x256xbf16> to vector<16x255xbf16>
    %65 = tpu.concatenate %63, %64 in 1 : vector<16x1xbf16>, vector<16x255xbf16> -> vector<16x256xbf16>
    %66 = vector.extract_strided_slice %0 {offsets = [0, 0], sizes = [1, 256], strides = [1, 1]} : vector<2x256xbf16> to vector<1x256xbf16>
    %67 = vector.broadcast %66 : vector<1x256xbf16> to vector<16x256xbf16>
    %68 = arith.mulf %65, %67 : vector<16x256xbf16>
    %69 = vector.extract_strided_slice %5 {offsets = [0, 1], sizes = [16, 255], strides = [1, 1]} : vector<16x256xbf16> to vector<16x255xbf16>
    %cst_18 = arith.constant 0.000000e+00 : bf16
    %70 = vector.broadcast %cst_18 : bf16 to vector<16x1xbf16>
    %71 = tpu.concatenate %69, %70 in 1 : vector<16x255xbf16>, vector<16x1xbf16> -> vector<16x256xbf16>
    %72 = vector.extract_strided_slice %0 {offsets = [1, 0], sizes = [1, 256], strides = [1, 1]} : vector<2x256xbf16> to vector<1x256xbf16>
    %73 = vector.broadcast %72 : vector<1x256xbf16> to vector<16x256xbf16>
    %74 = arith.mulf %71, %73 : vector<16x256xbf16>
    %75 = vector.extract_strided_slice %5 {offsets = [0, 15], sizes = [16, 241], strides = [1, 1]} : vector<16x256xbf16> to vector<16x241xbf16>
    %cst_19 = arith.constant 0.000000e+00 : bf16
    %76 = vector.broadcast %cst_19 : bf16 to vector<16x15xbf16>
    %77 = tpu.concatenate %75, %76 in 1 : vector<16x241xbf16>, vector<16x15xbf16> -> vector<16x256xbf16>
    %78 = vector.extract_strided_slice %0 {offsets = [0, 0], sizes = [1, 256], strides = [1, 1]} : vector<2x256xbf16> to vector<1x256xbf16>
    %79 = vector.broadcast %78 : vector<1x256xbf16> to vector<16x256xbf16>
    %80 = arith.mulf %77, %79 : vector<16x256xbf16>
    %81 = vector.extract_strided_slice %5 {offsets = [0, 16], sizes = [16, 240], strides = [1, 1]} : vector<16x256xbf16> to vector<16x240xbf16>
    %cst_20 = arith.constant 0.000000e+00 : bf16
    %82 = vector.broadcast %cst_20 : bf16 to vector<16x16xbf16>
    %83 = tpu.concatenate %81, %82 in 1 : vector<16x240xbf16>, vector<16x16xbf16> -> vector<16x256xbf16>
    %84 = vector.extract_strided_slice %5 {offsets = [0, 17], sizes = [16, 239], strides = [1, 1]} : vector<16x256xbf16> to vector<16x239xbf16>
    %cst_21 = arith.constant 0.000000e+00 : bf16
    %85 = vector.broadcast %cst_21 : bf16 to vector<16x17xbf16>
    %86 = tpu.concatenate %84, %85 in 1 : vector<16x239xbf16>, vector<16x17xbf16> -> vector<16x256xbf16>
    %87 = vector.extract_strided_slice %0 {offsets = [1, 0], sizes = [1, 256], strides = [1, 1]} : vector<2x256xbf16> to vector<1x256xbf16>
    %88 = vector.broadcast %87 : vector<1x256xbf16> to vector<16x256xbf16>
    %89 = arith.mulf %86, %88 : vector<16x256xbf16>
    %90 = tpu.concatenate %11, %53, %14, %56, %20, %62, %26, %68, %2, %5, %32, %74, %38, %80, %41, %83 in 0 : vector<16x256xbf16>, vector<16x256xbf16>, vector<16x256xbf16>, vector<16x256xbf16>, vector<16x256xbf16>, vector<16x256xbf16>, vector<16x256xbf16>, vector<16x256xbf16>, vector<16x256xbf16>, vector<16x256xbf16>, vector<16x256xbf16>, vector<16x256xbf16>, vector<16x256xbf16>, vector<16x256xbf16>, vector<16x256xbf16>, vector<16x256xbf16> -> vector<256x256xbf16>
    %91 = tpu.concatenate %47, %89 in 0 : vector<16x256xbf16>, vector<16x256xbf16> -> vector<32x256xbf16>
    %92 = tpu.concatenate %90, %91 in 0 : vector<256x256xbf16>, vector<32x256xbf16> -> vector<288x256xbf16>
    %c0_22 = arith.constant 0 : index
    %c0_23 = arith.constant 0 : index
    %93 = vector.load %arg5[%c0_22, %c0_23] : memref<32x288xbf16, #tpu.memory_space<vmem>>, vector<32x288xbf16>
    %cst_24 = arith.constant dense<0.000000e+00> : vector<32x256xf32>
    %94 = tpu.matmul %93, %92, %cst_24 {dimension_numbers = #tpu.dot_dimension_numbers<[1], [0], [0], [1], [0, 0, 1, 1], [], []>} : vector<32x288xbf16>, vector<288x256xbf16>, vector<32x256xf32> -> vector<32x256xf32>
    %c0_25 = arith.constant 0 : index
    %c0_26 = arith.constant 0 : index
    %95 = vector.load %arg6[%c0_25, %c0_26] : memref<32x1xf32, #tpu.memory_space<vmem>>, vector<32x1xf32>
    %96 = vector.broadcast %95 : vector<32x1xf32> to vector<32x256xf32>
    %97 = arith.addf %94, %96 : vector<32x256xf32>
    %98 = vector.extract_strided_slice %97 {offsets = [0, 0], sizes = [16, 256], strides = [1, 1]} : vector<32x256xf32> to vector<16x256xf32>
    %99 = vector.extract_strided_slice %97 {offsets = [16, 0], sizes = [16, 256], strides = [1, 1]} : vector<32x256xf32> to vector<16x256xf32>
    %c0_27 = arith.constant 0 : index
    %c0_28 = arith.constant 0 : index
    %100 = vector.load %arg9[%c0_27, %c0_28] : memref<16x1xf32, #tpu.memory_space<vmem>>, vector<16x1xf32>
    %c0_29 = arith.constant 0 : index
    %c0_30 = arith.constant 0 : index
    %101 = vector.load %arg10[%c0_29, %c0_30] : memref<16x1xf32, #tpu.memory_space<vmem>>, vector<16x1xf32>
    %cst_31 = arith.constant dense<0.000000e+00> : vector<16xf32>
    %102 = vector.multi_reduction <add>, %98, %cst_31 [1] : vector<16x256xf32> to vector<16xf32>
    %103 = vector.shape_cast %102 : vector<16xf32> to vector<16x1xf32>
    %cst_32 = arith.constant 2.560000e+02 : f32
    %104 = vector.broadcast %cst_32 : f32 to vector<16x1xf32>
    %105 = arith.divf %103, %104 : vector<16x1xf32>
    %106 = vector.broadcast %105 : vector<16x1xf32> to vector<16x256xf32>
    %107 = arith.subf %98, %106 : vector<16x256xf32>
    %108 = arith.mulf %107, %107 : vector<16x256xf32>
    %cst_33 = arith.constant dense<0.000000e+00> : vector<16xf32>
    %109 = vector.multi_reduction <add>, %108, %cst_33 [1] : vector<16x256xf32> to vector<16xf32>
    %110 = vector.shape_cast %109 : vector<16xf32> to vector<16x1xf32>
    %cst_34 = arith.constant 2.560000e+02 : f32
    %111 = vector.broadcast %cst_34 : f32 to vector<16x1xf32>
    %112 = arith.divf %110, %111 : vector<16x1xf32>
    %cst_35 = arith.constant 9.99999997E-7 : f32
    %113 = vector.broadcast %cst_35 : f32 to vector<16x1xf32>
    %114 = arith.addf %112, %113 : vector<16x1xf32>
    %115 = math.rsqrt %114 : vector<16x1xf32>
    %116 = vector.broadcast %115 : vector<16x1xf32> to vector<16x256xf32>
    %117 = arith.mulf %107, %116 : vector<16x256xf32>
    %118 = vector.broadcast %100 : vector<16x1xf32> to vector<16x256xf32>
    %119 = arith.mulf %117, %118 : vector<16x256xf32>
    %120 = vector.broadcast %101 : vector<16x1xf32> to vector<16x256xf32>
    %121 = arith.addf %119, %120 : vector<16x256xf32>
    %c0_36 = arith.constant 0 : index
    %c0_37 = arith.constant 0 : index
    %c0_38 = arith.constant 0 : index
    %122 = vector.load %arg3[%c0_36, %c0_37, %c0_38] : memref<1x16x1xf32, #tpu.memory_space<vmem>>, vector<1x16x1xf32>
    %123 = vector.shape_cast %122 : vector<1x16x1xf32> to vector<16x1xf32>
    %124 = vector.broadcast %123 : vector<16x1xf32> to vector<16x256xf32>
    %125 = arith.addf %121, %124 : vector<16x256xf32>
    %126 = arith.negf %125 : vector<16x256xf32>
    %127 = math.exp %126 : vector<16x256xf32>
    %cst_39 = arith.constant 1.000000e+00 : f32
    %128 = vector.broadcast %cst_39 : f32 to vector<16x256xf32>
    %129 = arith.addf %128, %127 : vector<16x256xf32>
    %130 = arith.divf %128, %129 : vector<16x256xf32>
    %131 = arith.mulf %125, %130 : vector<16x256xf32>
    %132 = arith.truncf %131 : vector<16x256xf32> to vector<16x256xbf16>
    %cst_40 = arith.constant 0.000000e+00 : bf16
    %133 = vector.broadcast %cst_40 : bf16 to vector<16x17xbf16>
    %134 = vector.extract_strided_slice %132 {offsets = [0, 0], sizes = [16, 239], strides = [1, 1]} : vector<16x256xbf16> to vector<16x239xbf16>
    %135 = tpu.concatenate %133, %134 in 1 : vector<16x17xbf16>, vector<16x239xbf16> -> vector<16x256xbf16>
    %136 = vector.extract_strided_slice %0 {offsets = [0, 0], sizes = [1, 256], strides = [1, 1]} : vector<2x256xbf16> to vector<1x256xbf16>
    %137 = vector.broadcast %136 : vector<1x256xbf16> to vector<16x256xbf16>
    %138 = arith.mulf %135, %137 : vector<16x256xbf16>
    %cst_41 = arith.constant 0.000000e+00 : bf16
    %139 = vector.broadcast %cst_41 : bf16 to vector<16x16xbf16>
    %140 = vector.extract_strided_slice %132 {offsets = [0, 0], sizes = [16, 240], strides = [1, 1]} : vector<16x256xbf16> to vector<16x240xbf16>
    %141 = tpu.concatenate %139, %140 in 1 : vector<16x16xbf16>, vector<16x240xbf16> -> vector<16x256xbf16>
    %cst_42 = arith.constant 0.000000e+00 : bf16
    %142 = vector.broadcast %cst_42 : bf16 to vector<16x15xbf16>
    %143 = vector.extract_strided_slice %132 {offsets = [0, 0], sizes = [16, 241], strides = [1, 1]} : vector<16x256xbf16> to vector<16x241xbf16>
    %144 = tpu.concatenate %142, %143 in 1 : vector<16x15xbf16>, vector<16x241xbf16> -> vector<16x256xbf16>
    %145 = vector.extract_strided_slice %0 {offsets = [1, 0], sizes = [1, 256], strides = [1, 1]} : vector<2x256xbf16> to vector<1x256xbf16>
    %146 = vector.broadcast %145 : vector<1x256xbf16> to vector<16x256xbf16>
    %147 = arith.mulf %144, %146 : vector<16x256xbf16>
    %cst_43 = arith.constant 0.000000e+00 : bf16
    %148 = vector.broadcast %cst_43 : bf16 to vector<16x1xbf16>
    %149 = vector.extract_strided_slice %132 {offsets = [0, 0], sizes = [16, 255], strides = [1, 1]} : vector<16x256xbf16> to vector<16x255xbf16>
    %150 = tpu.concatenate %148, %149 in 1 : vector<16x1xbf16>, vector<16x255xbf16> -> vector<16x256xbf16>
    %151 = vector.extract_strided_slice %0 {offsets = [0, 0], sizes = [1, 256], strides = [1, 1]} : vector<2x256xbf16> to vector<1x256xbf16>
    %152 = vector.broadcast %151 : vector<1x256xbf16> to vector<16x256xbf16>
    %153 = arith.mulf %150, %152 : vector<16x256xbf16>
    %154 = vector.extract_strided_slice %132 {offsets = [0, 1], sizes = [16, 255], strides = [1, 1]} : vector<16x256xbf16> to vector<16x255xbf16>
    %cst_44 = arith.constant 0.000000e+00 : bf16
    %155 = vector.broadcast %cst_44 : bf16 to vector<16x1xbf16>
    %156 = tpu.concatenate %154, %155 in 1 : vector<16x255xbf16>, vector<16x1xbf16> -> vector<16x256xbf16>
    %157 = vector.extract_strided_slice %0 {offsets = [1, 0], sizes = [1, 256], strides = [1, 1]} : vector<2x256xbf16> to vector<1x256xbf16>
    %158 = vector.broadcast %157 : vector<1x256xbf16> to vector<16x256xbf16>
    %159 = arith.mulf %156, %158 : vector<16x256xbf16>
    %160 = vector.extract_strided_slice %132 {offsets = [0, 15], sizes = [16, 241], strides = [1, 1]} : vector<16x256xbf16> to vector<16x241xbf16>
    %cst_45 = arith.constant 0.000000e+00 : bf16
    %161 = vector.broadcast %cst_45 : bf16 to vector<16x15xbf16>
    %162 = tpu.concatenate %160, %161 in 1 : vector<16x241xbf16>, vector<16x15xbf16> -> vector<16x256xbf16>
    %163 = vector.extract_strided_slice %0 {offsets = [0, 0], sizes = [1, 256], strides = [1, 1]} : vector<2x256xbf16> to vector<1x256xbf16>
    %164 = vector.broadcast %163 : vector<1x256xbf16> to vector<16x256xbf16>
    %165 = arith.mulf %162, %164 : vector<16x256xbf16>
    %166 = vector.extract_strided_slice %132 {offsets = [0, 16], sizes = [16, 240], strides = [1, 1]} : vector<16x256xbf16> to vector<16x240xbf16>
    %cst_46 = arith.constant 0.000000e+00 : bf16
    %167 = vector.broadcast %cst_46 : bf16 to vector<16x16xbf16>
    %168 = tpu.concatenate %166, %167 in 1 : vector<16x240xbf16>, vector<16x16xbf16> -> vector<16x256xbf16>
    %169 = vector.extract_strided_slice %132 {offsets = [0, 17], sizes = [16, 239], strides = [1, 1]} : vector<16x256xbf16> to vector<16x239xbf16>
    %cst_47 = arith.constant 0.000000e+00 : bf16
    %170 = vector.broadcast %cst_47 : bf16 to vector<16x17xbf16>
    %171 = tpu.concatenate %169, %170 in 1 : vector<16x239xbf16>, vector<16x17xbf16> -> vector<16x256xbf16>
    %172 = vector.extract_strided_slice %0 {offsets = [1, 0], sizes = [1, 256], strides = [1, 1]} : vector<2x256xbf16> to vector<1x256xbf16>
    %173 = vector.broadcast %172 : vector<1x256xbf16> to vector<16x256xbf16>
    %174 = arith.mulf %171, %173 : vector<16x256xbf16>
    %175 = tpu.concatenate %138, %141, %147, %153, %132, %159, %165, %168, %174 in 0 : vector<16x256xbf16>, vector<16x256xbf16>, vector<16x256xbf16>, vector<16x256xbf16>, vector<16x256xbf16>, vector<16x256xbf16>, vector<16x256xbf16>, vector<16x256xbf16>, vector<16x256xbf16> -> vector<144x256xbf16>
    %c0_48 = arith.constant 0 : index
    %c0_49 = arith.constant 0 : index
    %176 = vector.load %arg7[%c0_48, %c0_49] : memref<16x144xbf16, #tpu.memory_space<vmem>>, vector<16x144xbf16>
    %cst_50 = arith.constant dense<0.000000e+00> : vector<16x256xf32>
    %177 = tpu.matmul %176, %175, %cst_50 {dimension_numbers = #tpu.dot_dimension_numbers<[1], [0], [0], [1], [0, 0, 1, 1], [], []>} : vector<16x144xbf16>, vector<144x256xbf16>, vector<16x256xf32> -> vector<16x256xf32>
    %c0_51 = arith.constant 0 : index
    %c0_52 = arith.constant 0 : index
    %178 = vector.load %arg8[%c0_51, %c0_52] : memref<16x1xf32, #tpu.memory_space<vmem>>, vector<16x1xf32>
    %179 = vector.broadcast %178 : vector<16x1xf32> to vector<16x256xf32>
    %180 = arith.addf %177, %179 : vector<16x256xf32>
    %181 = arith.addf %180, %99 : vector<16x256xf32>
    %182 = arith.truncf %181 : vector<16x256xf32> to vector<16x256xbf16>
    %c0_53 = arith.constant 0 : index
    %c0_54 = arith.constant 0 : index
    %c0_55 = arith.constant 0 : index
    %183 = vector.load %arg11[%c0_53, %c0_54, %c0_55] : memref<1x16x256xbf16, #tpu.memory_space<vmem>>, vector<1x16x256xbf16>
    %184 = vector.shape_cast %183 : vector<1x16x256xbf16> to vector<16x256xbf16>
    %185 = vector.shape_cast %182 : vector<16x256xbf16> to vector<1x16x256xbf16>
    tpu.vector_store %arg11[%c0_53, %c0_54, %c0_55], %185 {strides = array<i32>} : memref<1x16x256xbf16, #tpu.memory_space<vmem>>, vector<1x16x256xbf16>,
    return
  }
  func.func @transform_0(%arg0: i32) -> (i32, i32, i32) {
    %c0_i32 = arith.constant 0 : i32
    %c0_i32_0 = arith.constant 0 : i32
    %c0_i32_1 = arith.constant 0 : i32
    return %arg0, %c0_i32, %c0_i32_0 : i32, i32, i32
  }
  func.func @transform_1(%arg0: i32) -> (i32, i32, i32) {
    %c0_i32 = arith.constant 0 : i32
    %c0_i32_0 = arith.constant 0 : i32
    %c0_i32_1 = arith.constant 0 : i32
    return %arg0, %c0_i32, %c0_i32_0 : i32, i32, i32
  }
  func.func @transform_2(%arg0: i32) -> (i32, i32, i32) {
    %c0_i32 = arith.constant 0 : i32
    %c0_i32_0 = arith.constant 0 : i32
    %c0_i32_1 = arith.constant 0 : i32
    return %arg0, %c0_i32, %c0_i32_0 : i32, i32, i32
  }
  func.func @transform_3(%arg0: i32) -> (i32, i32) {
    %c0_i32 = arith.constant 0 : i32
    %c0_i32_0 = arith.constant 0 : i32
    %c0_i32_1 = arith.constant 0 : i32
    return %c0_i32, %c0_i32_0 : i32, i32
  }
  func.func @transform_4(%arg0: i32) -> (i32, i32) {
    %c0_i32 = arith.constant 0 : i32
    %c0_i32_0 = arith.constant 0 : i32
    %c0_i32_1 = arith.constant 0 : i32
    return %c0_i32, %c0_i32_0 : i32, i32
  }
  func.func @transform_5(%arg0: i32) -> (i32, i32) {
    %c0_i32 = arith.constant 0 : i32
    %c0_i32_0 = arith.constant 0 : i32
    %c0_i32_1 = arith.constant 0 : i32
    return %c0_i32, %c0_i32_0 : i32, i32
  }
  func.func @transform_6(%arg0: i32) -> (i32, i32) {
    %c0_i32 = arith.constant 0 : i32
    %c0_i32_0 = arith.constant 0 : i32
    %c0_i32_1 = arith.constant 0 : i32
    return %c0_i32, %c0_i32_0 : i32, i32
  }
  func.func @transform_7(%arg0: i32) -> (i32, i32) {
    %c0_i32 = arith.constant 0 : i32
    %c0_i32_0 = arith.constant 0 : i32
    %c0_i32_1 = arith.constant 0 : i32
    return %c0_i32, %c0_i32_0 : i32, i32
  }
  func.func @transform_8(%arg0: i32) -> (i32, i32) {
    %c0_i32 = arith.constant 0 : i32
    %c0_i32_0 = arith.constant 0 : i32
    %c0_i32_1 = arith.constant 0 : i32
    return %c0_i32, %c0_i32_0 : i32, i32
  }
  func.func @transform_9(%arg0: i32) -> (i32, i32) {
    %c0_i32 = arith.constant 0 : i32
    %c0_i32_0 = arith.constant 0 : i32
    %c0_i32_1 = arith.constant 0 : i32
    return %c0_i32, %c0_i32_0 : i32, i32
  }
  func.func @transform_10(%arg0: i32) -> (i32, i32, i32) {
    %c0_i32 = arith.constant 0 : i32
    %c0_i32_0 = arith.constant 0 : i32
    %c0_i32_1 = arith.constant 0 : i32
    return %arg0, %c0_i32, %c0_i32_0 : i32, i32, i32
  }
}

module attributes {stable_mosaic.version = 11 : i64} {
  func.func @kernel(%arg0: i32, %arg1: memref<1x16x256xbf16, #tpu.memory_space<vmem>>, %arg2: memref<16x1xf32, #tpu.memory_space<vmem>>, %arg3: memref<16x1xf32, #tpu.memory_space<vmem>>, %arg4: memref<48x16xbf16, #tpu.memory_space<vmem>>, %arg5: memref<48x1xf32, #tpu.memory_space<vmem>>, %arg6: memref<16x16xbf16, #tpu.memory_space<vmem>>, %arg7: memref<16x1xf32, #tpu.memory_space<vmem>>, %arg8: memref<1x16x256xf32, #tpu.memory_space<vmem>>) attributes {dimension_semantics = [#tpu.dimension_semantics<parallel>], iteration_bounds = array<i64: 2>, scalar_prefetch = 0 : i64, scratch_operands = 0 : i64, tpu.core_type = #tpu.core_type<tc>, window_params = [{transform_indices = @transform_0, window_bounds = array<i64: 1, 16, 256>}, {pipeline_mode = #tpu.pipeline_mode<synchronous>, transform_indices = @transform_1, window_bounds = array<i64: 16, 1>}, {pipeline_mode = #tpu.pipeline_mode<synchronous>, transform_indices = @transform_2, window_bounds = array<i64: 16, 1>}, {pipeline_mode = #tpu.pipeline_mode<synchronous>, transform_indices = @transform_3, window_bounds = array<i64: 48, 16>}, {pipeline_mode = #tpu.pipeline_mode<synchronous>, transform_indices = @transform_4, window_bounds = array<i64: 48, 1>}, {pipeline_mode = #tpu.pipeline_mode<synchronous>, transform_indices = @transform_5, window_bounds = array<i64: 16, 16>}, {pipeline_mode = #tpu.pipeline_mode<synchronous>, transform_indices = @transform_6, window_bounds = array<i64: 16, 1>}, {transform_indices = @transform_7, window_bounds = array<i64: 1, 16, 256>}]} {
    %c0 = arith.constant 0 : index
    %c0_0 = arith.constant 0 : index
    %c0_1 = arith.constant 0 : index
    %0 = vector.load %arg1[%c0, %c0_0, %c0_1] : memref<1x16x256xbf16, #tpu.memory_space<vmem>>, vector<1x16x256xbf16>
    %1 = vector.shape_cast %0 : vector<1x16x256xbf16> to vector<16x256xbf16>
    %2 = arith.extf %1 : vector<16x256xbf16> to vector<16x256xf32>
    %c0_2 = arith.constant 0 : index
    %c0_3 = arith.constant 0 : index
    %3 = vector.load %arg2[%c0_2, %c0_3] : memref<16x1xf32, #tpu.memory_space<vmem>>, vector<16x1xf32>
    %c0_4 = arith.constant 0 : index
    %c0_5 = arith.constant 0 : index
    %4 = vector.load %arg3[%c0_4, %c0_5] : memref<16x1xf32, #tpu.memory_space<vmem>>, vector<16x1xf32>
    %cst = arith.constant dense<0.000000e+00> : vector<16xf32>
    %5 = vector.multi_reduction <add>, %2, %cst [1] : vector<16x256xf32> to vector<16xf32>
    %6 = vector.shape_cast %5 : vector<16xf32> to vector<16x1xf32>
    %cst_6 = arith.constant 2.560000e+02 : f32
    %7 = vector.broadcast %cst_6 : f32 to vector<16x1xf32>
    %8 = arith.divf %6, %7 : vector<16x1xf32>
    %9 = vector.broadcast %8 : vector<16x1xf32> to vector<16x256xf32>
    %10 = arith.subf %2, %9 : vector<16x256xf32>
    %11 = arith.mulf %10, %10 : vector<16x256xf32>
    %cst_7 = arith.constant dense<0.000000e+00> : vector<16xf32>
    %12 = vector.multi_reduction <add>, %11, %cst_7 [1] : vector<16x256xf32> to vector<16xf32>
    %13 = vector.shape_cast %12 : vector<16xf32> to vector<16x1xf32>
    %cst_8 = arith.constant 2.560000e+02 : f32
    %14 = vector.broadcast %cst_8 : f32 to vector<16x1xf32>
    %15 = arith.divf %13, %14 : vector<16x1xf32>
    %cst_9 = arith.constant 9.99999997E-7 : f32
    %16 = vector.broadcast %cst_9 : f32 to vector<16x1xf32>
    %17 = arith.addf %15, %16 : vector<16x1xf32>
    %18 = math.rsqrt %17 : vector<16x1xf32>
    %19 = vector.broadcast %18 : vector<16x1xf32> to vector<16x256xf32>
    %20 = arith.mulf %10, %19 : vector<16x256xf32>
    %21 = vector.broadcast %3 : vector<16x1xf32> to vector<16x256xf32>
    %22 = arith.mulf %20, %21 : vector<16x256xf32>
    %23 = vector.broadcast %4 : vector<16x1xf32> to vector<16x256xf32>
    %24 = arith.addf %22, %23 : vector<16x256xf32>
    %c0_10 = arith.constant 0 : index
    %c0_11 = arith.constant 0 : index
    %25 = vector.load %arg4[%c0_10, %c0_11] : memref<48x16xbf16, #tpu.memory_space<vmem>>, vector<48x16xbf16>
    %26 = arith.truncf %24 : vector<16x256xf32> to vector<16x256xbf16>
    %cst_12 = arith.constant dense<0.000000e+00> : vector<48x256xf32>
    %27 = tpu.matmul %25, %26, %cst_12 {dimension_numbers = #tpu.dot_dimension_numbers<[1], [0], [0], [1], [0, 0, 1, 1], [], []>} : vector<48x16xbf16>, vector<16x256xbf16>, vector<48x256xf32> -> vector<48x256xf32>
    %c0_13 = arith.constant 0 : index
    %c0_14 = arith.constant 0 : index
    %28 = vector.load %arg5[%c0_13, %c0_14] : memref<48x1xf32, #tpu.memory_space<vmem>>, vector<48x1xf32>
    %29 = vector.broadcast %28 : vector<48x1xf32> to vector<48x256xf32>
    %30 = arith.addf %27, %29 : vector<48x256xf32>
    %31 = vector.extract_strided_slice %30 {offsets = [0, 0], sizes = [16, 256], strides = [1, 1]} : vector<48x256xf32> to vector<16x256xf32>
    %32 = vector.extract_strided_slice %30 {offsets = [16, 0], sizes = [16, 256], strides = [1, 1]} : vector<48x256xf32> to vector<16x256xf32>
    %33 = vector.extract_strided_slice %30 {offsets = [32, 0], sizes = [16, 256], strides = [1, 1]} : vector<48x256xf32> to vector<16x256xf32>
    %34 = tpu.transpose %31, [1, 0] : vector<16x256xf32> -> vector<256x16xf32>
    %35 = arith.truncf %34 : vector<256x16xf32> to vector<256x16xbf16>
    %36 = arith.truncf %32 : vector<16x256xf32> to vector<16x256xbf16>
    %cst_15 = arith.constant dense<0.000000e+00> : vector<256x256xf32>
    %37 = tpu.matmul %35, %36, %cst_15 {dimension_numbers = #tpu.dot_dimension_numbers<[1], [0], [0], [1], [0, 0, 1, 1], [], []>} : vector<256x16xbf16>, vector<16x256xbf16>, vector<256x256xf32> -> vector<256x256xf32>
    %cst_16 = arith.constant 2.500000e-01 : f32
    %38 = vector.broadcast %cst_16 : f32 to vector<256x256xf32>
    %39 = arith.mulf %37, %38 : vector<256x256xf32>
    %cst_17 = arith.constant dense<0xFF800000> : vector<256xf32>
    %40 = vector.multi_reduction <maximumf>, %39, %cst_17 [1] : vector<256x256xf32> to vector<256xf32>
    %41 = vector.shape_cast %40 : vector<256xf32> to vector<256x1xf32>
    %42 = vector.broadcast %41 : vector<256x1xf32> to vector<256x256xf32>
    %43 = arith.subf %39, %42 : vector<256x256xf32>
    %44 = math.exp %43 : vector<256x256xf32>
    %cst_18 = arith.constant dense<0.000000e+00> : vector<256xf32>
    %45 = vector.multi_reduction <add>, %44, %cst_18 [1] : vector<256x256xf32> to vector<256xf32>
    %46 = vector.shape_cast %45 : vector<256xf32> to vector<256x1xf32>
    %47 = tpu.reciprocal %46 {approx = true} : vector<256x1xf32> -> vector<256x1xf32>
    %48 = vector.broadcast %47 : vector<256x1xf32> to vector<256x256xf32>
    %49 = arith.mulf %44, %48 : vector<256x256xf32>
    %50 = arith.truncf %33 : vector<16x256xf32> to vector<16x256xbf16>
    %51 = arith.truncf %49 : vector<256x256xf32> to vector<256x256xbf16>
    %cst_19 = arith.constant dense<0.000000e+00> : vector<16x256xf32>
    %52 = tpu.matmul %50, %51, %cst_19 {dimension_numbers = #tpu.dot_dimension_numbers<[1], [1], [0], [0], [0, 0, 1, 0], [], []>} : vector<16x256xbf16>, vector<256x256xbf16>, vector<16x256xf32> -> vector<16x256xf32>
    %c0_20 = arith.constant 0 : index
    %c0_21 = arith.constant 0 : index
    %53 = vector.load %arg6[%c0_20, %c0_21] : memref<16x16xbf16, #tpu.memory_space<vmem>>, vector<16x16xbf16>
    %54 = arith.truncf %52 : vector<16x256xf32> to vector<16x256xbf16>
    %cst_22 = arith.constant dense<0.000000e+00> : vector<16x256xf32>
    %55 = tpu.matmul %53, %54, %cst_22 {dimension_numbers = #tpu.dot_dimension_numbers<[1], [0], [0], [1], [0, 0, 1, 1], [], []>} : vector<16x16xbf16>, vector<16x256xbf16>, vector<16x256xf32> -> vector<16x256xf32>
    %c0_23 = arith.constant 0 : index
    %c0_24 = arith.constant 0 : index
    %56 = vector.load %arg7[%c0_23, %c0_24] : memref<16x1xf32, #tpu.memory_space<vmem>>, vector<16x1xf32>
    %57 = vector.broadcast %56 : vector<16x1xf32> to vector<16x256xf32>
    %58 = arith.addf %55, %57 : vector<16x256xf32>
    %59 = arith.addf %2, %58 : vector<16x256xf32>
    %c0_25 = arith.constant 0 : index
    %c0_26 = arith.constant 0 : index
    %c0_27 = arith.constant 0 : index
    %60 = vector.load %arg8[%c0_25, %c0_26, %c0_27] : memref<1x16x256xf32, #tpu.memory_space<vmem>>, vector<1x16x256xf32>
    %61 = vector.shape_cast %60 : vector<1x16x256xf32> to vector<16x256xf32>
    %62 = vector.shape_cast %59 : vector<16x256xf32> to vector<1x16x256xf32>
    tpu.vector_store %arg8[%c0_25, %c0_26, %c0_27], %62 {strides = array<i32>} : memref<1x16x256xf32, #tpu.memory_space<vmem>>, vector<1x16x256xf32>,
    return
  }
  func.func @transform_0(%arg0: i32) -> (i32, i32, i32) {
    %c0_i32 = arith.constant 0 : i32
    %c0_i32_0 = arith.constant 0 : i32
    %c0_i32_1 = arith.constant 0 : i32
    return %arg0, %c0_i32, %c0_i32_0 : i32, i32, i32
  }
  func.func @transform_1(%arg0: i32) -> (i32, i32) {
    %c0_i32 = arith.constant 0 : i32
    %c0_i32_0 = arith.constant 0 : i32
    %c0_i32_1 = arith.constant 0 : i32
    return %c0_i32, %c0_i32_0 : i32, i32
  }
  func.func @transform_2(%arg0: i32) -> (i32, i32) {
    %c0_i32 = arith.constant 0 : i32
    %c0_i32_0 = arith.constant 0 : i32
    %c0_i32_1 = arith.constant 0 : i32
    return %c0_i32, %c0_i32_0 : i32, i32
  }
  func.func @transform_3(%arg0: i32) -> (i32, i32) {
    %c0_i32 = arith.constant 0 : i32
    %c0_i32_0 = arith.constant 0 : i32
    %c0_i32_1 = arith.constant 0 : i32
    return %c0_i32, %c0_i32_0 : i32, i32
  }
  func.func @transform_4(%arg0: i32) -> (i32, i32) {
    %c0_i32 = arith.constant 0 : i32
    %c0_i32_0 = arith.constant 0 : i32
    %c0_i32_1 = arith.constant 0 : i32
    return %c0_i32, %c0_i32_0 : i32, i32
  }
  func.func @transform_5(%arg0: i32) -> (i32, i32) {
    %c0_i32 = arith.constant 0 : i32
    %c0_i32_0 = arith.constant 0 : i32
    %c0_i32_1 = arith.constant 0 : i32
    return %c0_i32, %c0_i32_0 : i32, i32
  }
  func.func @transform_6(%arg0: i32) -> (i32, i32) {
    %c0_i32 = arith.constant 0 : i32
    %c0_i32_0 = arith.constant 0 : i32
    %c0_i32_1 = arith.constant 0 : i32
    return %c0_i32, %c0_i32_0 : i32, i32
  }
  func.func @transform_7(%arg0: i32) -> (i32, i32, i32) {
    %c0_i32 = arith.constant 0 : i32
    %c0_i32_0 = arith.constant 0 : i32
    %c0_i32_1 = arith.constant 0 : i32
    return %arg0, %c0_i32, %c0_i32_0 : i32, i32, i32
  }
}

</mosaic_0001>

<bundles_post_ra>
// kernel: forward.4
= control target key start
LH: loop header
LB: loop body
LE: loop exit
PB: predicated region body
PF: predicated region fallthrough
CT: control target
= control target key end

     0   :  { %s1397_s13 = smov 0   ;;  %s1715_s0 = inlined_call_operand.vmem [shape: bf16[2,16,256], index: 0, kind: input, shape index: {}]   ;;  %s1716_s1 = inlined_call_operand.vmem [shape: f32[2,16,256], index: 1, kind: input, shape index: {}]   ;;  %s1717_s2 = inlined_call_operand.vmem [shape: f32[2,16,1], index: 2, kind: input, shape index: {}]   ;;  %s1718_s3 = inlined_call_operand.vmem [shape: bf16[2,256], index: 3, kind: input, shape index: {}]   ;;  %s1719_s4 = inlined_call_operand.vmem [shape: bf16[32,288], index: 4, kind: input, shape index: {}]   ;;  %s1720_s5 = inlined_call_operand.vmem [shape: f32[32,1], index: 5, kind: input, shape index: {}]   ;;  %s1721_s6 = inlined_call_operand.vmem [shape: bf16[16,144], index: 6, kind: input, shape index: {}]   ;;  %s1722_s7 = inlined_call_operand.vmem [shape: f32[16,1], index: 7, kind: input, shape index: {}]   ;;  %s1723_s8 = inlined_call_operand.vmem [shape: f32[16,1], index: 8, kind: input, shape index: {}]   ;;  %s1724_s9 = inlined_call_operand.vmem [shape: f32[16,1], index: 9, kind: input, shape index: {}]   ;;  %s1725_s10 = inlined_call_operand.vmem [shape: bf16[2,16,256], index: 10, kind: output, shape index: {}]  }
   0x1 LB: > { %s1196_s14 = sadd.s32 4294967295, %s1330_s13   ;;  %p1200_p0 = scmp.ge.s32.totalorder %s1330_s13, 1  ;;  %s1330_s13 = sphi %s1397_s13, %s20_s13  }
   0x2   : > { %p332_p1 = scmp.lt.s32.totalorder %s1330_s13, 3 }
   0x4   : > { %p333_p2 = pnand %p1200_p0, %p332_p1 }
   0x5   : > { %p380_p3 = scmp.lt.s32.totalorder (!%p333_p2), %s1196_s14, 1  ;;  %s1332_s23 = smov (!%p333_p2), 17   ;;  %v1295_v8 = vld [vmem:[%s1719_s4 + $0x4] ss:$12 sps:$4 sm:$0xff] (!%p333_p2)   ;;  %v1340_v9 = vmov (!%p333_p2), 0   ;;  %v667_v11 = vld [vmem:[%s1720_s5 + $0x8] sm:$0xff] (!%p333_p2)  ;;  %v442_v14 = vlaneseq (!%p333_p2) }
   0x6   : > { %336 = sbr.rel (%p333_p2) target bundleno = 1145 (0x479), region = 60  ;;  %s1333_s24 = smov (!%p333_p2), 16   ;;  %812 = vmatprep.mubr.bf16.mxu0 (!%p333_p2), %v1340_v9  ;;  %759 = vmatprep.mubr.bf16.mxu1 (!%p333_p2), %v1295_v8  ;;  %v666_v10 = vld [vmem:[%s1720_s5] sm:$0xff] (!%p333_p2)  ;;  %v1341_v12 = vmov (!%p333_p2), 1966171168   ;;  %vm422_vm0 = vcmask (!%p333_p2), 138240  }
   0x7   : > { %s1334_s25 = smov (!%p333_p2), 15   ;;  %s1335_s26 = smov (!%p333_p2), 1   ;;  %1288 = vset.pattern.permute.xlu0 (!%p333_p2), %v1340_v9  ;;  %1289 = vset.pattern.permute.xlu1 (!%p333_p2), %v1340_v9  ;;  %v440_v13 = vunpack.c.l.s4 (!%p333_p2), %v1341_v12  ;;  %v443_v16 = vshrl.u32 (!%p333_p2), %v442_v14, 7  ;;  %vm473_vm1 = vcmask (!%p333_p2), 130048   ;;  %vm484_vm3 = vcmask (!%p333_p2), 121856  }
   0x8   : > { %s1336_s27 = smov (!%p333_p2), 127   ;;  %s1337_s28 = smov (!%p333_p2), 113   ;;  %v1211_v17 = vld.sshfl [vmem:[%s1718_s3] sm:$0x11 pattern:$0x75316420] (!%p333_p2)  ;;  %vm1515_vm2 = vmneg (!%p333_p2), %vm473_vm1 }
   0x9   : > { %s1338_s29 = smov (!%p333_p2), 112   ;;  %s1339_s30 = smov (!%p333_p2), 111   ;;  %v441_v15 = vunpack.c.0.s8 (!%p333_p2), %v440_v13  ;;  %v438_v18 = vcombine.high (!%p333_p2), %v1211_v17, %v1211_v17  ;;  %v458_v24 = vsub.s32 (!%p333_p2), 0, %v443_v16  ;;  %vm511_vm4 = vcmask (!%p333_p2), 7168  }
   0xa   : > { %vm524_vm5 = vcmask (!%p333_p2), 1039360   ;;  %vm537_vm6 = vcmask (!%p333_p2), 924672   ;;  %vm561_vm7 = vcmask (!%p333_p2), 908288   ;;  %vm550_vm8 = vcmask (!%p333_p2), 916480  }
   0xb   : > { %v444_v19 = vsub.s32 (!%p333_p2), %v441_v15, %v443_v16  ;;  %vm720_vm9 = vcmask (!%p333_p2), 261120  }
   0xd   : > { %s1729_s14 = smov (!%p380_p3, %s1196_s14), 1  ;;  %v452_v20 = vrot.slane %v438_v18, %v444_v19  ;;  %v445_v21 = vrot.slane %v1211_v17, %v444_v19 }
   0xe   : > { %s1241_s15 = sshll.u32 %s1729_s14, 5  ;;  %s1405_s16 = sshll.u32 %s1729_s14, 4 }
   0xf   : > { %s389_s19 = scalar_lea.vmem %s1716_s1, %s1241_s15  ;;  %s384_s22 = scalar_lea.vmem %s1715_s0, %s1405_s16  ;;  %v461_v22 = vpack.i.b16 %v452_v20, %v452_v20  ;;  %v454_v23 = vpack.i.b16 %v445_v21, %v445_v21  ;;  %v498_v36 = vshrl.u32 %v452_v20, 16  ;;  %v491_v41 = vshrl.u32 %v445_v21, 16 }
  0x10   : > { %v404_v0 = vld [vmem:[%s389_s19] sm:$0xff]  ;;  %v406_v1 = vld [vmem:[%s389_s19 + $0x10] sm:$0xff]  ;;  %v405_v4 = vld [vmem:[%s389_s19 + $0x8] sm:$0xff]  ;;  %s399_s18 = scalar_lea.vmem %s1725_s10, %s1405_s16 }
  0x11   : > { %v1414_v2 = vpack.c.bf16 %v406_v1, %v404_v0  ;;  %v1416_v3 = vld [vmem:[%s384_s22] ss:$8 sps:$4 sm:$0xff]   ;;  %v407_v5 = vld [vmem:[%s389_s19 + $0x18] sm:$0xff]  ;;  %v1424_v7 = vld [vmem:[%s384_s22 + $0x4] ss:$8 sps:$4 sm:$0xff]   ;;  %v1501_v27 = vrot.slane %v461_v22, %v458_v24  ;;  %v1503_v28 = vrot.slane %v454_v23, %v458_v24  ;;  %v499_v42 = vpack.i.b16 %v498_v36, %v498_v36  ;;  %s394_s19 = scalar_lea.vmem %s1717_s2, %s1405_s16 }
  0x12   : > { %418 = vrot.lane.b32.xlu0 %v1416_v3, %s1332_s23  ;;  %v1422_v6 = vpack.c.bf16 %v407_v5, %v405_v4  ;;  %v492_v47 = vpack.i.b16 %v491_v41, %v491_v41 }
  0x13   : > { %572 = vrot.lane.b32.xlu1 %v1414_v2, %s1332_s23  ;;  %v1519_v49 = vrot.slane %v499_v42, %v458_v24 }
  0x14   : > { %v1524_v53 = vrot.slane %v492_v47, %v458_v24 }
  0x16   : > { %420 = vrot.lane.b32.xlu0 %v1424_v7, %s1332_s23 }
  0x17   : > { %574 = vrot.lane.b32.xlu1 %v1422_v6, %s1332_s23 }
  0x1a   : > { %469 = vrot.lane.b32.xlu0 %v1416_v3, %s1333_s24 }
  0x1b   : > { %471 = vrot.lane.b32.xlu1 %v1424_v7, %s1333_s24 }
  0x1e   : > { %583 = vrot.lane.b32.xlu0 %v1414_v2, %s1333_s24 }
  0x1f   : > { %585 = vrot.lane.b32.xlu1 %v1422_v6, %s1333_s24 }
  0x22   : > { %480 = vrot.lane.b32.xlu0 %v1416_v3, %s1334_s25 }
  0x23   : > { %482 = vrot.lane.b32.xlu1 %v1424_v7, %s1334_s25 }
  0x26   : > { %592 = vrot.lane.b32.xlu0 %v1414_v2, %s1334_s25 }
  0x27   : > { %594 = vrot.lane.b32.xlu1 %v1422_v6, %s1334_s25 }
  0x2a   : > { %507 = vrot.lane.b32.xlu0 %v1416_v3, %s1335_s26 }
  0x2b   : > { %509 = vrot.lane.b32.xlu1 %v1424_v7, %s1335_s26 }
  0x2e   : > { %603 = vrot.lane.b32.xlu0 %v1414_v2, %s1335_s26 }
  0x2f   : > { %605 = vrot.lane.b32.xlu1 %v1422_v6, %s1335_s26 }
  0x32   : > { %522 = vrot.lane.b32.xlu0 %v1424_v7, %s1336_s27 }
  0x33   : > { %520 = vrot.lane.b32.xlu1 %v1416_v3, %s1336_s27 }
  0x36   : > { %616 = vrot.lane.b32.xlu0 %v1422_v6, %s1336_s27 }
  0x37   : > { %614 = vrot.lane.b32.xlu1 %v1414_v2, %s1336_s27 }
  0x3a   : > { %535 = vrot.lane.b32.xlu0 %v1424_v7, %s1337_s28 }
  0x3b   : > { %533 = vrot.lane.b32.xlu1 %v1416_v3, %s1337_s28 }
  0x3e   : > { %627 = vrot.lane.b32.xlu0 %v1422_v6, %s1337_s28 }
  0x3f   : > { %625 = vrot.lane.b32.xlu1 %v1414_v2, %s1337_s28 }
  0x42   : > { %559 = vrot.lane.b32.xlu0 %v1424_v7, %s1339_s30 }
  0x43   : > { %546 = vrot.lane.b32.xlu1 %v1416_v3, %s1338_s29 }
  0x46   : > { %548 = vrot.lane.b32.xlu0 %v1424_v7, %s1338_s29 }
  0x47   : > { %557 = vrot.lane.b32.xlu1 %v1416_v3, %s1339_s30 }
  0x4a   : > { %647 = vrot.lane.b32.xlu0 %v1422_v6, %s1339_s30 }
  0x4b   : > { %636 = vrot.lane.b32.xlu1 %v1414_v2, %s1338_s29 }
  0x4e   : > { %638 = vrot.lane.b32.xlu0 %v1422_v6, %s1338_s29 }
  0x4f   : > { %645 = vrot.lane.b32.xlu1 %v1414_v2, %s1339_s30 }
  0x52   : > { %672 = vperm.xlu0 %1288, %v666_v10  }
  0x53   : > { %677 = vperm.xlu1 %1289, %v667_v11  }
  0x84   : > { %v419_v26 = vpop.permute.xlu0 %418 }
  0x85   : > { %v573_v25 = vpop.permute.xlu1 %572  ;;  %v428_v29 = vsel %vm422_vm0, 0, %v419_v26 }
  0x86   : > { %v467_v37 = vmul.bf16 %v1503_v28, %v428_v29  ;;  %v579_v38 = vsel %vm422_vm0, 0, %v573_v25 }
  0x87   : > { %v581_v43 = vmul.bf16 %v579_v38, %v1503_v28 }
  0x88   : > { %v421_v31 = vpop.permute.xlu0 %420 }
  0x89   : > { %v575_v30 = vpop.permute.xlu1 %574  ;;  %v423_v33 = vsel %vm422_vm0, %v419_v26, %v421_v31 }
  0x8a   : > { %v576_v32 = vsel %vm422_vm0, %v573_v25, %v575_v30  ;;  %v468_v35 = vmul.bf16 %v1501_v27, %v423_v33 }
  0x8b   : > { %v582_v34 = vmul.bf16 %v576_v32, %v1501_v27 }
  0x8c   : > { %727 = vmatprep.subr.bf16.mxu1 %v468_v35  ;;  %v470_v40 = vpop.permute.xlu0 %469 }
  0x8d   : > { %v472_v39 = vpop.permute.xlu1 %471  ;;  %728 = vmatpush1.bf16.msra.mxu1 %v467_v37 }
  0x8e   : > { %729 = vmatprep.subr.bf16.mxu1 %v582_v34  ;;  %v474_v44 = vsel %vm473_vm1, %v470_v40, %v472_v39 }
  0x90   : > { %v584_v46 = vpop.permute.xlu0 %583 }
  0x91   : > { %v586_v45 = vpop.permute.xlu1 %585  ;;  %730 = vmatpush1.bf16.msra.mxu1 %v581_v43 }
  0x92   : > { %731 = vmatprep.subr.bf16.mxu1 %v474_v44  ;;  %v587_v50 = vsel %vm473_vm1, %v584_v46, %v586_v45 }
  0x94   : > { %v481_v52 = vpop.permute.xlu0 %480 }
  0x95   : > { %v483_v51 = vpop.permute.xlu1 %482  ;;  %1219 = vmatpush1.bf16.msk.msra.mxu1 %vm1515_vm2, %v470_v40  ;;  %v489_v55 = vsel %vm484_vm3, 0, %v481_v52 }
  0x96   : > { %v485_v54 = vsel %vm484_vm3, %v481_v52, %v483_v51  ;;  %733 = vmatprep.subr.bf16.mxu1 %v587_v50  ;;  %v505_v59 = vmul.bf16 %v1524_v53, %v489_v55 }
  0x97   : > { %v506_v56 = vmul.bf16 %v1519_v49, %v485_v54 }
  0x98   : > { %v593_v58 = vpop.permute.xlu0 %592 }
  0x99   : > { %v595_v57 = vpop.permute.xlu1 %594  ;;  %1221 = vmatpush1.bf16.msk.msra.mxu1 %vm1515_vm2, %v584_v46  ;;  %v599_v61 = vsel %vm484_vm3, 0, %v593_v58 }
  0x9a   : > { %v596_v60 = vsel %vm484_vm3, %v593_v58, %v595_v57  ;;  %735 = vmatprep.subr.bf16.mxu1 %v506_v56  ;;  %v601_v1 = vmul.bf16 %v599_v61, %v1524_v53  ;;  %v1296_v57 = vld [vmem:[%s1719_s4 + $0x8] ss:$12 sps:$4 sm:$0xff]   ;;  %v1293_v61 = vld [vmem:[%s1719_s4] ss:$12 sps:$4 sm:$0xff]  }
  0x9b   : > { %v602_v62 = vmul.bf16 %v596_v60, %v1519_v49 }
  0x9c   : > { %v508_v0 = vpop.permute.xlu0 %507 }
  0x9d   : > { %v510_v63 = vpop.permute.xlu1 %509  ;;  %736 = vmatpush1.bf16.msra.mxu1 %v505_v59  ;;  %v516_v5 = vsel %vm511_vm4, 0, %v508_v0 }
  0x9e   : > { %v512_v4 = vsel %vm511_vm4, %v508_v0, %v510_v63  ;;  %737 = vmatprep.subr.bf16.mxu1 %v602_v62  ;;  %v518_v12 = vmul.bf16 %v516_v5, %v1503_v28 }
  0x9f   : > { %v519_v8 = vmul.bf16 %v512_v4, %v1501_v27 }
  0xa0   : > { %v604_v11 = vpop.permute.xlu0 %603 }
  0xa1   : > { %v606_v10 = vpop.permute.xlu1 %605  ;;  %738 = vmatpush1.bf16.msra.mxu1 %v601_v1  ;;  %v610_v14 = vsel %vm511_vm4, 0, %v604_v11 }
  0xa2   : > { %v607_v13 = vsel %vm511_vm4, %v604_v11, %v606_v10  ;;  %739 = vmatprep.subr.bf16.mxu1 %v519_v8  ;;  %v612_v18 = vmul.bf16 %v610_v14, %v1503_v28 }
  0xa3   : > { %v613_v15 = vmul.bf16 %v607_v13, %v1501_v27 }
  0xa4   : > { %v523_v17 = vpop.permute.xlu0 %522 }
  0xa5   : > { %v521_v16 = vpop.permute.xlu1 %520  ;;  %740 = vmatpush1.bf16.msra.mxu1 %v518_v12  ;;  %v529_v23 = vsel %vm524_vm5, %v523_v17, 0 }
  0xa6   : > { %741 = vmatprep.subr.bf16.mxu1 %v613_v15  ;;  %v525_v24 = vsel %vm524_vm5, %v521_v16, %v523_v17  ;;  %v532_v25 = vmul.bf16 %v529_v23, %v1519_v49  ;;  %v835_v23 = vld [vmem:[%s1724_s9] sm:$0xff] }
  0xa8   : > { %v617_v20 = vpop.permute.xlu0 %616 }
  0xa9   : > { %v615_v19 = vpop.permute.xlu1 %614  ;;  %742 = vmatpush1.bf16.msra.mxu1 %v612_v18  ;;  %v621_v30 = vsel %vm524_vm5, %v617_v20, 0 }
  0xaa   : > { %743 = vmatprep.subr.bf16.mxu1 %v1424_v7  ;;  %v531_v7 = vmul.bf16 %v525_v24, %v1524_v53  ;;  %v618_v31 = vsel %vm524_vm5, %v615_v19, %v617_v20  ;;  %v833_v24 = vld [vmem:[%s1723_s8] sm:$0xff] }
  0xac   : > { %v536_v22 = vpop.permute.xlu0 %535 }
  0xad   : > { %v534_v21 = vpop.permute.xlu1 %533  ;;  %744 = vmatpush1.bf16.msra.mxu1 %v1416_v3  ;;  %v624_v3 = vmul.bf16 %v621_v30, %v1519_v49  ;;  %v542_v33 = vsel %vm537_vm6, %v536_v22, 0 }
  0xae   : > { %745 = vmatprep.subr.bf16.mxu1 %v1422_v6  ;;  %v538_v36 = vsel %vm537_vm6, %v534_v21, %v536_v22  ;;  %v545_v37 = vmul.bf16 %v542_v33, %v1501_v27  ;;  %v834_v22 = vld [vmem:[%s1723_s8 + $0x8] sm:$0xff] }
  0xaf   : > { %v544_v43 = vmul.bf16 %v538_v36, %v1503_v28 }
  0xb0   : > { %v628_v29 = vpop.permute.xlu0 %627 }
  0xb1   : > { %v626_v26 = vpop.permute.xlu1 %625  ;;  %746 = vmatpush1.bf16.msra.mxu1 %v1414_v2  ;;  %v623_v2 = vmul.bf16 %v618_v31, %v1524_v53  ;;  %v632_v40 = vsel %vm537_vm6, %v628_v29, 0 }
  0xb2   : > { %747 = vmatprep.subr.bf16.mxu1 %v532_v25  ;;  %v629_v44 = vsel %vm537_vm6, %v626_v26, %v628_v29  ;;  %v635_v45 = vmul.bf16 %v632_v40, %v1501_v27  ;;  %v836_v25 = vld [vmem:[%s1724_s9 + $0x8] sm:$0xff]  ;;  %v898_v40 = vld [vmem:[%s394_s19] sm:$0xff] }
  0xb3   : > { %v634_v52 = vmul.bf16 %v629_v44, %v1503_v28  ;;  %v1297_v26 = vld [vmem:[%s1719_s4 + $0x1c] ss:$12 sps:$4 sm:$0xff]  }
  0xb4   : > { %v560_v32 = vpop.permute.xlu0 %559 }
  0xb5   : > { %v547_v6 = vpop.permute.xlu1 %546  ;;  %748 = vmatpush1.bf16.msra.mxu1 %v531_v7  ;;  %v566_v34 = vsel %vm561_vm7, %v560_v32, 0 }
  0xb6   : > { %749 = vmatprep.subr.bf16.mxu1 %v624_v3  ;;  %v569_v35 = vmul.bf16 %v566_v34, %v1519_v49 }
  0xb8   : > { %v549_v39 = vpop.permute.xlu0 %548  ;;  %780 = vmatprep.subr.bf16.mxu0 %v569_v35 }
  0xb9   : > { %v558_v38 = vpop.permute.xlu1 %557  ;;  %750 = vmatpush1.bf16.msra.mxu1 %v623_v2  ;;  %v551_v58 = vsel %vm550_vm8, %v547_v6, %v549_v39 }
  0xba   : > { %v562_v41 = vsel %vm561_vm7, %v558_v38, %v560_v32  ;;  %751 = vmatprep.subr.bf16.mxu1 %v545_v37 }
  0xbb   : > { %v568_v42 = vmul.bf16 %v562_v41, %v1524_v53  ;;  %v899_v41 = vld [vmem:[%s394_s19 + $0x8] sm:$0xff] }
  0xbc   : > { %v648_v47 = vpop.permute.xlu0 %647 }
  0xbd   : > { %v637_v46 = vpop.permute.xlu1 %636  ;;  %781 = vmatpush1.bf16.msra.mxu0 %v568_v42  ;;  %752 = vmatpush1.bf16.msra.mxu1 %v544_v43  ;;  %v652_v50 = vsel %vm561_vm7, %v648_v47, 0 }
  0xbe   : > { %753 = vmatprep.subr.bf16.mxu1 %v635_v45  ;;  %v655_v51 = vmul.bf16 %v652_v50, %v1519_v49 }
  0xc0   : > { %782 = vmatprep.subr.bf16.mxu0 %v655_v51  ;;  %v639_v59 = vpop.permute.xlu0 %638 }
  0xc1   : > { %v646_v54 = vpop.permute.xlu1 %645  ;;  %754 = vmatpush1.bf16.msra.mxu1 %v634_v52  ;;  %v640_v60 = vsel %vm550_vm8, %v637_v46, %v639_v59 }
  0xc2   : > { %v649_v55 = vsel %vm561_vm7, %v646_v54, %v648_v47  ;;  %1222 = vmatprep.subr.msk.bf16.mxu1 %vm550_vm8, %v549_v39  ;;  %v1299_v39 = vld [vmem:[%s1719_s4 + $0x18] ss:$12 sps:$4 sm:$0xff]  }
  0xc3   : > { %v654_v56 = vmul.bf16 %v649_v55, %v1524_v53 }
  0xc5   : > { %783 = vmatpush1.bf16.msra.mxu0 %v654_v56  ;;  %756 = vmatpush1.bf16.msra.mxu1 %v551_v58 }
  0xc6   : > { %1223 = vmatprep.subr.msk.bf16.mxu1 %vm550_vm8, %v639_v59 }
  0xc8   : > { %1224 = vmatmul.mubr.msk.bf16.vlgmr.msra.gmra.mrb[0].mxu0 %vm720_vm9, %v1296_v57 }
  0xc9   : > { %822 = vmatprep.mubr.bf16.mxu0 %v1340_v9  ;;  %758 = vmatpush1.bf16.msra.mxu1 %v640_v60 }
  0xcc   : > { %760 = vmatmul.mubr.bf16.vlgmr.msra.gmra.mrb[0].mxu1 %v1293_v61 }
  0xcd   : > { %769 = vmatprep.mubr.bf16.mxu1 %v1297_v26 }
  0xd1   : > { %v673_v1 = vpop.permute.xlu0 %672 }
  0xd2   : > { %v678_v8 = vpop.permute.xlu1 %677 }
  0xd4   : > { %770 = vmatmul.mubr.bf16.gmra.mrb[4].mxu1 %v1299_v39 }
 0x19b   : > { %v814_v62 = vpop.f32.mrb[0].mxu0 }
 0x19c   : > { %v816_v63 = vpop.f32.mrb[1].mxu0 }
 0x19d   : > { %v818_v0 = vpop.f32.mrb[2].mxu0 }
 0x19e   : > { %v820_v4 = vpop.f32.mrb[3].mxu0 }
 0x19f   : > { %v761_v5 = vpop.f32.mrb[0].mxu1 }
 0x1a0   : > { %v762_v10 = vadd.f32 %v761_v5, %v673_v1  ;;  %v763_v11 = vpop.f32.mrb[1].mxu1 }
 0x1a1   : > { %v764_v12 = vadd.f32 %v763_v11, %v673_v1  ;;  %v765_v13 = vpop.f32.mrb[2].mxu1 }
 0x1a2   : > { %v766_v14 = vadd.f32 %v765_v13, %v678_v8  ;;  %v767_v15 = vpop.f32.mrb[3].mxu1  ;;  %v815_v16 = vadd.f32 %v814_v62, %v762_v10 }
 0x1a3   : > { %v817_v17 = vadd.f32 %v816_v63, %v764_v12  ;;  %v768_v18 = vadd.f32 %v767_v15, %v678_v8 }
 0x1a4   : > { %v819_v19 = vadd.f32 %v818_v0, %v766_v14 }
 0x1a5   : > { %v821_v9 = vadd.f32 %v820_v4, %v768_v18  ;;  %v837_v20 = vadd.f32 %v817_v17, %v815_v16 }
 0x1a7   : > { %838 = vadd.xlane.f32.xlu1 %v837_v20  ;;  %v840_v21 = vadd.f32 %v821_v9, %v819_v19 }
 0x1a9   : > { %841 = vadd.xlane.f32.xlu0 %v840_v21 }
 0x1b8   : > { %877 = vperm.xlu1 %1289, %v834_v22  }
 0x1bc   : > { %886 = vperm.xlu1 %1289, %v835_v23  }
 0x1bf   : > { %872 = vperm.xlu0 %1288, %v833_v24  }
 0x1c3   : > { %891 = vperm.xlu0 %1288, %v836_v25  }
 0x234   : > { %v839_v29 = vpop.xlane.xlu1 %838 }
 0x235   : > { %v844_v30 = vmul.f32 0.00390625, %v839_v29 }
 0x236   : > { %v842_v7 = vpop.xlane.xlu0 %841 }
 0x237   : > { %v846_v31 = vsub.f32 %v815_v16, %v844_v30  ;;  %v847_v3 = vsub.f32 %v817_v17, %v844_v30  ;;  %v845_v6 = vmul.f32 0.00390625, %v842_v7 }
 0x238   : > { %v878_v43 = vpop.permute.xlu1 %877 }
 0x239   : > { %v848_v32 = vsub.f32 %v819_v19, %v845_v6  ;;  %v849_v33 = vsub.f32 %v821_v9, %v845_v6  ;;  %v850_v34 = vmul.f32 %v846_v31, %v846_v31  ;;  %v851_v35 = vmul.f32 %v847_v3, %v847_v3 }
 0x23b   : > { %v854_v2 = vadd.f32 %v851_v35, %v850_v34  ;;  %v852_v36 = vmul.f32 %v848_v32, %v848_v32  ;;  %v853_v37 = vmul.f32 %v849_v33, %v849_v33 }
 0x23c   : > { %v887_v45 = vpop.permute.xlu1 %886 }
 0x23d   : > { %855 = vadd.xlane.f32.xlu0 %v854_v2  ;;  %v857_v38 = vadd.f32 %v853_v37, %v852_v36  ;;  %v1300_v2 = vld [vmem:[%s1719_s4 + $0x20] ss:$12 sps:$4 sm:$0xff]   ;;  %v1648_v37 = vpop.f32.mrb[4].mxu1 }
 0x23e   : > { %v873_v42 = vpop.permute.xlu0 %872  ;;  %1225 = vmatmul.mubr.msk.bf16.gmra.mrb[4].mxu0 %vm720_vm9, %v1300_v2  ;;  %v1303_v36 = vld [vmem:[%s1721_s6 + $0x4] ss:$8 sps:$4 sm:$0xff]   ;;  %v1655_v39 = vpop.f32.mrb[5].mxu1 }
 0x23f   : > { %858 = vadd.xlane.f32.xlu1 %v857_v38  ;;  %1235 = vmatprep.mubr.msk.bf16.mxu0 %vm473_vm1, %v1303_v36  ;;  %v668_v38 = vld [vmem:[%s1720_s5 + $0x10] sm:$0xff] }
 0x242   : > { %v892_v44 = vpop.permute.xlu0 %891 }
 0x250   : > { %902 = vperm.xlu1 %1289, %v898_v40   ;;  %v669_v40 = vld [vmem:[%s1720_s5 + $0x18] sm:$0xff] }
 0x253   : > { %907 = vperm.xlu0 %1288, %v899_v41   ;;  %v1660_v41 = vpop.f32.mrb[6].mxu1 }
 0x2ca   : > { %v856_v46 = vpop.xlane.xlu0 %855 }
 0x2cb   : > { %v860_v47 = vmul.f32 0.00390625, %v856_v46 }
 0x2cc   : > { %v859_v50 = vpop.xlane.xlu1 %858 }
 0x2cd   : > { %v862_v51 = vadd.f32 1e-06, %v860_v47  ;;  %v861_v52 = vmul.f32 0.00390625, %v859_v50 }
 0x2cf   : > { %1304 = vrsqrt.f32 %v862_v51  ;;  %v863_v54 = vadd.f32 1e-06, %v861_v52 }
 0x2d0   : > { %v903_v5 = vpop.permute.xlu1 %902 }
 0x2d1   : > { %1306 = vrsqrt.f32 %v863_v54 }
 0x2d2   : > { %v908_v13 = vpop.permute.xlu0 %907 }
 0x2d9   : > { %v1305_v55 = vpop.eup %1304 }
 0x2da   : > { %v866_v56 = vmul.f32 %v1305_v55, %v846_v31  ;;  %v867_v57 = vmul.f32 %v1305_v55, %v847_v3 }
 0x2db   : > { %v1307_v58 = vpop.eup %1306 }
 0x2dc   : > { %v880_v59 = vmul.f32 %v873_v42, %v866_v56  ;;  %v881_v60 = vmul.f32 %v873_v42, %v867_v57  ;;  %v868_v61 = vmul.f32 %v1307_v58, %v848_v32  ;;  %v869_v62 = vmul.f32 %v1307_v58, %v849_v33  ;;  %v1662_v42 = vpop.f32.mrb[7].mxu1 }
 0x2de   : > { %v894_v63 = vadd.f32 %v887_v45, %v880_v59  ;;  %v895_v0 = vadd.f32 %v887_v45, %v881_v60  ;;  %v882_v1 = vmul.f32 %v878_v43, %v868_v61  ;;  %v883_v4 = vmul.f32 %v878_v43, %v869_v62  ;;  %v1032_v43 = vld [vmem:[%s1722_s7] sm:$0xff] }
 0x2e0   : > { %v910_v8 = vadd.f32 %v903_v5, %v894_v63  ;;  %v911_v10 = vadd.f32 %v903_v5, %v895_v0  ;;  %v896_v11 = vadd.f32 %v892_v44, %v882_v1  ;;  %v897_v12 = vadd.f32 %v892_v44, %v883_v4  ;;  %v1033_v44 = vld [vmem:[%s1722_s7 + $0x8] sm:$0xff] }
 0x2e2   : > { %v1226_v14 = vmul.f32 -1.442695, %v910_v8  ;;  %v1227_v15 = vmul.f32 -1.442695, %v911_v10  ;;  %v912_v16 = vadd.f32 %v908_v13, %v896_v11  ;;  %v913_v17 = vadd.f32 %v908_v13, %v897_v12 }
 0x2e4   : > { %1308 = vpow2.f32 %v1226_v14  ;;  %v1228_v18 = vmul.f32 -1.442695, %v912_v16  ;;  %v1229_v19 = vmul.f32 -1.442695, %v913_v17 }
 0x2e5   : > { %1310 = vpow2.f32 %v1227_v15 }
 0x2e6   : > { %1312 = vpow2.f32 %v1228_v18 }
 0x2e7   : > { %1314 = vpow2.f32 %v1229_v19 }
 0x2ee   : > { %v1309_v9 = vpop.eup %1308 }
 0x2ef   : > { %v1311_v20 = vpop.eup %1310  ;;  %v926_v21 = vadd.f32 1.0, %v1309_v9 }
 0x2f0   : > { %v1313_v22 = vpop.eup %1312  ;;  %v927_v23 = vadd.f32 1.0, %v1311_v20 }
 0x2f1   : > { %v1315_v24 = vpop.eup %1314  ;;  %1316 = vrcp.f32 %v926_v21  ;;  %v928_v25 = vadd.f32 1.0, %v1313_v22 }
 0x2f2   : > { %1318 = vrcp.f32 %v927_v23  ;;  %v929_v26 = vadd.f32 1.0, %v1315_v24 }
 0x2f3   : > { %1320 = vrcp.f32 %v928_v25 }
 0x2f4   : > { %1322 = vrcp.f32 %v929_v26 }
 0x2fb   : > { %v1317_v29 = vpop.eup %1316 }
 0x2fc   : > { %v1319_v30 = vpop.eup %1318  ;;  %v938_v3 = vmul.f32 %v1317_v29, %v910_v8 }
 0x2fd   : > { %v1321_v7 = vpop.eup %1320  ;;  %v939_v32 = vmul.f32 %v1319_v30, %v911_v10 }
 0x2fe   : > { %v1323_v31 = vpop.eup %1322  ;;  %v940_v6 = vmul.f32 %v1321_v7, %v912_v16 }
 0x2ff   : > { %v941_v33 = vmul.f32 %v1323_v31, %v913_v17 }
 0x300   : > { %v1606_v34 = vpack.c.bf16 %v940_v6, %v938_v3 }
 0x301   : > { %v1608_v35 = vpack.c.bf16 %v941_v33, %v939_v32 }
 0x302   : > { %946 = vrot.lane.b32.xlu1 %v1606_v34, %s1332_s23 }
 0x303   : > { %948 = vrot.lane.b32.xlu0 %v1608_v35, %s1332_s23 }
 0x306   : > { %957 = vrot.lane.b32.xlu1 %v1606_v34, %s1333_s24 }
 0x307   : > { %959 = vrot.lane.b32.xlu0 %v1608_v35, %s1333_s24 }
 0x30a   : > { %966 = vrot.lane.b32.xlu1 %v1606_v34, %s1334_s25 }
 0x30b   : > { %968 = vrot.lane.b32.xlu0 %v1608_v35, %s1334_s25 }
 0x30e   : > { %977 = vrot.lane.b32.xlu1 %v1606_v34, %s1335_s26 }
 0x30f   : > { %979 = vrot.lane.b32.xlu0 %v1608_v35, %s1335_s26 }
 0x312   : > { %990 = vrot.lane.b32.xlu1 %v1608_v35, %s1336_s27 }
 0x313   : > { %988 = vrot.lane.b32.xlu0 %v1606_v34, %s1336_s27 }
 0x316   : > { %1001 = vrot.lane.b32.xlu1 %v1608_v35, %s1337_s28 }
 0x317   : > { %999 = vrot.lane.b32.xlu0 %v1606_v34, %s1337_s28 }
 0x31a   : > { %1010 = vrot.lane.b32.xlu1 %v1606_v34, %s1338_s29 }
 0x31b   : > { %1012 = vrot.lane.b32.xlu0 %v1608_v35, %s1338_s29 }
 0x31e   : > { %1021 = vrot.lane.b32.xlu1 %v1608_v35, %s1339_s30 }
 0x31f   : > { %1019 = vrot.lane.b32.xlu0 %v1606_v34, %s1339_s30 }
 0x322   : > { %682 = vperm.xlu1 %1289, %v668_v38  }
 0x323   : > { %687 = vperm.xlu0 %1288, %v669_v40  }
 0x326   : > { %1036 = vperm.xlu1 %1289, %v1032_v43  }
 0x327   : > { %1041 = vperm.xlu0 %1288, %v1033_v44  }
 0x374   : > { %v947_v45 = vpop.permute.xlu1 %946 }
 0x375   : > { %v949_v46 = vpop.permute.xlu0 %948  ;;  %v953_v47 = vsel %vm422_vm0, 0, %v947_v45 }
 0x376   : > { %v950_v50 = vsel %vm422_vm0, %v947_v45, %v949_v46  ;;  %v955_v51 = vmul.bf16 %v953_v47, %v1503_v28 }
 0x377   : > { %v956_v52 = vmul.bf16 %v950_v50, %v1501_v27 }
 0x378   : > { %v958_v54 = vpop.permute.xlu1 %957 }
 0x379   : > { %v960_v55 = vpop.permute.xlu0 %959  ;;  %1056 = vmatprep.subr.bf16.mxu0 %v956_v52 }
 0x37a   : > { %1057 = vmatpush1.bf16.msra.mxu0 %v955_v51  ;;  %v961_v56 = vsel %vm473_vm1, %v958_v54, %v960_v55 }
 0x37b   : > { %1058 = vmatprep.subr.bf16.mxu0 %v961_v56 }
 0x37c   : > { %v967_v57 = vpop.permute.xlu1 %966 }
 0x37d   : > { %v969_v58 = vpop.permute.xlu0 %968  ;;  %v973_v59 = vsel %vm484_vm3, 0, %v967_v57 }
 0x37e   : > { %v970_v60 = vsel %vm484_vm3, %v967_v57, %v969_v58  ;;  %v975_v61 = vmul.bf16 %v973_v59, %v1524_v53  ;;  %1233 = vmatpush1.bf16.msk.msra.mxu0 %vm1515_vm2, %v958_v54 }
 0x37f   : > { %v976_v62 = vmul.bf16 %v970_v60, %v1519_v49 }
 0x380   : > { %v978_v63 = vpop.permute.xlu1 %977 }
 0x381   : > { %v980_v0 = vpop.permute.xlu0 %979  ;;  %1060 = vmatprep.subr.bf16.mxu0 %v976_v62  ;;  %v984_v1 = vsel %vm511_vm4, 0, %v978_v63 }
 0x382   : > { %v981_v4 = vsel %vm511_vm4, %v978_v63, %v980_v0  ;;  %v986_v5 = vmul.bf16 %v984_v1, %v1503_v28  ;;  %1061 = vmatpush1.bf16.msra.mxu0 %v975_v61 }
 0x383   : > { %v987_v8 = vmul.bf16 %v981_v4, %v1501_v27 }
 0x384   : > { %v991_v10 = vpop.permute.xlu1 %990 }
 0x385   : > { %v989_v11 = vpop.permute.xlu0 %988  ;;  %1062 = vmatprep.subr.bf16.mxu0 %v987_v8  ;;  %v995_v48 = vsel %vm524_vm5, %v991_v10, 0 }
 0x386   : > { %1063 = vmatpush1.bf16.msra.mxu0 %v986_v5  ;;  %v992_v13 = vsel %vm524_vm5, %v989_v11, %v991_v10  ;;  %v998_v14 = vmul.bf16 %v995_v48, %v1519_v49 }
 0x387   : > { %1064 = vmatprep.subr.bf16.mxu0 %v1608_v35  ;;  %v997_v17 = vmul.bf16 %v992_v13, %v1524_v53 }
 0x388   : > { %v1002_v12 = vpop.permute.xlu1 %1001 }
 0x389   : > { %v1000_v15 = vpop.permute.xlu0 %999  ;;  %v1006_v16 = vsel %vm537_vm6, %v1002_v12, 0 }
 0x38a   : > { %1065 = vmatpush1.bf16.msra.mxu0 %v1606_v34  ;;  %v1003_v19 = vsel %vm537_vm6, %v1000_v15, %v1002_v12  ;;  %v1009_v9 = vmul.bf16 %v1006_v16, %v1501_v27 }
 0x38b   : > { %1066 = vmatprep.subr.bf16.mxu0 %v998_v14  ;;  %v1008_v21 = vmul.bf16 %v1003_v19, %v1503_v28  ;;  %v1301_v28 = vld [vmem:[%s1721_s6] ss:$8 sps:$4 sm:$0xff]  }
 0x38c   : > { %v1011_v18 = vpop.permute.xlu1 %1010 }
 0x38d   : > { %v1013_v20 = vpop.permute.xlu0 %1012 }
 0x38e   : > { %1067 = vmatpush1.bf16.msra.mxu0 %v997_v17  ;;  %v1014_v25 = vsel %vm550_vm8, %v1011_v18, %v1013_v20 }
 0x38f   : > { %1068 = vmatprep.subr.bf16.mxu0 %v1009_v9 }
 0x390   : > { %v1022_v22 = vpop.permute.xlu1 %1021 }
 0x391   : > { %v1020_v23 = vpop.permute.xlu0 %1019  ;;  %v1026_v24 = vsel %vm561_vm7, %v1022_v22, 0 }
 0x392   : > { %1069 = vmatpush1.bf16.msra.mxu0 %v1008_v21  ;;  %v1023_v26 = vsel %vm561_vm7, %v1020_v23, %v1022_v22  ;;  %v1029_v29 = vmul.bf16 %v1026_v24, %v1519_v49 }
 0x393   : > { %1234 = vmatprep.subr.msk.bf16.mxu0 %vm550_vm8, %v1013_v20  ;;  %v1028_v27 = vmul.bf16 %v1023_v26, %v1524_v53 }
 0x396   : > { %1071 = vmatpush1.bf16.msra.mxu0 %v1014_v25 }
 0x397   : > { %1072 = vmatprep.subr.bf16.mxu0 %v1029_v29 }
 0x39a   : > { %1073 = vmatpush1.bf16.msra.mxu0 %v1028_v27 }
 0x39d   : > { %1089 = vmatmul.mubr.bf16.vlgmr.msra.gmra.mrb[4].mxu0 %v1301_v28 }
 0x3a1   : > { %v683_v30 = vpop.permute.xlu1 %682 }
 0x3a2   : > { %v688_v7 = vpop.permute.xlu0 %687  ;;  %v772_v3 = vadd.f32 %v1648_v37, %v683_v30  ;;  %v774_v6 = vadd.f32 %v1655_v39, %v683_v30 }
 0x3a3   : > { %v776_v49 = vadd.f32 %v1660_v41, %v688_v7  ;;  %v778_v53 = vadd.f32 %v1662_v42, %v688_v7 }
 0x3a5   : > { %v1037_v31 = vpop.permute.xlu1 %1036 }
 0x3a6   : > { %v1042_v32 = vpop.permute.xlu0 %1041  ;;  %v1255_v33 = vadd.f32 %v1037_v31, %v772_v3  ;;  %v1258_v34 = vadd.f32 %v1037_v31, %v774_v6 }
 0x3a7   : > { %v1261_v2 = vadd.f32 %v1042_v32, %v776_v49  ;;  %v1264_v40 = vadd.f32 %v1042_v32, %v778_v53 }
 0x470   : > { %v1090_v35 = vpop.f32.mrb[4].mxu0 }
 0x471   : > { %v1256_v36 = vadd.f32 %v1255_v33, %v1090_v35  ;;  %v1092_v38 = vpop.f32.mrb[5].mxu0 }
 0x472   : > { %v1259_v43 = vadd.f32 %v1258_v34, %v1092_v38  ;;  %v1094_v44 = vpop.f32.mrb[6].mxu0 }
 0x473   : > { %v1262_v37 = vadd.f32 %v1261_v2, %v1094_v44  ;;  %v1096_v39 = vpop.f32.mrb[7].mxu0 }
 0x474   : > { %v1244_v45 = vpack.c.bf16 %v1259_v43, %v1256_v36  ;;  %v1265_v46 = vadd.f32 %v1264_v40, %v1096_v39 }
 0x476   : > { %1115 = vst [vmem:[%s399_s18] sm:$0xff] %v1244_v45  ;;  %v1245_v41 = vpack.c.bf16 %v1265_v46, %v1262_v37 }
 0x478   : > { %1116 = vst [vmem:[%s399_s18 + $0x8] sm:$0xff] %v1245_v41 }
 0x479 PF: > { %s20_s13 = sadd.s32 1, %s1330_s13  }
 0x47a   : > { %p17_p4 = scmp.ge.s32.totalorder %s20_s13, 4  }
 0x47c   :  { %19 = sbr.rel (!%p17_p4) target bundleno = 1 (0x1), region = 96 }

// kernel: forward.3
= control target key start
LH: loop header
LB: loop body
LE: loop exit
PB: predicated region body
PF: predicated region fallthrough
CT: control target
= control target key end

     0   :  { %s1535_s17 = smov 0   ;;  %s1878_s0 = inlined_call_operand.vmem [shape: f32[2,16,64], index: 0, kind: input, shape index: {}]   ;;  %s1879_s1 = inlined_call_operand.vmem [shape: f32[2,16,256], index: 1, kind: input, shape index: {}]   ;;  %s1880_s2 = inlined_call_operand.vmem [shape: f32[2,16,1], index: 2, kind: input, shape index: {}]   ;;  %s1881_s3 = inlined_call_operand.vmem [shape: bf16[2,256], index: 3, kind: input, shape index: {}]   ;;  %s1882_s4 = inlined_call_operand.vmem [shape: bf16[64,256], index: 4, kind: input, shape index: {}]   ;;  %s1883_s5 = inlined_call_operand.vmem [shape: bf16[32,288], index: 5, kind: input, shape index: {}]   ;;  %s1884_s6 = inlined_call_operand.vmem [shape: f32[32,1], index: 6, kind: input, shape index: {}]   ;;  %s1885_s7 = inlined_call_operand.vmem [shape: bf16[16,144], index: 7, kind: input, shape index: {}]   ;;  %s1886_s8 = inlined_call_operand.vmem [shape: f32[16,1], index: 8, kind: input, shape index: {}]   ;;  %s1887_s9 = inlined_call_operand.vmem [shape: f32[16,1], index: 9, kind: input, shape index: {}]   ;;  %s1888_s10 = inlined_call_operand.vmem [shape: f32[16,1], index: 10, kind: input, shape index: {}]   ;;  %s1889_s11 = inlined_call_operand.vmem [shape: bf16[2,16,256], index: 11, kind: output, shape index: {}]  }
   0x1 LB: > { %s1313_s18 = sadd.s32 4294967295, %s1463_s17   ;;  %p1317_p0 = scmp.ge.s32.totalorder %s1463_s17, 1  ;;  %s1463_s17 = sphi %s1535_s17, %s21_s17  }
   0x2   : > { %p357_p1 = scmp.lt.s32.totalorder %s1463_s17, 3 }
   0x4   : > { %p358_p2 = pnand %p1317_p0, %p357_p1 }
   0x5   : > { %v1414_v0 = vld [vmem:[%s1882_s4 + $0x4] ss:$8 sps:$4 sm:$0xff] (!%p358_p2)   ;;  %p407_p3 = scmp.lt.s32.totalorder (!%p358_p2), %s1313_s18, 1  ;;  %v1416_v1 = vld [vmem:[%s1882_s4] ss:$8 sps:$4 sm:$0xff] (!%p358_p2)   ;;  %v1465_v2 = vmov (!%p358_p2), 0   ;;  %v561_v29 = vlaneseq (!%p358_p2) }
   0x6   : > { %361 = sbr.rel (%p358_p2) target bundleno = 1366 (0x556), region = 64  ;;  %522 = vmatprep.mubr.bf16.mxu1 (!%p358_p2), %v1465_v2  ;;  %1412 = vset.pattern.permute.xlu0 (!%p358_p2), %v1465_v2  ;;  %v1417_v3 = vld [vmem:[%s1882_s4 + $0x14] ss:$8 sps:$4 sm:$0xff] (!%p358_p2)   ;;  %v1419_v4 = vld [vmem:[%s1882_s4 + $0x10] ss:$8 sps:$4 sm:$0xff] (!%p358_p2)   ;;  %s1466_s23 = smov (!%p358_p2), 17  }
   0x7   : > { %490 = vmatprep.subr.bf16.mxu1 (!%p358_p2), %v1414_v0  ;;  %1413 = vset.pattern.permute.xlu1 (!%p358_p2), %v1465_v2  ;;  %v1420_v5 = vld [vmem:[%s1882_s4 + $0x24] ss:$8 sps:$4 sm:$0xff] (!%p358_p2)   ;;  %v1422_v6 = vld [vmem:[%s1882_s4 + $0x20] ss:$8 sps:$4 sm:$0xff] (!%p358_p2)   ;;  %v1423_v7 = vld [vmem:[%s1882_s4 + $0x34] ss:$8 sps:$4 sm:$0xff] (!%p358_p2)  }
   0x8   : > { %491 = vmatpush1.bf16.msra.mxu1 (!%p358_p2), %v1416_v1  ;;  %v1425_v14 = vld [vmem:[%s1882_s4 + $0x30] ss:$8 sps:$4 sm:$0xff] (!%p358_p2)   ;;  %vm486_vm0 = vcmask (!%p358_p2), 523264   ;;  %s1467_s26 = smov (!%p358_p2), 16   ;;  %s1468_s27 = smov (!%p358_p2), 15   ;;  %v784_v25 = vld [vmem:[%s1884_s6 + $0x8] sm:$0xff] (!%p358_p2) }
   0x9   : > { %492 = vmatprep.subr.bf16.mxu1 (!%p358_p2), %v1417_v3  ;;  %s1469_s28 = smov (!%p358_p2), 1   ;;  %s1471_s12 = smov (!%p358_p2), 113   ;;  %v1428_v24 = vld [vmem:[%s1883_s5 + $0x4] ss:$12 sps:$4 sm:$0xff] (!%p358_p2)   ;;  %v1474_v27 = vmov (!%p358_p2), 1966171168  }
   0xa   : > { %s1472_s13 = smov (!%p358_p2), 112   ;;  %876 = vmatprep.mubr.bf16.mxu0 (!%p358_p2), %v1428_v24  ;;  %v783_v26 = vld [vmem:[%s1884_s6] sm:$0xff] (!%p358_p2)  ;;  %v559_v28 = vunpack.c.l.s4 (!%p358_p2), %v1474_v27  ;;  %v562_v31 = vshrl.u32 (!%p358_p2), %v561_v29, 7  ;;  %vm541_vm1 = vcmask (!%p358_p2), 138240   ;;  %vm592_vm2 = vcmask (!%p358_p2), 130048  }
   0xb   : > { %v1335_v32 = vld.sshfl [vmem:[%s1881_s3] sm:$0x11 pattern:$0x75316420] (!%p358_p2)  ;;  %vm603_vm3 = vcmask (!%p358_p2), 121856   ;;  %vm1678_vm4 = vmneg (!%p358_p2), %vm592_vm2  ;;  %vm630_vm5 = vcmask (!%p358_p2), 7168  }
   0xc   : > { %493 = vmatpush1.bf16.msra.mxu1 (!%p358_p2), %v1419_v4  ;;  %v560_v30 = vunpack.c.0.s8 (!%p358_p2), %v559_v28  ;;  %v557_v34 = vcombine.high (!%p358_p2), %v1335_v32, %v1335_v32  ;;  %v577_v41 = vsub.s32 (!%p358_p2), 0, %v562_v31  ;;  %vm643_vm6 = vcmask (!%p358_p2), 1039360  }
   0xd   : > { %s1896_s18 = smov (!%p407_p3, %s1313_s18), 1  ;;  %494 = vmatprep.subr.bf16.mxu1 %v1420_v5  ;;  %vm656_vm7 = vcmask 924672   ;;  %vm680_vm8 = vcmask 908288   ;;  %vm669_vm9 = vcmask 916480   ;;  %vm837_vm10 = vcmask 261120  }
   0xe   : > { %s1365_s29 = sshll.u32 %s1896_s18, 5  ;;  %s1561_s30 = sshll.u32 %s1896_s18, 4  ;;  %v563_v35 = vsub.s32 %v560_v30, %v562_v31 }
   0xf   : > { %s416_s14 = scalar_lea.vmem %s1879_s1, %s1365_s29  ;;  %s411_s22 = scalar_lea.vmem %s1878_s0, %s1561_s30 }
  0x10   : > { %v432_v8 = vld [vmem:[%s416_s14] sm:$0xff]  ;;  %v433_v9 = vld [vmem:[%s416_s14 + $0x8] sm:$0xff]  ;;  %v434_v10 = vld [vmem:[%s416_s14 + $0x10] sm:$0xff]  ;;  %495 = vmatpush1.bf16.msra.mxu1 %v1422_v6  ;;  %s1470_s29 = smov 127   ;;  %v571_v36 = vrot.slane %v557_v34, %v563_v35  ;;  %v564_v37 = vrot.slane %v1335_v32, %v563_v35  ;;  %s426_s24 = scalar_lea.vmem %s1889_s11, %s1561_s30 }
  0x11   : > { %v435_v11 = vld [vmem:[%s416_s14 + $0x18] sm:$0xff]  ;;  %v1576_v12 = vpack.c.bf16 %v434_v10, %v432_v8  ;;  %v429_v15 = vld [vmem:[%s411_s22] sm:$0xff]  ;;  %v430_v16 = vld [vmem:[%s411_s22 + $0x8] sm:$0xff]  ;;  %496 = vmatprep.subr.bf16.mxu1 %v1423_v7  ;;  %s1890_s14 = smov 111   ;;  %s421_s22 = scalar_lea.vmem %s1880_s2, %s1561_s30 }
  0x12   : > { %v1578_v13 = vpack.c.bf16 %v435_v11, %v433_v9  ;;  %v431_v17 = vpack.c.bf16 %v430_v16, %v429_v15  ;;  %v580_v39 = vpack.i.b16 %v571_v36, %v571_v36  ;;  %v573_v40 = vpack.i.b16 %v564_v37, %v564_v37 }
  0x13   : > { %691 = vrot.lane.b32.xlu1 %v1576_v12, %s1466_s23  ;;  %v617_v56 = vshrl.u32 %v571_v36, 16  ;;  %v610_v59 = vshrl.u32 %v564_v37, 16 }
  0x14   : > { %497 = vmatpush1.bf16.msra.mxu1 %v1425_v14  ;;  %v1664_v44 = vrot.slane %v580_v39, %v577_v41  ;;  %v1666_v45 = vrot.slane %v573_v40, %v577_v41 }
  0x15   : > { %v618_v61 = vpack.i.b16 %v617_v56, %v617_v56  ;;  %v611_v1 = vpack.i.b16 %v610_v59, %v610_v59 }
  0x17   : > { %693 = vrot.lane.b32.xlu1 %v1578_v13, %s1466_s23  ;;  %1334 = vmatmul.mubr.msk.bf16.vlgmr.msra.gmra.mrb[0].mxu1 %vm486_vm0, %v431_v17  ;;  %v1683_v4 = vrot.slane %v618_v61, %v577_v41  ;;  %v1688_v8 = vrot.slane %v611_v1, %v577_v41 }
  0x18   : > { %929 = vmatprep.mubr.bf16.mxu1 %v1465_v2 }
  0x85   : > { %v692_v33 = vpop.permute.xlu1 %691 }
  0x86   : > { %v698_v53 = vsel %vm541_vm1, 0, %v692_v33 }
  0x87   : > { %v700_v58 = vmul.bf16 %v698_v53, %v1666_v45 }
  0x89   : > { %v694_v38 = vpop.permute.xlu1 %693 }
  0x8a   : > { %v695_v48 = vsel %vm541_vm1, %v692_v33, %v694_v38 }
  0x8b   : > { %v701_v54 = vmul.bf16 %v695_v48, %v1664_v44 }
  0xea   : > { %v524_v18 = vpop.f32.mrb[0].mxu1 }
  0xeb   : > { %v526_v19 = vpop.f32.mrb[1].mxu1 }
  0xec   : > { %v528_v20 = vpop.f32.mrb[2].mxu1 }
  0xed   : > { %v1588_v21 = vpack.c.bf16 %v528_v20, %v524_v18  ;;  %v530_v22 = vpop.f32.mrb[3].mxu1 }
  0xee   : > { %v1590_v23 = vpack.c.bf16 %v530_v22, %v526_v19 }
  0xef   : > { %537 = vrot.lane.b32.xlu0 %v1588_v21, %s1466_s23 }
  0xf0   : > { %590 = vrot.lane.b32.xlu1 %v1590_v23, %s1467_s26 }
  0xf3   : > { %539 = vrot.lane.b32.xlu0 %v1590_v23, %s1466_s23 }
  0xf4   : > { %704 = vrot.lane.b32.xlu1 %v1578_v13, %s1467_s26 }
  0xf7   : > { %588 = vrot.lane.b32.xlu0 %v1588_v21, %s1467_s26 }
  0xf8   : > { %601 = vrot.lane.b32.xlu1 %v1590_v23, %s1468_s27 }
  0xfb   : > { %702 = vrot.lane.b32.xlu0 %v1576_v12, %s1467_s26 }
  0xfc   : > { %713 = vrot.lane.b32.xlu1 %v1578_v13, %s1468_s27 }
  0xff   : > { %599 = vrot.lane.b32.xlu0 %v1588_v21, %s1468_s27 }
 0x100   : > { %628 = vrot.lane.b32.xlu1 %v1590_v23, %s1469_s28 }
 0x103   : > { %711 = vrot.lane.b32.xlu0 %v1576_v12, %s1468_s27 }
 0x104   : > { %724 = vrot.lane.b32.xlu1 %v1578_v13, %s1469_s28 }
 0x107   : > { %626 = vrot.lane.b32.xlu0 %v1588_v21, %s1469_s28 }
 0x108   : > { %639 = vrot.lane.b32.xlu1 %v1588_v21, %s1470_s29 }
 0x10b   : > { %722 = vrot.lane.b32.xlu0 %v1576_v12, %s1469_s28 }
 0x10c   : > { %733 = vrot.lane.b32.xlu1 %v1576_v12, %s1470_s29 }
 0x10f   : > { %735 = vrot.lane.b32.xlu0 %v1578_v13, %s1470_s29 }
 0x110   : > { %652 = vrot.lane.b32.xlu1 %v1588_v21, %s1471_s12 }
 0x113   : > { %641 = vrot.lane.b32.xlu0 %v1590_v23, %s1470_s29 }
 0x114   : > { %744 = vrot.lane.b32.xlu1 %v1576_v12, %s1471_s12 }
 0x117   : > { %746 = vrot.lane.b32.xlu0 %v1578_v13, %s1471_s12 }
 0x118   : > { %665 = vrot.lane.b32.xlu1 %v1588_v21, %s1472_s13 }
 0x11b   : > { %654 = vrot.lane.b32.xlu0 %v1590_v23, %s1471_s12 }
 0x11c   : > { %676 = vrot.lane.b32.xlu1 %v1588_v21, %s1890_s14 }
 0x11f   : > { %766 = vrot.lane.b32.xlu0 %v1578_v13, %s1890_s14 }
 0x120   : > { %755 = vrot.lane.b32.xlu1 %v1576_v12, %s1472_s13 }
 0x123   : > { %678 = vrot.lane.b32.xlu0 %v1590_v23, %s1890_s14 }
 0x124   : > { %764 = vrot.lane.b32.xlu1 %v1576_v12, %s1890_s14 }
 0x127   : > { %667 = vrot.lane.b32.xlu0 %v1590_v23, %s1472_s13 }
 0x128   : > { %794 = vperm.xlu1 %1413, %v784_v25  }
 0x12b   : > { %757 = vrot.lane.b32.xlu0 %v1578_v13, %s1472_s13 }
 0x12f   : > { %789 = vperm.xlu0 %1412, %v783_v26  }
 0x161   : > { %v538_v42 = vpop.permute.xlu0 %537 }
 0x162   : > { %v591_v43 = vpop.permute.xlu1 %590  ;;  %v547_v46 = vsel %vm541_vm1, 0, %v538_v42 }
 0x163   : > { %v586_v52 = vmul.bf16 %v1666_v45, %v547_v46 }
 0x165   : > { %v540_v47 = vpop.permute.xlu0 %539 }
 0x166   : > { %v705_v49 = vpop.permute.xlu1 %704  ;;  %v542_v50 = vsel %vm541_vm1, %v538_v42, %v540_v47 }
 0x167   : > { %v587_v51 = vmul.bf16 %v1664_v44, %v542_v50 }
 0x169   : > { %844 = vmatprep.subr.bf16.mxu0 %v587_v51  ;;  %v589_v55 = vpop.permute.xlu0 %588 }
 0x16a   : > { %v602_v57 = vpop.permute.xlu1 %601  ;;  %845 = vmatpush1.bf16.msra.mxu0 %v586_v52  ;;  %v593_v63 = vsel %vm592_vm2, %v589_v55, %v591_v43 }
 0x16b   : > { %846 = vmatprep.subr.bf16.mxu0 %v701_v54 }
 0x16d   : > { %v703_v60 = vpop.permute.xlu0 %702 }
 0x16e   : > { %v714_v62 = vpop.permute.xlu1 %713  ;;  %847 = vmatpush1.bf16.msra.mxu0 %v700_v58  ;;  %v706_v3 = vsel %vm592_vm2, %v703_v60, %v705_v49 }
 0x16f   : > { %848 = vmatprep.subr.bf16.mxu0 %v593_v63 }
 0x171   : > { %v600_v5 = vpop.permute.xlu0 %599 }
 0x172   : > { %v604_v6 = vsel %vm603_vm3, %v600_v5, %v602_v57  ;;  %v629_v7 = vpop.permute.xlu1 %628  ;;  %1343 = vmatpush1.bf16.msk.msra.mxu0 %vm1678_vm4, %v589_v55  ;;  %v608_v9 = vsel %vm603_vm3, 0, %v600_v5 }
 0x173   : > { %850 = vmatprep.subr.bf16.mxu0 %v706_v3  ;;  %v625_v10 = vmul.bf16 %v1683_v4, %v604_v6  ;;  %v624_v18 = vmul.bf16 %v1688_v8, %v608_v9 }
 0x175   : > { %v712_v11 = vpop.permute.xlu0 %711 }
 0x176   : > { %v715_v14 = vsel %vm603_vm3, %v712_v11, %v714_v62  ;;  %v725_v15 = vpop.permute.xlu1 %724  ;;  %1345 = vmatpush1.bf16.msk.msra.mxu0 %vm1678_vm4, %v703_v60  ;;  %v718_v16 = vsel %vm603_vm3, 0, %v712_v11 }
 0x177   : > { %v721_v17 = vmul.bf16 %v715_v14, %v1683_v4  ;;  %852 = vmatprep.subr.bf16.mxu0 %v625_v10  ;;  %v720_v20 = vmul.bf16 %v718_v16, %v1688_v8 }
 0x179   : > { %v627_v19 = vpop.permute.xlu0 %626 }
 0x17a   : > { %v631_v22 = vsel %vm630_vm5, %v627_v19, %v629_v7  ;;  %v640_v24 = vpop.permute.xlu1 %639  ;;  %853 = vmatpush1.bf16.msra.mxu0 %v624_v18  ;;  %v635_v25 = vsel %vm630_vm5, 0, %v627_v19  ;;  %v1429_v7 = vld [vmem:[%s1883_s5 + $0x8] ss:$12 sps:$4 sm:$0xff]  }
 0x17b   : > { %854 = vmatprep.subr.bf16.mxu0 %v721_v17  ;;  %v638_v26 = vmul.bf16 %v631_v22, %v1664_v44  ;;  %v637_v32 = vmul.bf16 %v635_v25, %v1666_v45 }
 0x17d   : > { %v723_v27 = vpop.permute.xlu0 %722 }
 0x17e   : > { %v726_v28 = vsel %vm630_vm5, %v723_v27, %v725_v15  ;;  %v734_v29 = vpop.permute.xlu1 %733  ;;  %855 = vmatpush1.bf16.msra.mxu0 %v720_v20  ;;  %v729_v30 = vsel %vm630_vm5, 0, %v723_v27  ;;  %v1426_v15 = vld [vmem:[%s1883_s5] ss:$12 sps:$4 sm:$0xff]  }
 0x17f   : > { %v732_v31 = vmul.bf16 %v726_v28, %v1664_v44  ;;  %856 = vmatprep.subr.bf16.mxu0 %v638_v26  ;;  %v731_v34 = vmul.bf16 %v729_v30, %v1666_v45 }
 0x181   : > { %v736_v33 = vpop.permute.xlu0 %735 }
 0x182   : > { %v653_v35 = vpop.permute.xlu1 %652  ;;  %857 = vmatpush1.bf16.msra.mxu0 %v637_v32  ;;  %v740_v46 = vsel %vm643_vm6, %v736_v33, 0  ;;  %v737_v48 = vsel %vm643_vm6, %v734_v29, %v736_v33 }
 0x183   : > { %858 = vmatprep.subr.bf16.mxu0 %v732_v31  ;;  %v742_v51 = vmul.bf16 %v737_v48, %v1688_v8 }
 0x185   : > { %v642_v36 = vpop.permute.xlu0 %641 }
 0x186   : > { %v745_v37 = vpop.permute.xlu1 %744  ;;  %859 = vmatpush1.bf16.msra.mxu0 %v731_v34  ;;  %v648_v39 = vsel %vm643_vm6, %v642_v36, 0  ;;  %v644_v41 = vsel %vm643_vm6, %v640_v24, %v642_v36 }
 0x187   : > { %860 = vmatprep.subr.bf16.mxu0 %v1590_v23  ;;  %v651_v42 = vmul.bf16 %v648_v39, %v1683_v4  ;;  %v650_v23 = vmul.bf16 %v644_v41, %v1688_v8  ;;  %v950_v39 = vld [vmem:[%s1887_s9] sm:$0xff]  ;;  %v1430_v41 = vld [vmem:[%s1883_s5 + $0x1c] ss:$12 sps:$4 sm:$0xff]  }
 0x189   : > { %v747_v38 = vpop.permute.xlu0 %746 }
 0x18a   : > { %v666_v40 = vpop.permute.xlu1 %665  ;;  %861 = vmatpush1.bf16.msra.mxu0 %v1588_v21  ;;  %v743_v21 = vmul.bf16 %v740_v46, %v1683_v4  ;;  %v751_v55 = vsel %vm656_vm7, %v747_v38, 0  ;;  %v748_v63 = vsel %vm656_vm7, %v745_v37, %v747_v38  ;;  %v951_v37 = vld [vmem:[%s1887_s9 + $0x8] sm:$0xff]  ;;  %v952_v38 = vld [vmem:[%s1888_s10] sm:$0xff] }
 0x18b   : > { %862 = vmatprep.subr.bf16.mxu0 %v1578_v13  ;;  %v754_v1 = vmul.bf16 %v751_v55, %v1664_v44  ;;  %v753_v5 = vmul.bf16 %v748_v63, %v1666_v45  ;;  %v1015_v55 = vld [vmem:[%s421_s22] sm:$0xff] }
 0x18d   : > { %v655_v43 = vpop.permute.xlu0 %654 }
 0x18e   : > { %v677_v47 = vpop.permute.xlu1 %676  ;;  %863 = vmatpush1.bf16.msra.mxu0 %v1576_v12  ;;  %v661_v13 = vsel %vm656_vm7, %v655_v43, 0  ;;  %v657_v12 = vsel %vm656_vm7, %v653_v35, %v655_v43 }
 0x18f   : > { %864 = vmatprep.subr.bf16.mxu0 %v651_v42  ;;  %v664_v53 = vmul.bf16 %v661_v13, %v1664_v44  ;;  %v663_v62 = vmul.bf16 %v657_v12, %v1666_v45 }
 0x191   : > { %v767_v49 = vpop.permute.xlu0 %766 }
 0x192   : > { %865 = vmatpush1.bf16.msra.mxu0 %v650_v23  ;;  %v756_v50 = vpop.permute.xlu1 %755  ;;  %v771_v52 = vsel %vm680_vm8, %v767_v49, 0 }
 0x193   : > { %866 = vmatprep.subr.bf16.mxu0 %v743_v21  ;;  %v774_v59 = vmul.bf16 %v771_v52, %v1683_v4 }
 0x195   : > { %v679_v54 = vpop.permute.xlu0 %678 }
 0x196   : > { %v681_v56 = vsel %vm680_vm8, %v677_v47, %v679_v54  ;;  %v685_v57 = vsel %vm680_vm8, %v679_v54, 0  ;;  %867 = vmatpush1.bf16.msra.mxu0 %v742_v51  ;;  %v765_v58 = vpop.permute.xlu1 %764  ;;  %v1432_v54 = vld [vmem:[%s1883_s5 + $0x18] ss:$12 sps:$4 sm:$0xff]  }
 0x197   : > { %v687_v60 = vmul.bf16 %v681_v56, %v1688_v8  ;;  %v688_v61 = vmul.bf16 %v685_v57, %v1683_v4  ;;  %868 = vmatprep.subr.bf16.mxu0 %v664_v53  ;;  %v768_v3 = vsel %vm680_vm8, %v765_v58, %v767_v49  ;;  %v1016_v56 = vld [vmem:[%s421_s22 + $0x8] sm:$0xff] }
 0x198   : > { %v773_v6 = vmul.bf16 %v768_v3, %v1688_v8 }
 0x199   : > { %897 = vmatprep.subr.bf16.mxu1 %v688_v61  ;;  %v668_v9 = vpop.permute.xlu0 %667 }
 0x19a   : > { %869 = vmatpush1.bf16.msra.mxu0 %v663_v62  ;;  %898 = vmatpush1.bf16.msra.mxu1 %v687_v60  ;;  %v670_v10 = vsel %vm669_vm9, %v666_v40, %v668_v9  ;;  %v953_v40 = vld [vmem:[%s1888_s10 + $0x8] sm:$0xff] }
 0x19b   : > { %870 = vmatprep.subr.bf16.mxu0 %v754_v1  ;;  %899 = vmatprep.subr.bf16.mxu1 %v774_v59 }
 0x19d   : > { %v758_v11 = vpop.permute.xlu0 %757 }
 0x19e   : > { %871 = vmatpush1.bf16.msra.mxu0 %v753_v5  ;;  %900 = vmatpush1.bf16.msra.mxu1 %v773_v6  ;;  %v759_v14 = vsel %vm669_vm9, %v756_v50, %v758_v11 }
 0x19f   : > { %1346 = vmatprep.subr.msk.bf16.mxu0 %vm669_vm9, %v668_v9 }
 0x1a1   : > { %1348 = vmatmul.mubr.msk.bf16.vlgmr.msra.gmra.mrb[4].mxu1 %vm837_vm10, %v1429_v7 }
 0x1a2   : > { %873 = vmatpush1.bf16.msra.mxu0 %v670_v10  ;;  %939 = vmatprep.mubr.bf16.mxu1 %v1465_v2 }
 0x1a3   : > { %1347 = vmatprep.subr.msk.bf16.mxu0 %vm669_vm9, %v758_v11 }
 0x1a6   : > { %875 = vmatpush1.bf16.msra.mxu0 %v759_v14 }
 0x1a7   : > { %v795_v24 = vpop.permute.xlu1 %794 }
 0x1a9   : > { %877 = vmatmul.mubr.bf16.vlgmr.msra.gmra.mrb[0].mxu0 %v1426_v15 }
 0x1aa   : > { %886 = vmatprep.mubr.bf16.mxu0 %v1430_v41 }
 0x1ae   : > { %v790_v20 = vpop.permute.xlu0 %789 }
 0x1b1   : > { %887 = vmatmul.mubr.bf16.gmra.mrb[4].mxu0 %v1432_v54 }
 0x274   : > { %v931_v16 = vpop.f32.mrb[4].mxu1 }
 0x275   : > { %v933_v17 = vpop.f32.mrb[5].mxu1 }
 0x276   : > { %v935_v18 = vpop.f32.mrb[6].mxu1 }
 0x277   : > { %v937_v19 = vpop.f32.mrb[7].mxu1 }
 0x27c   : > { %v878_v22 = vpop.f32.mrb[0].mxu0 }
 0x27d   : > { %v879_v25 = vadd.f32 %v878_v22, %v790_v20  ;;  %v880_v26 = vpop.f32.mrb[1].mxu0 }
 0x27e   : > { %v881_v2 = vadd.f32 %v880_v26, %v790_v20  ;;  %v882_v27 = vpop.f32.mrb[2].mxu0 }
 0x27f   : > { %v883_v28 = vadd.f32 %v882_v27, %v795_v24  ;;  %v884_v29 = vpop.f32.mrb[3].mxu0  ;;  %v932_v30 = vadd.f32 %v931_v16, %v879_v25 }
 0x280   : > { %v934_v31 = vadd.f32 %v933_v17, %v881_v2  ;;  %v885_v32 = vadd.f32 %v884_v29, %v795_v24 }
 0x281   : > { %v936_v33 = vadd.f32 %v935_v18, %v883_v28 }
 0x282   : > { %v938_v34 = vadd.f32 %v937_v19, %v885_v32  ;;  %v954_v35 = vadd.f32 %v934_v31, %v932_v30 }
 0x284   : > { %955 = vadd.xlane.f32.xlu1 %v954_v35  ;;  %v957_v36 = vadd.f32 %v938_v34, %v936_v33 }
 0x286   : > { %958 = vadd.xlane.f32.xlu0 %v957_v36 }
 0x295   : > { %994 = vperm.xlu1 %1413, %v951_v37  }
 0x299   : > { %1003 = vperm.xlu1 %1413, %v952_v38  }
 0x29c   : > { %989 = vperm.xlu0 %1412, %v950_v39  }
 0x2a0   : > { %1008 = vperm.xlu0 %1412, %v953_v40  }
 0x311   : > { %v956_v42 = vpop.xlane.xlu1 %955 }
 0x312   : > { %v961_v43 = vmul.f32 0.00390625, %v956_v42 }
 0x313   : > { %v959_v46 = vpop.xlane.xlu0 %958 }
 0x314   : > { %v963_v47 = vsub.f32 %v932_v30, %v961_v43  ;;  %v964_v23 = vsub.f32 %v934_v31, %v961_v43  ;;  %v962_v48 = vmul.f32 0.00390625, %v959_v46 }
 0x315   : > { %v995_v58 = vpop.permute.xlu1 %994 }
 0x316   : > { %v965_v21 = vsub.f32 %v936_v33, %v962_v48  ;;  %v966_v49 = vsub.f32 %v938_v34, %v962_v48  ;;  %v967_v13 = vmul.f32 %v963_v47, %v963_v47  ;;  %v968_v50 = vmul.f32 %v964_v23, %v964_v23 }
 0x318   : > { %v971_v51 = vadd.f32 %v968_v50, %v967_v13  ;;  %v969_v52 = vmul.f32 %v965_v21, %v965_v21  ;;  %v970_v12 = vmul.f32 %v966_v49, %v966_v49 }
 0x319   : > { %v1004_v60 = vpop.permute.xlu1 %1003 }
 0x31a   : > { %972 = vadd.xlane.f32.xlu0 %v971_v51  ;;  %v974_v53 = vadd.f32 %v970_v12, %v969_v52  ;;  %v1433_v51 = vld [vmem:[%s1883_s5 + $0x20] ss:$12 sps:$4 sm:$0xff]   ;;  %v1811_v12 = vpop.f32.mrb[4].mxu0 }
 0x31b   : > { %v990_v57 = vpop.permute.xlu0 %989  ;;  %1349 = vmatmul.mubr.msk.bf16.gmra.mrb[8].mxu1 %vm837_vm10, %v1433_v51  ;;  %v1436_v52 = vld [vmem:[%s1885_s7 + $0x4] ss:$8 sps:$4 sm:$0xff]   ;;  %v1818_v54 = vpop.f32.mrb[5].mxu0 }
 0x31c   : > { %975 = vadd.xlane.f32.xlu1 %v974_v53  ;;  %1359 = vmatprep.mubr.msk.bf16.mxu1 %vm592_vm2, %v1436_v52  ;;  %v785_v53 = vld [vmem:[%s1884_s6 + $0x10] sm:$0xff] }
 0x31f   : > { %v1009_v59 = vpop.permute.xlu0 %1008 }
 0x32d   : > { %1019 = vperm.xlu1 %1413, %v1015_v55   ;;  %v786_v55 = vld [vmem:[%s1884_s6 + $0x18] sm:$0xff] }
 0x330   : > { %1024 = vperm.xlu0 %1412, %v1016_v56   ;;  %v1823_v56 = vpop.f32.mrb[6].mxu0 }
 0x3a7   : > { %v973_v61 = vpop.xlane.xlu0 %972 }
 0x3a8   : > { %v977_v62 = vmul.f32 0.00390625, %v973_v61 }
 0x3a9   : > { %v976_v63 = vpop.xlane.xlu1 %975 }
 0x3aa   : > { %v979_v1 = vadd.f32 1e-06, %v977_v62  ;;  %v978_v3 = vmul.f32 0.00390625, %v976_v63 }
 0x3ac   : > { %1437 = vrsqrt.f32 %v979_v1  ;;  %v980_v5 = vadd.f32 1e-06, %v978_v3 }
 0x3ad   : > { %v1020_v22 = vpop.permute.xlu1 %1019 }
 0x3ae   : > { %1439 = vrsqrt.f32 %v980_v5 }
 0x3af   : > { %v1025_v27 = vpop.permute.xlu0 %1024 }
 0x3b6   : > { %v1438_v6 = vpop.eup %1437 }
 0x3b7   : > { %v983_v7 = vmul.f32 %v1438_v6, %v963_v47  ;;  %v984_v9 = vmul.f32 %v1438_v6, %v964_v23 }
 0x3b8   : > { %v1440_v10 = vpop.eup %1439 }
 0x3b9   : > { %v997_v11 = vmul.f32 %v990_v57, %v983_v7  ;;  %v998_v14 = vmul.f32 %v990_v57, %v984_v9  ;;  %v985_v15 = vmul.f32 %v1440_v10, %v965_v21  ;;  %v986_v16 = vmul.f32 %v1440_v10, %v966_v49  ;;  %v1825_v57 = vpop.f32.mrb[7].mxu0 }
 0x3bb   : > { %v1011_v17 = vadd.f32 %v1004_v60, %v997_v11  ;;  %v1012_v18 = vadd.f32 %v1004_v60, %v998_v14  ;;  %v999_v19 = vmul.f32 %v995_v58, %v985_v15  ;;  %v1000_v20 = vmul.f32 %v995_v58, %v986_v16  ;;  %v1149_v58 = vld [vmem:[%s1886_s8] sm:$0xff] }
 0x3bd   : > { %v1027_v24 = vadd.f32 %v1020_v22, %v1011_v17  ;;  %v1028_v25 = vadd.f32 %v1020_v22, %v1012_v18  ;;  %v1013_v26 = vadd.f32 %v1009_v59, %v999_v19  ;;  %v1014_v2 = vadd.f32 %v1009_v59, %v1000_v20  ;;  %v1150_v59 = vld [vmem:[%s1886_s8 + $0x8] sm:$0xff] }
 0x3bf   : > { %v1350_v28 = vmul.f32 -1.442695, %v1027_v24  ;;  %v1351_v29 = vmul.f32 -1.442695, %v1028_v25  ;;  %v1029_v30 = vadd.f32 %v1025_v27, %v1013_v26  ;;  %v1030_v31 = vadd.f32 %v1025_v27, %v1014_v2 }
 0x3c1   : > { %1441 = vpow2.f32 %v1350_v28  ;;  %v1352_v32 = vmul.f32 -1.442695, %v1029_v30  ;;  %v1353_v33 = vmul.f32 -1.442695, %v1030_v31 }
 0x3c2   : > { %1443 = vpow2.f32 %v1351_v29 }
 0x3c3   : > { %1445 = vpow2.f32 %v1352_v32 }
 0x3c4   : > { %1447 = vpow2.f32 %v1353_v33 }
 0x3cb   : > { %v1442_v34 = vpop.eup %1441 }
 0x3cc   : > { %v1444_v35 = vpop.eup %1443  ;;  %v1043_v36 = vadd.f32 1.0, %v1442_v34 }
 0x3cd   : > { %v1446_v37 = vpop.eup %1445  ;;  %v1044_v38 = vadd.f32 1.0, %v1444_v35 }
 0x3ce   : > { %v1448_v39 = vpop.eup %1447  ;;  %1449 = vrcp.f32 %v1043_v36  ;;  %v1045_v40 = vadd.f32 1.0, %v1446_v37 }
 0x3cf   : > { %1451 = vrcp.f32 %v1044_v38  ;;  %v1046_v41 = vadd.f32 1.0, %v1448_v39 }
 0x3d0   : > { %1453 = vrcp.f32 %v1045_v40 }
 0x3d1   : > { %1455 = vrcp.f32 %v1046_v41 }
 0x3d8   : > { %v1450_v42 = vpop.eup %1449 }
 0x3d9   : > { %v1452_v43 = vpop.eup %1451  ;;  %v1055_v23 = vmul.f32 %v1450_v42, %v1027_v24 }
 0x3da   : > { %v1454_v46 = vpop.eup %1453  ;;  %v1056_v21 = vmul.f32 %v1452_v43, %v1028_v25 }
 0x3db   : > { %v1456_v47 = vpop.eup %1455  ;;  %v1057_v48 = vmul.f32 %v1454_v46, %v1029_v30 }
 0x3dc   : > { %v1058_v49 = vmul.f32 %v1456_v47, %v1030_v31 }
 0x3dd   : > { %v1769_v13 = vpack.c.bf16 %v1057_v48, %v1055_v23 }
 0x3de   : > { %v1771_v50 = vpack.c.bf16 %v1058_v49, %v1056_v21 }
 0x3df   : > { %1063 = vrot.lane.b32.xlu1 %v1769_v13, %s1466_s23 }
 0x3e0   : > { %1065 = vrot.lane.b32.xlu0 %v1771_v50, %s1466_s23 }
 0x3e3   : > { %1074 = vrot.lane.b32.xlu1 %v1769_v13, %s1467_s26 }
 0x3e4   : > { %1076 = vrot.lane.b32.xlu0 %v1771_v50, %s1467_s26 }
 0x3e7   : > { %1083 = vrot.lane.b32.xlu1 %v1769_v13, %s1468_s27 }
 0x3e8   : > { %1085 = vrot.lane.b32.xlu0 %v1771_v50, %s1468_s27 }
 0x3eb   : > { %1094 = vrot.lane.b32.xlu1 %v1769_v13, %s1469_s28 }
 0x3ec   : > { %1096 = vrot.lane.b32.xlu0 %v1771_v50, %s1469_s28  ;;  %s1894_s28 = smov 111  }
 0x3ef   : > { %1107 = vrot.lane.b32.xlu1 %v1771_v50, %s1470_s29 }
 0x3f0   : > { %1105 = vrot.lane.b32.xlu0 %v1769_v13, %s1470_s29 }
 0x3f3   : > { %1118 = vrot.lane.b32.xlu1 %v1771_v50, %s1471_s12 }
 0x3f4   : > { %1116 = vrot.lane.b32.xlu0 %v1769_v13, %s1471_s12 }
 0x3f7   : > { %1127 = vrot.lane.b32.xlu1 %v1769_v13, %s1472_s13 }
 0x3f8   : > { %1129 = vrot.lane.b32.xlu0 %v1771_v50, %s1472_s13 }
 0x3fb   : > { %1138 = vrot.lane.b32.xlu1 %v1771_v50, %s1894_s28 }
 0x3fc   : > { %1136 = vrot.lane.b32.xlu0 %v1769_v13, %s1894_s28 }
 0x3ff   : > { %799 = vperm.xlu1 %1413, %v785_v53  }
 0x400   : > { %804 = vperm.xlu0 %1412, %v786_v55  }
 0x403   : > { %1153 = vperm.xlu1 %1413, %v1149_v58  }
 0x404   : > { %1158 = vperm.xlu0 %1412, %v1150_v59  }
 0x451   : > { %v1064_v60 = vpop.permute.xlu1 %1063 }
 0x452   : > { %v1066_v61 = vpop.permute.xlu0 %1065  ;;  %v1070_v62 = vsel %vm541_vm1, 0, %v1064_v60 }
 0x453   : > { %v1067_v63 = vsel %vm541_vm1, %v1064_v60, %v1066_v61  ;;  %v1072_v1 = vmul.bf16 %v1070_v62, %v1666_v45 }
 0x454   : > { %v1073_v3 = vmul.bf16 %v1067_v63, %v1664_v44 }
 0x455   : > { %v1075_v5 = vpop.permute.xlu1 %1074 }
 0x456   : > { %v1077_v6 = vpop.permute.xlu0 %1076  ;;  %1173 = vmatprep.subr.bf16.mxu1 %v1073_v3 }
 0x457   : > { %1174 = vmatpush1.bf16.msra.mxu1 %v1072_v1  ;;  %v1078_v7 = vsel %vm592_vm2, %v1075_v5, %v1077_v6 }
 0x458   : > { %1175 = vmatprep.subr.bf16.mxu1 %v1078_v7 }
 0x459   : > { %v1084_v9 = vpop.permute.xlu1 %1083 }
 0x45a   : > { %v1086_v10 = vpop.permute.xlu0 %1085  ;;  %v1090_v11 = vsel %vm603_vm3, 0, %v1084_v9 }
 0x45b   : > { %v1087_v14 = vsel %vm603_vm3, %v1084_v9, %v1086_v10  ;;  %v1092_v15 = vmul.bf16 %v1090_v11, %v1688_v8  ;;  %1357 = vmatpush1.bf16.msk.msra.mxu1 %vm1678_vm4, %v1075_v5 }
 0x45c   : > { %v1093_v16 = vmul.bf16 %v1087_v14, %v1683_v4 }
 0x45d   : > { %v1095_v17 = vpop.permute.xlu1 %1094 }
 0x45e   : > { %v1097_v18 = vpop.permute.xlu0 %1096  ;;  %1177 = vmatprep.subr.bf16.mxu1 %v1093_v16  ;;  %v1101_v19 = vsel %vm630_vm5, 0, %v1095_v17 }
 0x45f   : > { %v1098_v20 = vsel %vm630_vm5, %v1095_v17, %v1097_v18  ;;  %v1103_v22 = vmul.bf16 %v1101_v19, %v1666_v45  ;;  %1178 = vmatpush1.bf16.msra.mxu1 %v1092_v15 }
 0x460   : > { %v1104_v24 = vmul.bf16 %v1098_v20, %v1664_v44 }
 0x461   : > { %v1108_v25 = vpop.permute.xlu1 %1107 }
 0x462   : > { %v1106_v26 = vpop.permute.xlu0 %1105  ;;  %1179 = vmatprep.subr.bf16.mxu1 %v1104_v24  ;;  %v1112_v0 = vsel %vm643_vm6, %v1108_v25, 0 }
 0x463   : > { %1180 = vmatpush1.bf16.msra.mxu1 %v1103_v22  ;;  %v1109_v27 = vsel %vm643_vm6, %v1106_v26, %v1108_v25  ;;  %v1115_v28 = vmul.bf16 %v1112_v0, %v1683_v4 }
 0x464   : > { %1181 = vmatprep.subr.bf16.mxu1 %v1771_v50  ;;  %v1114_v31 = vmul.bf16 %v1109_v27, %v1688_v8 }
 0x465   : > { %v1119_v2 = vpop.permute.xlu1 %1118 }
 0x466   : > { %v1117_v29 = vpop.permute.xlu0 %1116  ;;  %v1123_v30 = vsel %vm656_vm7, %v1119_v2, 0 }
 0x467   : > { %1182 = vmatpush1.bf16.msra.mxu1 %v1769_v13  ;;  %v1120_v33 = vsel %vm656_vm7, %v1117_v29, %v1119_v2  ;;  %v1126_v34 = vmul.bf16 %v1123_v30, %v1664_v44 }
 0x468   : > { %1183 = vmatprep.subr.bf16.mxu1 %v1115_v28  ;;  %v1125_v36 = vmul.bf16 %v1120_v33, %v1666_v45  ;;  %v1434_v45 = vld [vmem:[%s1885_s7] ss:$8 sps:$4 sm:$0xff]  }
 0x469   : > { %v1128_v32 = vpop.permute.xlu1 %1127 }
 0x46a   : > { %v1130_v35 = vpop.permute.xlu0 %1129 }
 0x46b   : > { %1184 = vmatpush1.bf16.msra.mxu1 %v1114_v31  ;;  %v1131_v40 = vsel %vm669_vm9, %v1128_v32, %v1130_v35 }
 0x46c   : > { %1185 = vmatprep.subr.bf16.mxu1 %v1126_v34 }
 0x46d   : > { %v1139_v37 = vpop.permute.xlu1 %1138 }
 0x46e   : > { %v1137_v38 = vpop.permute.xlu0 %1136  ;;  %v1143_v39 = vsel %vm680_vm8, %v1139_v37, 0 }
 0x46f   : > { %1186 = vmatpush1.bf16.msra.mxu1 %v1125_v36  ;;  %v1140_v41 = vsel %vm680_vm8, %v1137_v38, %v1139_v37  ;;  %v1146_v42 = vmul.bf16 %v1143_v39, %v1683_v4 }
 0x470   : > { %1358 = vmatprep.subr.msk.bf16.mxu1 %vm669_vm9, %v1130_v35  ;;  %v1145_v44 = vmul.bf16 %v1140_v41, %v1688_v8 }
 0x473   : > { %1188 = vmatpush1.bf16.msra.mxu1 %v1131_v40 }
 0x474   : > { %1189 = vmatprep.subr.bf16.mxu1 %v1146_v42 }
 0x477   : > { %1190 = vmatpush1.bf16.msra.mxu1 %v1145_v44 }
 0x47a   : > { %1206 = vmatmul.mubr.bf16.vlgmr.msra.gmra.mrb[8].mxu1 %v1434_v45 }
 0x47e   : > { %v800_v43 = vpop.permute.xlu1 %799 }
 0x47f   : > { %v805_v46 = vpop.permute.xlu0 %804  ;;  %v889_v23 = vadd.f32 %v1811_v12, %v800_v43  ;;  %v891_v48 = vadd.f32 %v1818_v54, %v800_v43 }
 0x480   : > { %v893_v4 = vadd.f32 %v1823_v56, %v805_v46  ;;  %v895_v8 = vadd.f32 %v1825_v57, %v805_v46 }
 0x482   : > { %v1154_v47 = vpop.permute.xlu1 %1153 }
 0x483   : > { %v1159_v21 = vpop.permute.xlu0 %1158  ;;  %v1379_v49 = vadd.f32 %v1154_v47, %v889_v23  ;;  %v1382_v13 = vadd.f32 %v1154_v47, %v891_v48 }
 0x484   : > { %v1385_v51 = vadd.f32 %v1159_v21, %v893_v4  ;;  %v1388_v55 = vadd.f32 %v1159_v21, %v895_v8 }
 0x54d   : > { %v1207_v50 = vpop.f32.mrb[8].mxu1 }
 0x54e   : > { %v1380_v52 = vadd.f32 %v1379_v49, %v1207_v50  ;;  %v1209_v53 = vpop.f32.mrb[9].mxu1 }
 0x54f   : > { %v1383_v58 = vadd.f32 %v1382_v13, %v1209_v53  ;;  %v1211_v59 = vpop.f32.mrb[10].mxu1 }
 0x550   : > { %v1386_v12 = vadd.f32 %v1385_v51, %v1211_v59  ;;  %v1213_v54 = vpop.f32.mrb[11].mxu1 }
 0x551   : > { %v1368_v60 = vpack.c.bf16 %v1383_v58, %v1380_v52  ;;  %v1389_v61 = vadd.f32 %v1388_v55, %v1213_v54 }
 0x553   : > { %1232 = vst [vmem:[%s426_s24] sm:$0xff] %v1368_v60  ;;  %v1369_v56 = vpack.c.bf16 %v1389_v61, %v1386_v12 }
 0x555   : > { %1233 = vst [vmem:[%s426_s24 + $0x8] sm:$0xff] %v1369_v56 }
 0x556 PF: > { %s21_s17 = sadd.s32 1, %s1463_s17  }
 0x557   : > { %p18_p4 = scmp.ge.s32.totalorder %s21_s17, 4  }
 0x559   :  { %20 = sbr.rel (!%p18_p4) target bundleno = 1 (0x1), region = 100 }

// kernel: forward.5
= control target key start
LH: loop header
LB: loop body
LE: loop exit
PB: predicated region body
PF: predicated region fallthrough
CT: control target
= control target key end

     0   :  { %s1855_s24 = smov 0   ;;  %s2546_s0 = inlined_call_operand.vmem [shape: bf16[2,16,256], index: 0, kind: input, shape index: {}]   ;;  %s2547_s1 = inlined_call_operand.vmem [shape: f32[16,1], index: 1, kind: input, shape index: {}]   ;;  %s2548_s2 = inlined_call_operand.vmem [shape: f32[16,1], index: 2, kind: input, shape index: {}]   ;;  %s2549_s3 = inlined_call_operand.vmem [shape: bf16[48,16], index: 3, kind: input, shape index: {}]   ;;  %s2550_s4 = inlined_call_operand.vmem [shape: f32[48,1], index: 4, kind: input, shape index: {}]   ;;  %s2551_s5 = inlined_call_operand.vmem [shape: bf16[16,16], index: 5, kind: input, shape index: {}]   ;;  %s2552_s6 = inlined_call_operand.vmem [shape: f32[16,1], index: 6, kind: input, shape index: {}]   ;;  %s2553_s7 = inlined_call_operand.vmem [shape: f32[2,16,256], index: 7, kind: output, shape index: {}]  }
   0x1 LB: > { %s1557_s25 = sadd.s32 4294967295, %s1812_s24   ;;  %p1561_p0 = scmp.ge.s32.totalorder %s1812_s24, 1  ;;  %s1812_s24 = sphi %s1855_s24, %s17_s24  }
   0x2   : > { %p237_p1 = scmp.lt.s32.totalorder %s1812_s24, 3 }
   0x4   : > { %p238_p2 = pnand %p1561_p0, %p237_p1 }
   0x6   : > { %241 = sbr.rel (%p238_p2) target bundleno = 1869 (0x74d), region = 48 }
   0xd   : > { %p269_p3 = scmp.lt.s32.totalorder %s1557_s25, 1  ;;  %v287_v0 = vld [vmem:[%s2547_s1 + $0x8] sm:$0xff]  ;;  %v1814_v1 = vmov 0   ;;  %v288_v2 = vld [vmem:[%s2548_s2] sm:$0xff]  ;;  %v361_v29 = vld [vmem:[%s2550_s4 + $0x10] sm:$0xff]  ;;  %vm410_vm0 = vcmask 130048  }
   0xe   : > { %1605 = vset.pattern.permute.xlu1 %v1814_v1  ;;  %1604 = vset.pattern.permute.xlu0 %v1814_v1  ;;  %v286_v11 = vld [vmem:[%s2547_s1] sm:$0xff]  ;;  %v289_v26 = vld [vmem:[%s2548_s2 + $0x8] sm:$0xff]  ;;  %v362_v30 = vld [vmem:[%s2550_s4 + $0x18] sm:$0xff] }
   0xf   : > { %s2648_s25 = smov (!%p269_p3, %s1557_s25), 1  ;;  %330 = vperm.xlu1 %1605, %v287_v0   ;;  %452 = vmatprep.mubr.bf16.mxu0 %v1814_v1  ;;  %v359_v27 = vld [vmem:[%s2550_s4] sm:$0xff]  ;;  %v360_v28 = vld [vmem:[%s2550_s4 + $0x8] sm:$0xff] }
  0x10   : > { %645 = vmatprep.mubr.bf16.mxu1 %v1814_v1  ;;  %s1592_s30 = sshll.u32 %s2648_s25, 4  ;;  %v1606_v57 = vld [vmem:[%s2549_s3] sm:$0xff]   ;;  %v1607_v58 = vld [vmem:[%s2549_s3 + $0x8] sm:$0xff]   ;;  %s1593_s18 = sshll.u32 %s2648_s25, 5 }
  0x11   : > { %s273_s10 = scalar_lea.vmem %s2546_s0, %s1592_s30  ;;  %s278_s21 = scalar_lea.vmem %s2553_s7, %s1593_s18 }
  0x12   : > { %v280_v3 = vld [vmem:[%s273_s10] sm:$0xff]  ;;  %v281_v4 = vld [vmem:[%s273_s10 + $0x8] sm:$0xff] }
  0x13   : > { %339 = vperm.xlu1 %1605, %v288_v2   ;;  %v1879_v5 = vunpack.c.l.bf16 %v280_v3  ;;  %v1881_v6 = vunpack.c.h.bf16 %v280_v3  ;;  %v1883_v7 = vunpack.c.l.bf16 %v281_v4  ;;  %v1885_v8 = vunpack.c.h.bf16 %v281_v4 }
  0x15   : > { %2585 = vst [vmem:[#allocation2_spill] sm:$0xff] %v1879_v5  ;;  %2586 = vst [vmem:[#allocation3_spill] sm:$0xff] %v1881_v6  ;;  %v290_v9 = vadd.f32 %v1881_v6, %v1879_v5  ;;  %v293_v10 = vadd.f32 %v1885_v8, %v1883_v7 }
  0x16   : > { %2587 = vst [vmem:[#allocation4_spill] sm:$0xff] %v1883_v7  ;;  %2588 = vst [vmem:[#allocation5_spill] sm:$0xff] %v1885_v8 }
  0x17   : > { %291 = vadd.xlane.f32.xlu0 %v290_v9 }
  0x1b   : > { %294 = vadd.xlane.f32.xlu0 %v293_v10 }
  0x31   : > { %325 = vperm.xlu0 %1604, %v286_v11  }
  0x8e   : > { %v331_v31 = vpop.permute.xlu1 %330 }
  0x92   : > { %v340_v32 = vpop.permute.xlu1 %339 }
  0xa4   : > { %v292_v12 = vpop.xlane.xlu0 %291 }
  0xa5   : > { %v297_v13 = vmul.f32 0.00390625, %v292_v12 }
  0xa7   : > { %v299_v14 = vsub.f32 %v1879_v5, %v297_v13  ;;  %v300_v15 = vsub.f32 %v1881_v6, %v297_v13 }
  0xa8   : > { %v295_v16 = vpop.xlane.xlu0 %294 }
  0xa9   : > { %v298_v17 = vmul.f32 0.00390625, %v295_v16  ;;  %v303_v18 = vmul.f32 %v299_v14, %v299_v14  ;;  %v304_v19 = vmul.f32 %v300_v15, %v300_v15 }
  0xab   : > { %v301_v20 = vsub.f32 %v1883_v7, %v298_v17  ;;  %v302_v21 = vsub.f32 %v1885_v8, %v298_v17  ;;  %v307_v22 = vadd.f32 %v304_v19, %v303_v18 }
  0xad   : > { %308 = vadd.xlane.f32.xlu1 %v307_v22  ;;  %v305_v23 = vmul.f32 %v301_v20, %v301_v20  ;;  %v306_v24 = vmul.f32 %v302_v21, %v302_v21 }
  0xaf   : > { %v310_v25 = vadd.f32 %v306_v24, %v305_v23 }
  0xb0   : > { %v326_v42 = vpop.permute.xlu0 %325 }
  0xb1   : > { %311 = vadd.xlane.f32.xlu1 %v310_v25 }
  0xc2   : > { %344 = vperm.xlu1 %1605, %v289_v26  }
  0xc6   : > { %367 = vperm.xlu1 %1605, %v359_v27  }
  0xca   : > { %372 = vperm.xlu1 %1605, %v360_v28  }
  0xce   : > { %377 = vperm.xlu1 %1605, %v361_v29  }
  0xd2   : > { %382 = vperm.xlu1 %1605, %v362_v30  }
 0x13a   : > { %v309_v33 = vpop.xlane.xlu1 %308 }
 0x13b   : > { %v313_v34 = vmul.f32 0.00390625, %v309_v33 }
 0x13d   : > { %v315_v35 = vadd.f32 1e-06, %v313_v34 }
 0x13e   : > { %v312_v36 = vpop.xlane.xlu1 %311 }
 0x13f   : > { %1610 = vrsqrt.f32 %v315_v35  ;;  %v314_v37 = vmul.f32 0.00390625, %v312_v36 }
 0x141   : > { %v316_v38 = vadd.f32 1e-06, %v314_v37 }
 0x142   : > { %v345_v50 = vpop.permute.xlu1 %344 }
 0x143   : > { %1612 = vrsqrt.f32 %v316_v38 }
 0x146   : > { %v368_v59 = vpop.permute.xlu1 %367 }
 0x149   : > { %v1611_v39 = vpop.eup %1610 }
 0x14a   : > { %v319_v40 = vmul.f32 %v1611_v39, %v299_v14  ;;  %v320_v41 = vmul.f32 %v1611_v39, %v300_v15  ;;  %v373_v60 = vpop.permute.xlu1 %372 }
 0x14c   : > { %v333_v44 = vmul.f32 %v326_v42, %v319_v40  ;;  %v334_v45 = vmul.f32 %v326_v42, %v320_v41 }
 0x14d   : > { %v1613_v43 = vpop.eup %1612 }
 0x14e   : > { %v322_v46 = vmul.f32 %v1613_v43, %v302_v21  ;;  %v321_v47 = vmul.f32 %v1613_v43, %v301_v20  ;;  %v348_v51 = vadd.f32 %v340_v32, %v334_v45  ;;  %v347_v53 = vadd.f32 %v340_v32, %v333_v44  ;;  %v378_v4 = vpop.permute.xlu1 %377 }
 0x150   : > { %v336_v48 = vmul.f32 %v331_v31, %v322_v46  ;;  %v335_v49 = vmul.f32 %v331_v31, %v321_v47 }
 0x152   : > { %v350_v52 = vadd.f32 %v345_v50, %v336_v48  ;;  %v349_v54 = vadd.f32 %v345_v50, %v335_v49  ;;  %v383_v13 = vpop.permute.xlu1 %382 }
 0x154   : > { %v358_v55 = vpack.c.bf16 %v350_v52, %v348_v51  ;;  %v357_v56 = vpack.c.bf16 %v349_v54, %v347_v53 }
 0x156   : > { %420 = vmatprep.subr.bf16.mxu0 %v358_v55 }
 0x157   : > { %421 = vmatpush1.bf16.msra.mxu0 %v357_v56 }
 0x15a   : > { %1569 = vmatmul.mubr.msk.bf16.vlgmr.msra.gmra.mrb[0].mxu0 %vm410_vm0, %v1606_v57 }
 0x15b   : > { %462 = vmatprep.mubr.bf16.mxu0 %v1814_v1 }
 0x162   : > { %1570 = vmatmul.mubr.msk.bf16.gmra.mrb[4].mxu0 %vm410_vm0, %v1607_v58 }
 0x163   : > { %472 = vmatprep.mubr.bf16.mxu0 %v1814_v1 }
 0x22d   : > { %v454_v61 = vpop.f32.mrb[0].mxu0 }
 0x22e   : > { %v455_v62 = vadd.f32 %v454_v61, %v368_v59  ;;  %v456_v63 = vpop.f32.mrb[1].mxu0 }
 0x22f   : > { %v457_v0 = vadd.f32 %v456_v63, %v368_v59  ;;  %v458_v2 = vpop.f32.mrb[2].mxu0 }
 0x230   : > { %v460_v3 = vpop.f32.mrb[3].mxu0  ;;  %483 = vxpose.xlu1.b32.start [1/2] (short) %v455_v62, 128  ;;  %v459_v9 = vadd.f32 %v458_v2, %v373_v60 }
 0x231   : > { %515 = vxpose.xlu0.b32.start [1/2] (short) %v457_v0, 128  ;;  %v461_v10 = vadd.f32 %v460_v3, %v373_v60 }
 0x234   : > { %484 = vxpose.xlu1.b32.end [2/2] (short) %v459_v9, 128 }
 0x235   : > { %v464_v11 = vpop.f32.mrb[4].mxu0  ;;  %516 = vxpose.xlu0.b32.end [2/2] (short) %v461_v10, 128 }
 0x236   : > { %v466_v12 = vpop.f32.mrb[5].mxu0  ;;  %v465_v15 = vadd.f32 %v464_v11, %v378_v4 }
 0x237   : > { %v468_v14 = vpop.f32.mrb[6].mxu0  ;;  %v467_v18 = vadd.f32 %v466_v12, %v378_v4 }
 0x238   : > { %v469_v16 = vadd.f32 %v468_v14, %v383_v13  ;;  %v470_v17 = vpop.f32.mrb[7].mxu0 }
 0x239   : > { %v471_v19 = vadd.f32 %v470_v17, %v383_v13 }
 0x23a   : > { %v563_v20 = vpack.c.bf16 %v469_v16, %v465_v15 }
 0x23b   : > { %v564_v21 = vpack.c.bf16 %v471_v19, %v467_v18 }
 0x23d   : > { %613 = vmatprep.subr.bf16.mxu1 %v564_v21 }
 0x23e   : > { %614 = vmatpush1.bf16.msra.mxu1 %v563_v20 }
 0x2b0   : > { %v499_v22 = vpop.trf.xlu1 }
 0x2b1   : > { %v531_v35 = vpop.trf.xlu0 }
 0x2b4   : > { %v500_v23 = vpop.trf.xlu1 }
 0x2b5   : > { %v547_v24 = vpack.c.bf16 %v500_v23, %v499_v22  ;;  %v532_v38 = vpop.trf.xlu0 }
 0x2b6   : > { %v555_v52 = vpack.c.bf16 %v532_v38, %v531_v35 }
 0x2b7   : > { %1572 = vmatmul.mubr.msk.bf16.vlgmr.msra.gmra.mrb[0].mxu1 %vm410_vm0, %v547_v24 }
 0x2b8   : > { %v501_v25 = vpop.trf.xlu1  ;;  %655 = vmatprep.mubr.bf16.mxu1 %v1814_v1 }
 0x2b9   : > { %v533_v41 = vpop.trf.xlu0 }
 0x2bc   : > { %v502_v26 = vpop.trf.xlu1 }
 0x2bd   : > { %v548_v27 = vpack.c.bf16 %v502_v26, %v501_v25  ;;  %v534_v44 = vpop.trf.xlu0 }
 0x2be   : > { %v556_v55 = vpack.c.bf16 %v534_v44, %v533_v41 }
 0x2bf   : > { %1573 = vmatmul.mubr.msk.bf16.gmra.mrb[4].mxu1 %vm410_vm0, %v548_v27 }
 0x2c0   : > { %v503_v28 = vpop.trf.xlu1  ;;  %665 = vmatprep.mubr.bf16.mxu1 %v1814_v1 }
 0x2c1   : > { %v535_v48 = vpop.trf.xlu0 }
 0x2c4   : > { %v504_v29 = vpop.trf.xlu1 }
 0x2c5   : > { %v549_v30 = vpack.c.bf16 %v504_v29, %v503_v28  ;;  %v536_v51 = vpop.trf.xlu0 }
 0x2c6   : > { %v557_v57 = vpack.c.bf16 %v536_v51, %v535_v48 }
 0x2c7   : > { %1574 = vmatmul.mubr.msk.bf16.gmra.mrb[8].mxu1 %vm410_vm0, %v549_v30 }
 0x2c8   : > { %v505_v31 = vpop.trf.xlu1  ;;  %675 = vmatprep.mubr.bf16.mxu1 %v1814_v1 }
 0x2c9   : > { %v537_v53 = vpop.trf.xlu0 }
 0x2cc   : > { %v506_v32 = vpop.trf.xlu1 }
 0x2cd   : > { %v550_v33 = vpack.c.bf16 %v506_v32, %v505_v31  ;;  %v538_v54 = vpop.trf.xlu0 }
 0x2ce   : > { %v558_v60 = vpack.c.bf16 %v538_v54, %v537_v53 }
 0x2cf   : > { %1575 = vmatmul.mubr.msk.bf16.gmra.mrb[12].mxu1 %vm410_vm0, %v550_v33 }
 0x2d0   : > { %v507_v34 = vpop.trf.xlu1  ;;  %685 = vmatprep.mubr.bf16.mxu1 %v1814_v1 }
 0x2d1   : > { %v539_v56 = vpop.trf.xlu0 }
 0x2d4   : > { %v508_v36 = vpop.trf.xlu1 }
 0x2d5   : > { %v551_v37 = vpack.c.bf16 %v508_v36, %v507_v34  ;;  %v540_v58 = vpop.trf.xlu0 }
 0x2d6   : > { %v559_v62 = vpack.c.bf16 %v540_v58, %v539_v56 }
 0x2d7   : > { %1576 = vmatmul.mubr.msk.bf16.gmra.mrb[16].mxu1 %vm410_vm0, %v551_v37 }
 0x2d8   : > { %v509_v39 = vpop.trf.xlu1  ;;  %695 = vmatprep.mubr.bf16.mxu1 %v1814_v1 }
 0x2d9   : > { %v541_v59 = vpop.trf.xlu0 }
 0x2dc   : > { %v510_v40 = vpop.trf.xlu1 }
 0x2dd   : > { %v552_v42 = vpack.c.bf16 %v510_v40, %v509_v39  ;;  %v542_v61 = vpop.trf.xlu0 }
 0x2de   : > { %v560_v0 = vpack.c.bf16 %v542_v61, %v541_v59 }
 0x2df   : > { %1577 = vmatmul.mubr.msk.bf16.gmra.mrb[20].mxu1 %vm410_vm0, %v552_v42 }
 0x2e0   : > { %v511_v43 = vpop.trf.xlu1  ;;  %705 = vmatprep.mubr.bf16.mxu1 %v1814_v1 }
 0x2e1   : > { %v543_v63 = vpop.trf.xlu0 }
 0x2e4   : > { %v512_v45 = vpop.trf.xlu1 }
 0x2e5   : > { %v553_v46 = vpack.c.bf16 %v512_v45, %v511_v43  ;;  %v544_v2 = vpop.trf.xlu0 }
 0x2e6   : > { %v561_v4 = vpack.c.bf16 %v544_v2, %v543_v63 }
 0x2e7   : > { %1578 = vmatmul.mubr.msk.bf16.gmra.mrb[24].mxu1 %vm410_vm0, %v553_v46 }
 0x2e8   : > { %v513_v47 = vpop.trf.xlu1  ;;  %715 = vmatprep.mubr.bf16.mxu1 %v1814_v1 }
 0x2e9   : > { %v545_v3 = vpop.trf.xlu0 }
 0x2ec   : > { %v514_v49 = vpop.trf.xlu1 }
 0x2ed   : > { %v554_v50 = vpack.c.bf16 %v514_v49, %v513_v47  ;;  %v546_v9 = vpop.trf.xlu0 }
 0x2ee   : > { %v562_v10 = vpack.c.bf16 %v546_v9, %v545_v3 }
 0x2ef   : > { %1579 = vmatmul.mubr.msk.bf16.gmra.mrb[28].mxu1 %vm410_vm0, %v554_v50 }
 0x2f0   : > { %725 = vmatprep.mubr.bf16.mxu1 %v1814_v1 }
 0x2f7   : > { %1580 = vmatmul.mubr.msk.bf16.gmra.mrb[32].mxu1 %vm410_vm0, %v555_v52 }
 0x2f8   : > { %735 = vmatprep.mubr.bf16.mxu1 %v1814_v1 }
 0x2ff   : > { %1581 = vmatmul.mubr.msk.bf16.gmra.mrb[36].mxu1 %vm410_vm0, %v556_v55 }
 0x300   : > { %745 = vmatprep.mubr.bf16.mxu1 %v1814_v1 }
 0x307   : > { %1582 = vmatmul.mubr.msk.bf16.gmra.mrb[40].mxu1 %vm410_vm0, %v557_v57 }
 0x308   : > { %755 = vmatprep.mubr.bf16.mxu1 %v1814_v1 }
 0x30f   : > { %1583 = vmatmul.mubr.msk.bf16.gmra.mrb[44].mxu1 %vm410_vm0, %v558_v60 }
 0x310   : > { %765 = vmatprep.mubr.bf16.mxu1 %v1814_v1 }
 0x317   : > { %1584 = vmatmul.mubr.msk.bf16.gmra.mrb[48].mxu1 %vm410_vm0, %v559_v62 }
 0x318   : > { %775 = vmatprep.mubr.bf16.mxu1 %v1814_v1 }
 0x31f   : > { %1585 = vmatmul.mubr.msk.bf16.gmra.mrb[52].mxu1 %vm410_vm0, %v560_v0 }
 0x320   : > { %785 = vmatprep.mubr.bf16.mxu1 %v1814_v1 }
 0x327   : > { %1586 = vmatmul.mubr.msk.bf16.gmra.mrb[56].mxu1 %vm410_vm0, %v561_v4 }
 0x328   : > { %795 = vmatprep.mubr.bf16.mxu1 %v1814_v1 }
 0x32f   : > { %1587 = vmatmul.mubr.msk.bf16.gmra.mrb[60].mxu1 %vm410_vm0, %v562_v10 }
 0x330   : > { %1483 = vmatprep.mubr.bf16.mxu1 %v1814_v1 }
 0x38a   : > { %v647_v11 = vpop.f32.mrb[0].mxu1 }
 0x38b   : > { %v1955_v12 = vmul.f32 0.25, %v647_v11  ;;  %v649_v13 = vpop.f32.mrb[1].mxu1 }
 0x38c   : > { %v1957_v14 = vmul.f32 0.25, %v649_v13  ;;  %v651_v15 = vpop.f32.mrb[2].mxu1 }
 0x38d   : > { %v1959_v16 = vmul.f32 0.25, %v651_v15  ;;  %v653_v17 = vpop.f32.mrb[3].mxu1 }
 0x38e   : > { %v1961_v18 = vmul.f32 0.25, %v653_v17  ;;  %v870_v19 = vmax.f32 %v1955_v12, %v1957_v14 }
 0x390   : > { %871 = vmax.xlane.f32.xlu0 %v870_v19  ;;  %v873_v20 = vmax.f32 %v1959_v16, %v1961_v18 }
 0x392   : > { %874 = vmax.xlane.f32.xlu1 %v873_v20  ;;  %v657_v1 = vpop.f32.mrb[4].mxu1 }
 0x393   : > { %v1967_v21 = vmul.f32 0.25, %v657_v1  ;;  %v659_v22 = vpop.f32.mrb[5].mxu1 }
 0x394   : > { %v1969_v23 = vmul.f32 0.25, %v659_v22  ;;  %v661_v24 = vpop.f32.mrb[6].mxu1 }
 0x395   : > { %v1971_v25 = vmul.f32 0.25, %v661_v24  ;;  %v663_v26 = vpop.f32.mrb[7].mxu1 }
 0x396   : > { %v1973_v27 = vmul.f32 0.25, %v663_v26  ;;  %v876_v28 = vmax.f32 %v1967_v21, %v1969_v23 }
 0x398   : > { %877 = vmax.xlane.f32.xlu0 %v876_v28  ;;  %v879_v29 = vmax.f32 %v1971_v25, %v1973_v27 }
 0x39a   : > { %880 = vmax.xlane.f32.xlu1 %v879_v29  ;;  %v667_v30 = vpop.f32.mrb[8].mxu1 }
 0x39b   : > { %v1979_v31 = vmul.f32 0.25, %v667_v30  ;;  %v669_v32 = vpop.f32.mrb[9].mxu1 }
 0x39c   : > { %v1981_v33 = vmul.f32 0.25, %v669_v32  ;;  %v671_v34 = vpop.f32.mrb[10].mxu1 }
 0x39d   : > { %v1983_v35 = vmul.f32 0.25, %v671_v34  ;;  %v673_v36 = vpop.f32.mrb[11].mxu1 }
 0x39e   : > { %v1985_v37 = vmul.f32 0.25, %v673_v36  ;;  %v882_v38 = vmax.f32 %v1979_v31, %v1981_v33 }
 0x3a0   : > { %883 = vmax.xlane.f32.xlu0 %v882_v38  ;;  %v885_v39 = vmax.f32 %v1983_v35, %v1985_v37 }
 0x3a2   : > { %886 = vmax.xlane.f32.xlu1 %v885_v39  ;;  %v677_v40 = vpop.f32.mrb[12].mxu1 }
 0x3a3   : > { %v1991_v41 = vmul.f32 0.25, %v677_v40  ;;  %v679_v42 = vpop.f32.mrb[13].mxu1 }
 0x3a4   : > { %v1993_v43 = vmul.f32 0.25, %v679_v42  ;;  %v681_v44 = vpop.f32.mrb[14].mxu1 }
 0x3a5   : > { %v1995_v45 = vmul.f32 0.25, %v681_v44  ;;  %v683_v46 = vpop.f32.mrb[15].mxu1 }
 0x3a6   : > { %v1997_v47 = vmul.f32 0.25, %v683_v46  ;;  %v888_v48 = vmax.f32 %v1991_v41, %v1993_v43 }
 0x3a8   : > { %889 = vmax.xlane.f32.xlu0 %v888_v48  ;;  %v891_v49 = vmax.f32 %v1995_v45, %v1997_v47 }
 0x3aa   : > { %892 = vmax.xlane.f32.xlu1 %v891_v49  ;;  %v687_v50 = vpop.f32.mrb[16].mxu1 }
 0x3ab   : > { %v2003_v51 = vmul.f32 0.25, %v687_v50  ;;  %v689_v52 = vpop.f32.mrb[17].mxu1 }
 0x3ac   : > { %v2005_v53 = vmul.f32 0.25, %v689_v52  ;;  %v691_v54 = vpop.f32.mrb[18].mxu1 }
 0x3ad   : > { %v2007_v55 = vmul.f32 0.25, %v691_v54  ;;  %v693_v56 = vpop.f32.mrb[19].mxu1 }
 0x3ae   : > { %v2009_v57 = vmul.f32 0.25, %v693_v56  ;;  %v894_v58 = vmax.f32 %v2003_v51, %v2005_v53 }
 0x3b0   : > { %895 = vmax.xlane.f32.xlu0 %v894_v58  ;;  %v897_v59 = vmax.f32 %v2007_v55, %v2009_v57 }
 0x3b2   : > { %898 = vmax.xlane.f32.xlu1 %v897_v59  ;;  %v697_v60 = vpop.f32.mrb[20].mxu1 }
 0x3b3   : > { %v2015_v61 = vmul.f32 0.25, %v697_v60  ;;  %v699_v62 = vpop.f32.mrb[21].mxu1 }
 0x3b4   : > { %v2017_v63 = vmul.f32 0.25, %v699_v62  ;;  %v701_v0 = vpop.f32.mrb[22].mxu1 }
 0x3b5   : > { %v2019_v2 = vmul.f32 0.25, %v701_v0  ;;  %v703_v3 = vpop.f32.mrb[23].mxu1 }
 0x3b6   : > { %v2021_v4 = vmul.f32 0.25, %v703_v3  ;;  %v900_v9 = vmax.f32 %v2015_v61, %v2017_v63 }
 0x3b8   : > { %901 = vmax.xlane.f32.xlu0 %v900_v9  ;;  %v903_v10 = vmax.f32 %v2019_v2, %v2021_v4 }
 0x3ba   : > { %904 = vmax.xlane.f32.xlu1 %v903_v10  ;;  %v707_v11 = vpop.f32.mrb[24].mxu1 }
 0x3bb   : > { %v2027_v13 = vmul.f32 0.25, %v707_v11  ;;  %v709_v15 = vpop.f32.mrb[25].mxu1 }
 0x3bc   : > { %v2029_v17 = vmul.f32 0.25, %v709_v15  ;;  %v711_v19 = vpop.f32.mrb[26].mxu1 }
 0x3bd   : > { %v2031_v20 = vmul.f32 0.25, %v711_v19  ;;  %v713_v1 = vpop.f32.mrb[27].mxu1 }
 0x3be   : > { %v2033_v22 = vmul.f32 0.25, %v713_v1  ;;  %v906_v24 = vmax.f32 %v2027_v13, %v2029_v17 }
 0x3c0   : > { %907 = vmax.xlane.f32.xlu0 %v906_v24  ;;  %v909_v26 = vmax.f32 %v2031_v20, %v2033_v22 }
 0x3c2   : > { %910 = vmax.xlane.f32.xlu1 %v909_v26  ;;  %v717_v28 = vpop.f32.mrb[28].mxu1 }
 0x3c3   : > { %v2039_v29 = vmul.f32 0.25, %v717_v28  ;;  %v719_v30 = vpop.f32.mrb[29].mxu1 }
 0x3c4   : > { %v2041_v32 = vmul.f32 0.25, %v719_v30  ;;  %v721_v34 = vpop.f32.mrb[30].mxu1 }
 0x3c5   : > { %v2043_v36 = vmul.f32 0.25, %v721_v34  ;;  %v723_v38 = vpop.f32.mrb[31].mxu1 }
 0x3c6   : > { %v2045_v39 = vmul.f32 0.25, %v723_v38  ;;  %v912_v40 = vmax.f32 %v2039_v29, %v2041_v32 }
 0x3c8   : > { %913 = vmax.xlane.f32.xlu0 %v912_v40  ;;  %v915_v42 = vmax.f32 %v2043_v36, %v2045_v39 }
 0x3ca   : > { %916 = vmax.xlane.f32.xlu1 %v915_v42  ;;  %v727_v44 = vpop.f32.mrb[32].mxu1 }
 0x3cb   : > { %v2051_v46 = vmul.f32 0.25, %v727_v44  ;;  %v729_v48 = vpop.f32.mrb[33].mxu1 }
 0x3cc   : > { %v2053_v49 = vmul.f32 0.25, %v729_v48  ;;  %v731_v50 = vpop.f32.mrb[34].mxu1 }
 0x3cd   : > { %v2055_v52 = vmul.f32 0.25, %v731_v50  ;;  %v733_v54 = vpop.f32.mrb[35].mxu1 }
 0x3ce   : > { %v2057_v56 = vmul.f32 0.25, %v733_v54  ;;  %v918_v58 = vmax.f32 %v2051_v46, %v2053_v49 }
 0x3d0   : > { %2589 = vst [vmem:[#allocation6_spill] sm:$0xff] %v2057_v56  ;;  %919 = vmax.xlane.f32.xlu0 %v918_v58  ;;  %v921_v59 = vmax.f32 %v2055_v52, %v2057_v56 }
 0x3d2   : > { %922 = vmax.xlane.f32.xlu1 %v921_v59  ;;  %v737_v60 = vpop.f32.mrb[36].mxu1 }
 0x3d3   : > { %v2063_v62 = vmul.f32 0.25, %v737_v60  ;;  %v739_v0 = vpop.f32.mrb[37].mxu1 }
 0x3d4   : > { %v2065_v3 = vmul.f32 0.25, %v739_v0  ;;  %v741_v9 = vpop.f32.mrb[38].mxu1 }
 0x3d5   : > { %2590 = vst [vmem:[#allocation7_spill] sm:$0xff] %v2063_v62  ;;  %v2067_v10 = vmul.f32 0.25, %v741_v9  ;;  %v743_v11 = vpop.f32.mrb[39].mxu1 }
 0x3d6   : > { %2591 = vst [vmem:[#allocation8_spill] sm:$0xff] %v2065_v3  ;;  %v2069_v15 = vmul.f32 0.25, %v743_v11  ;;  %v924_v19 = vmax.f32 %v2063_v62, %v2065_v3 }
 0x3d7   : > { %2592 = vst [vmem:[#allocation9_spill] sm:$0xff] %v2067_v10 }
 0x3d8   : > { %2593 = vst [vmem:[#allocation10_spill] sm:$0xff] %v2069_v15  ;;  %925 = vmax.xlane.f32.xlu0 %v924_v19  ;;  %v927_v1 = vmax.f32 %v2067_v10, %v2069_v15 }
 0x3da   : > { %928 = vmax.xlane.f32.xlu1 %v927_v1  ;;  %v747_v24 = vpop.f32.mrb[40].mxu1 }
 0x3db   : > { %v2075_v26 = vmul.f32 0.25, %v747_v24  ;;  %v749_v28 = vpop.f32.mrb[41].mxu1 }
 0x3dc   : > { %v2077_v30 = vmul.f32 0.25, %v749_v28  ;;  %v751_v34 = vpop.f32.mrb[42].mxu1 }
 0x3dd   : > { %2594 = vst [vmem:[#allocation11_spill] sm:$0xff] %v2075_v26  ;;  %v2079_v38 = vmul.f32 0.25, %v751_v34  ;;  %v753_v40 = vpop.f32.mrb[43].mxu1 }
 0x3de   : > { %2595 = vst [vmem:[#allocation12_spill] sm:$0xff] %v2077_v30  ;;  %v2081_v42 = vmul.f32 0.25, %v753_v40  ;;  %v930_v44 = vmax.f32 %v2075_v26, %v2077_v30 }
 0x3df   : > { %2596 = vst [vmem:[#allocation13_spill] sm:$0xff] %v2079_v38 }
 0x3e0   : > { %2597 = vst [vmem:[#allocation14_spill] sm:$0xff] %v2081_v42  ;;  %931 = vmax.xlane.f32.xlu0 %v930_v44  ;;  %v933_v48 = vmax.f32 %v2079_v38, %v2081_v42 }
 0x3e2   : > { %934 = vmax.xlane.f32.xlu1 %v933_v48  ;;  %v757_v50 = vpop.f32.mrb[44].mxu1 }
 0x3e3   : > { %v2087_v54 = vmul.f32 0.25, %v757_v50  ;;  %v759_v58 = vpop.f32.mrb[45].mxu1 }
 0x3e4   : > { %v2089_v59 = vmul.f32 0.25, %v759_v58  ;;  %v761_v60 = vpop.f32.mrb[46].mxu1 }
 0x3e5   : > { %2598 = vst [vmem:[#allocation15_spill] sm:$0xff] %v2087_v54  ;;  %v2091_v0 = vmul.f32 0.25, %v761_v60  ;;  %v763_v9 = vpop.f32.mrb[47].mxu1 }
 0x3e6   : > { %2599 = vst [vmem:[#allocation16_spill] sm:$0xff] %v2089_v59  ;;  %v2093_v11 = vmul.f32 0.25, %v763_v9  ;;  %v936_v19 = vmax.f32 %v2087_v54, %v2089_v59 }
 0x3e7   : > { %2600 = vst [vmem:[#allocation17_spill] sm:$0xff] %v2091_v0 }
 0x3e8   : > { %2601 = vst [vmem:[#allocation18_spill] sm:$0xff] %v2093_v11  ;;  %937 = vmax.xlane.f32.xlu0 %v936_v19  ;;  %v939_v1 = vmax.f32 %v2091_v0, %v2093_v11  ;;  %v1608_v11 = vld [vmem:[%s2549_s3 + $0x10] sm:$0xff]  }
 0x3e9   : > { %1571 = vmatmul.mubr.msk.bf16.gmra.mrb[8].mxu0 %vm410_vm0, %v1608_v11 }
 0x3ea   : > { %940 = vmax.xlane.f32.xlu1 %v939_v1  ;;  %v767_v24 = vpop.f32.mrb[48].mxu1 }
 0x3eb   : > { %v769_v28 = vpop.f32.mrb[49].mxu1 }
 0x3ec   : > { %v771_v34 = vpop.f32.mrb[50].mxu1 }
 0x3ed   : > { %v773_v40 = vpop.f32.mrb[51].mxu1 }
 0x3f2   : > { %v2099_v44 = vpop.f32.mrb[52].mxu1 }
 0x3f3   : > { %v2101_v48 = vpop.f32.mrb[53].mxu1 }
 0x3f4   : > { %v2103_v50 = vpop.f32.mrb[54].mxu1 }
 0x3f5   : > { %v2105_v58 = vpop.f32.mrb[55].mxu1 }
 0x3fa   : > { %v2107_v60 = vpop.f32.mrb[56].mxu1 }
 0x3fb   : > { %v2109_v9 = vpop.f32.mrb[57].mxu1 }
 0x3fc   : > { %v2111_v19 = vpop.f32.mrb[58].mxu1 }
 0x3fd   : > { %v2113_v8 = vpop.f32.mrb[59].mxu1 }
 0x402   : > { %v2115_v1 = vpop.f32.mrb[60].mxu1 }
 0x403   : > { %v2117_v7 = vpop.f32.mrb[61].mxu1 }
 0x404   : > { %v2119_v6 = vpop.f32.mrb[62].mxu1 }
 0x405   : > { %v2121_v5 = vpop.f32.mrb[63].mxu1 }
 0x41d   : > { %v872_v0 = vpop.xlane.xlu0 %871 }
 0x41e   : > { %v966_v59 = vsub.f32 %v1955_v12, %v872_v0  ;;  %v967_v54 = vsub.f32 %v1957_v14, %v872_v0 }
 0x41f   : > { %v875_v42 = vpop.xlane.xlu1 %874 }
 0x420   : > { %v1030_v38 = vmul.f32 1.442695, %v966_v59  ;;  %v1032_v30 = vmul.f32 1.442695, %v967_v54  ;;  %v968_v26 = vsub.f32 %v1959_v16, %v875_v42  ;;  %v969_v15 = vsub.f32 %v1961_v18, %v875_v42 }
 0x422   : > { %1614 = vpow2.f32 %v1030_v38  ;;  %v1034_v10 = vmul.f32 1.442695, %v968_v26  ;;  %v1036_v3 = vmul.f32 1.442695, %v969_v15 }
 0x423   : > { %1616 = vpow2.f32 %v1032_v30 }
 0x424   : > { %1618 = vpow2.f32 %v1034_v10  ;;  %v2139_v10 = vmul.f32 0.25, %v767_v24 }
 0x425   : > { %1620 = vpow2.f32 %v1036_v3  ;;  %v878_v62 = vpop.xlane.xlu0 %877 }
 0x426   : > { %v970_v11 = vsub.f32 %v1967_v21, %v878_v62  ;;  %v971_v12 = vsub.f32 %v1969_v23, %v878_v62  ;;  %v2143_v62 = vmul.f32 0.25, %v769_v28  ;;  %v2155_v28 = vmul.f32 0.25, %v773_v40 }
 0x427   : > { %v881_v56 = vpop.xlane.xlu1 %880 }
 0x428   : > { %v1038_v14 = vmul.f32 1.442695, %v970_v11  ;;  %v1040_v0 = vmul.f32 1.442695, %v971_v12  ;;  %v972_v54 = vsub.f32 %v1971_v25, %v881_v56  ;;  %v973_v16 = vsub.f32 %v1973_v27, %v881_v56 }
 0x429   : > { %v2153_v12 = vmul.f32 0.25, %v771_v34 }
 0x42a   : > { %1622 = vpow2.f32 %v1038_v14  ;;  %v1042_v18 = vmul.f32 1.442695, %v972_v54  ;;  %v1044_v38 = vmul.f32 1.442695, %v973_v16 }
 0x42b   : > { %1624 = vpow2.f32 %v1040_v0  ;;  %v942_v0 = vmax.f32 %v2139_v10, %v2143_v62  ;;  %v945_v40 = vmax.f32 %v2153_v12, %v2155_v28 }
 0x42c   : > { %v2135_v15 = vpop.eup %1614  ;;  %1626 = vpow2.f32 %v1042_v18  ;;  %v2173_v18 = vmul.f32 0.25, %v2101_v48  ;;  %v2184_v48 = vmul.f32 0.25, %v2103_v50  ;;  %v2198_v50 = vmul.f32 0.25, %v2107_v60 }
 0x42d   : > { %v2137_v3 = vpop.eup %1616  ;;  %1628 = vpow2.f32 %v1044_v38  ;;  %v884_v21 = vpop.xlane.xlu0 %883 }
 0x42e   : > { %v2141_v23 = vpop.eup %1618  ;;  %v974_v25 = vsub.f32 %v1979_v31, %v884_v21  ;;  %v975_v27 = vsub.f32 %v1981_v33, %v884_v21  ;;  %v1158_v56 = vadd.f32 %v2137_v3, %v2135_v15 }
 0x42f   : > { %v2149_v26 = vpop.eup %1620  ;;  %v887_v30 = vpop.xlane.xlu1 %886 }
 0x430   : > { %v1046_v42 = vmul.f32 1.442695, %v974_v25  ;;  %v1048_v59 = vmul.f32 1.442695, %v975_v27  ;;  %1159 = vadd.xlane.f32.xlu0 %v1158_v56  ;;  %v976_v24 = vsub.f32 %v1983_v35, %v887_v30  ;;  %v977_v11 = vsub.f32 %v1985_v37, %v887_v30 }
 0x431   : > { %v1161_v31 = vadd.f32 %v2149_v26, %v2141_v23  ;;  %v2166_v37 = vmul.f32 0.25, %v2099_v44 }
 0x432   : > { %1630 = vpow2.f32 %v1046_v42  ;;  %v1050_v33 = vmul.f32 1.442695, %v976_v24  ;;  %v1052_v14 = vmul.f32 1.442695, %v977_v11 }
 0x433   : > { %1632 = vpow2.f32 %v1048_v59  ;;  %1162 = vadd.xlane.f32.xlu1 %v1161_v31  ;;  %v948_v31 = vmax.f32 %v2166_v37, %v2173_v18 }
 0x434   : > { %v2161_v54 = vpop.eup %1622  ;;  %1634 = vpow2.f32 %v1050_v33  ;;  %943 = vmax.xlane.f32.xlu0 %v942_v0  ;;  %v2205_v0 = vmul.f32 0.25, %v2109_v9  ;;  %v2216_v9 = vmul.f32 0.25, %v2111_v19 }
 0x435   : > { %v2163_v35 = vpop.eup %1624  ;;  %1636 = vpow2.f32 %v1052_v14  ;;  %v890_v34 = vpop.xlane.xlu0 %889 }
 0x436   : > { %v2170_v16 = vpop.eup %1626  ;;  %v978_v38 = vsub.f32 %v1991_v41, %v890_v34  ;;  %v979_v21 = vsub.f32 %v1993_v43, %v890_v34  ;;  %v1164_v25 = vadd.f32 %v2163_v35, %v2161_v54  ;;  %v2187_v41 = vmul.f32 0.25, %v2105_v58 }
 0x437   : > { %v2179_v27 = vpop.eup %1628  ;;  %946 = vmax.xlane.f32.xlu1 %v945_v40  ;;  %v893_v44 = vpop.xlane.xlu1 %892 }
 0x438   : > { %v1054_v56 = vmul.f32 1.442695, %v978_v38  ;;  %v1056_v30 = vmul.f32 1.442695, %v979_v21  ;;  %1165 = vadd.xlane.f32.xlu0 %v1164_v25  ;;  %v980_v42 = vsub.f32 %v1995_v45, %v893_v44  ;;  %v981_v59 = vsub.f32 %v1997_v47, %v893_v44 }
 0x439   : > { %v1167_v43 = vadd.f32 %v2179_v27, %v2170_v16  ;;  %v951_v33 = vmax.f32 %v2184_v48, %v2187_v41 }
 0x43a   : > { %1638 = vpow2.f32 %v1054_v56  ;;  %v1058_v24 = vmul.f32 1.442695, %v980_v42  ;;  %v1060_v11 = vmul.f32 1.442695, %v981_v59 }
 0x43b   : > { %1640 = vpow2.f32 %v1056_v30  ;;  %1168 = vadd.xlane.f32.xlu1 %v1167_v43  ;;  %v954_v43 = vmax.f32 %v2198_v50, %v2205_v0 }
 0x43c   : > { %v2193_v45 = vpop.eup %1630  ;;  %1642 = vpow2.f32 %v1058_v24  ;;  %949 = vmax.xlane.f32.xlu0 %v948_v31  ;;  %v2237_v31 = vmul.f32 0.25, %v2117_v7  ;;  %v2248_v7 = vmul.f32 0.25, %v2119_v6 }
 0x43d   : > { %v2195_v47 = vpop.eup %1632  ;;  %1644 = vpow2.f32 %v1060_v11  ;;  %v896_v58 = vpop.xlane.xlu0 %895 }
 0x43e   : > { %v2202_v14 = vpop.eup %1634  ;;  %v982_v34 = vsub.f32 %v2003_v51, %v896_v58  ;;  %v983_v40 = vsub.f32 %v2005_v53, %v896_v58  ;;  %v1170_v38 = vadd.f32 %v2195_v47, %v2193_v45  ;;  %v2219_v51 = vmul.f32 0.25, %v2113_v8 }
 0x43f   : > { %v2211_v21 = vpop.eup %1636  ;;  %952 = vmax.xlane.f32.xlu1 %v951_v33  ;;  %v899_v60 = vpop.xlane.xlu1 %898  ;;  %v2230_v8 = vmul.f32 0.25, %v2115_v1 }
 0x440   : > { %v1062_v25 = vmul.f32 1.442695, %v982_v34  ;;  %v1064_v44 = vmul.f32 1.442695, %v983_v40  ;;  %1171 = vadd.xlane.f32.xlu0 %v1170_v38  ;;  %v984_v56 = vsub.f32 %v2007_v55, %v899_v60  ;;  %v985_v30 = vsub.f32 %v2009_v57, %v899_v60 }
 0x441   : > { %v1173_v53 = vadd.f32 %v2211_v21, %v2202_v14  ;;  %v957_v24 = vmax.f32 %v2216_v9, %v2219_v51 }
 0x442   : > { %1646 = vpow2.f32 %v1062_v25  ;;  %v1066_v42 = vmul.f32 1.442695, %v984_v56  ;;  %v1068_v59 = vmul.f32 1.442695, %v985_v30 }
 0x443   : > { %1648 = vpow2.f32 %v1064_v44  ;;  %1174 = vadd.xlane.f32.xlu1 %v1173_v53  ;;  %v960_v53 = vmax.f32 %v2230_v8, %v2237_v31 }
 0x444   : > { %v2225_v55 = vpop.eup %1638  ;;  %1650 = vpow2.f32 %v1066_v42  ;;  %955 = vmax.xlane.f32.xlu0 %v954_v43 }
 0x445   : > { %v2227_v57 = vpop.eup %1640  ;;  %1652 = vpow2.f32 %v1068_v59  ;;  %v902_v19 = vpop.xlane.xlu0 %901 }
 0x446   : > { %v2234_v11 = vpop.eup %1642  ;;  %v986_v58 = vsub.f32 %v2015_v61, %v902_v19  ;;  %v987_v33 = vsub.f32 %v2017_v63, %v902_v19  ;;  %v1176_v34 = vadd.f32 %v2227_v57, %v2225_v55  ;;  %v2251_v61 = vmul.f32 0.25, %v2121_v5 }
 0x447   : > { %v2243_v40 = vpop.eup %1644  ;;  %958 = vmax.xlane.f32.xlu1 %v957_v24  ;;  %v905_v1 = vpop.xlane.xlu1 %904 }
 0x448   : > { %v1070_v38 = vmul.f32 1.442695, %v986_v58  ;;  %v1072_v60 = vmul.f32 1.442695, %v987_v33  ;;  %1177 = vadd.xlane.f32.xlu0 %v1176_v34  ;;  %v988_v25 = vsub.f32 %v2019_v2, %v905_v1  ;;  %v989_v44 = vsub.f32 %v2021_v4, %v905_v1 }
 0x449   : > { %v1179_v63 = vadd.f32 %v2243_v40, %v2234_v11  ;;  %v963_v4 = vmax.f32 %v2248_v7, %v2251_v61 }
 0x44a   : > { %1654 = vpow2.f32 %v1070_v38  ;;  %v1074_v56 = vmul.f32 1.442695, %v988_v25  ;;  %v1076_v30 = vmul.f32 1.442695, %v989_v44 }
 0x44b   : > { %1656 = vpow2.f32 %v1072_v60  ;;  %1180 = vadd.xlane.f32.xlu1 %v1179_v63 }
 0x44c   : > { %v2257_v2 = vpop.eup %1646  ;;  %1658 = vpow2.f32 %v1074_v56  ;;  %961 = vmax.xlane.f32.xlu0 %v960_v53 }
 0x44d   : > { %v2259_v6 = vpop.eup %1648  ;;  %1660 = vpow2.f32 %v1076_v30  ;;  %v908_v5 = vpop.xlane.xlu0 %907 }
 0x44e   : > { %v2263_v42 = vpop.eup %1650  ;;  %v990_v59 = vsub.f32 %v2027_v13, %v908_v5  ;;  %v991_v43 = vsub.f32 %v2029_v17, %v908_v5  ;;  %v1182_v19 = vadd.f32 %v2259_v6, %v2257_v2 }
 0x44f   : > { %v2269_v24 = vpop.eup %1652  ;;  %964 = vmax.xlane.f32.xlu1 %v963_v4  ;;  %v911_v58 = vpop.xlane.xlu1 %910 }
 0x450   : > { %v1078_v33 = vmul.f32 1.442695, %v990_v59  ;;  %v1080_v34 = vmul.f32 1.442695, %v991_v43  ;;  %1183 = vadd.xlane.f32.xlu0 %v1182_v19  ;;  %v992_v1 = vsub.f32 %v2031_v20, %v911_v58  ;;  %v993_v38 = vsub.f32 %v2033_v22, %v911_v58 }
 0x451   : > { %v1185_v60 = vadd.f32 %v2269_v24, %v2263_v42 }
 0x452   : > { %1662 = vpow2.f32 %v1078_v33  ;;  %v1082_v13 = vmul.f32 1.442695, %v992_v1  ;;  %v1084_v17 = vmul.f32 1.442695, %v993_v38 }
 0x453   : > { %1664 = vpow2.f32 %v1080_v34  ;;  %1186 = vadd.xlane.f32.xlu1 %v1185_v60 }
 0x454   : > { %v2275_v25 = vpop.eup %1654  ;;  %1666 = vpow2.f32 %v1082_v13 }
 0x455   : > { %v2277_v44 = vpop.eup %1656  ;;  %1668 = vpow2.f32 %v1084_v17  ;;  %v914_v63 = vpop.xlane.xlu0 %913 }
 0x456   : > { %v2279_v56 = vpop.eup %1658  ;;  %v994_v20 = vsub.f32 %v2039_v29, %v914_v63  ;;  %v995_v22 = vsub.f32 %v2041_v32, %v914_v63  ;;  %v1188_v30 = vadd.f32 %v2277_v44, %v2275_v25 }
 0x457   : > { %v2285_v53 = vpop.eup %1660  ;;  %v917_v5 = vpop.xlane.xlu1 %916 }
 0x458   : > { %v1086_v4 = vmul.f32 1.442695, %v994_v20  ;;  %v1088_v59 = vmul.f32 1.442695, %v995_v22  ;;  %1189 = vadd.xlane.f32.xlu0 %v1188_v30  ;;  %v996_v43 = vsub.f32 %v2043_v36, %v917_v5  ;;  %v997_v19 = vsub.f32 %v2045_v39, %v917_v5  ;;  %v2602_v30 = vld [vmem:[#allocation6_spill] sm:$0xff] }
 0x459   : > { %v1191_v58 = vadd.f32 %v2285_v53, %v2279_v56 }
 0x45a   : > { %1670 = vpow2.f32 %v1086_v4  ;;  %v1090_v29 = vmul.f32 1.442695, %v996_v43  ;;  %v1092_v33 = vmul.f32 1.442695, %v997_v19 }
 0x45b   : > { %1672 = vpow2.f32 %v1088_v59  ;;  %1192 = vadd.xlane.f32.xlu1 %v1191_v58 }
 0x45c   : > { %v2291_v32 = vpop.eup %1662  ;;  %1674 = vpow2.f32 %v1090_v29 }
 0x45d   : > { %v2293_v34 = vpop.eup %1664  ;;  %1676 = vpow2.f32 %v1092_v33  ;;  %v920_v1 = vpop.xlane.xlu0 %919  ;;  %v2606_v33 = vld [vmem:[#allocation8_spill] sm:$0xff] }
 0x45e   : > { %v2295_v38 = vpop.eup %1666  ;;  %v998_v36 = vsub.f32 %v2051_v46, %v920_v1  ;;  %v999_v39 = vsub.f32 %v2053_v49, %v920_v1  ;;  %v1194_v60 = vadd.f32 %v2293_v34, %v2291_v32 }
 0x45f   : > { %v2301_v13 = vpop.eup %1668  ;;  %v923_v17 = vpop.xlane.xlu1 %922 }
 0x460   : > { %v1094_v63 = vmul.f32 1.442695, %v998_v36  ;;  %v1096_v20 = vmul.f32 1.442695, %v999_v39  ;;  %1195 = vadd.xlane.f32.xlu0 %v1194_v60  ;;  %v1000_v22 = vsub.f32 %v2055_v52, %v923_v17  ;;  %v1001_v5 = vsub.f32 %v2602_v30, %v923_v17  ;;  %v2605_v52 = vld [vmem:[#allocation7_spill] sm:$0xff]  ;;  %v2609_v30 = vld [vmem:[#allocation10_spill] sm:$0xff] }
 0x461   : > { %v1197_v4 = vadd.f32 %v2301_v13, %v2295_v38 }
 0x462   : > { %1678 = vpow2.f32 %v1094_v63  ;;  %v1098_v46 = vmul.f32 1.442695, %v1000_v22  ;;  %v1100_v59 = vmul.f32 1.442695, %v1001_v5 }
 0x463   : > { %1680 = vpow2.f32 %v1096_v20  ;;  %1198 = vadd.xlane.f32.xlu1 %v1197_v4  ;;  %v2608_v20 = vld [vmem:[#allocation9_spill] sm:$0xff] }
 0x464   : > { %v2307_v49 = vpop.eup %1670  ;;  %1682 = vpow2.f32 %v1098_v46 }
 0x465   : > { %2603 = vst [vmem:[#allocation6_spill] sm:$0xff] %v2307_v49  ;;  %v2309_v43 = vpop.eup %1672  ;;  %1684 = vpow2.f32 %v1100_v59  ;;  %v926_v19 = vpop.xlane.xlu0 %925 }
 0x466   : > { %v2311_v58 = vpop.eup %1674  ;;  %v1002_v29 = vsub.f32 %v2605_v52, %v926_v19  ;;  %v1003_v1 = vsub.f32 %v2606_v33, %v926_v19  ;;  %v1200_v36 = vadd.f32 %v2309_v43, %v2307_v49  ;;  %v2617_v49 = vld [vmem:[#allocation14_spill] sm:$0xff] }
 0x467   : > { %2604 = vst [vmem:[#allocation19_spill] sm:$0xff] %v2311_v58  ;;  %v2317_v39 = vpop.eup %1676  ;;  %v929_v60 = vpop.xlane.xlu1 %928 }
 0x468   : > { %2607 = vst [vmem:[#allocation7_spill] sm:$0xff] %v2317_v39  ;;  %v1102_v17 = vmul.f32 1.442695, %v1002_v29  ;;  %v1104_v63 = vmul.f32 1.442695, %v1003_v1  ;;  %1201 = vadd.xlane.f32.xlu0 %v1200_v36  ;;  %v1004_v22 = vsub.f32 %v2608_v20, %v929_v60  ;;  %v1005_v5 = vsub.f32 %v2609_v30, %v929_v60  ;;  %v2613_v1 = vld [vmem:[#allocation11_spill] sm:$0xff] }
 0x469   : > { %v1203_v4 = vadd.f32 %v2317_v39, %v2311_v58  ;;  %v2614_v60 = vld [vmem:[#allocation12_spill] sm:$0xff] }
 0x46a   : > { %1686 = vpow2.f32 %v1102_v17  ;;  %v1106_v46 = vmul.f32 1.442695, %v1004_v22  ;;  %v1108_v59 = vmul.f32 1.442695, %v1005_v5 }
 0x46b   : > { %1688 = vpow2.f32 %v1104_v63  ;;  %1204 = vadd.xlane.f32.xlu1 %v1203_v4  ;;  %v2616_v4 = vld [vmem:[#allocation13_spill] sm:$0xff] }
 0x46c   : > { %v2323_v19 = vpop.eup %1678  ;;  %1690 = vpow2.f32 %v1106_v46 }
 0x46d   : > { %2610 = vst [vmem:[#allocation8_spill] sm:$0xff] %v2323_v19  ;;  %v2325_v52 = vpop.eup %1680  ;;  %1692 = vpow2.f32 %v1108_v59  ;;  %v932_v29 = vpop.xlane.xlu0 %931 }
 0x46e   : > { %2611 = vst [vmem:[#allocation9_spill] sm:$0xff] %v2325_v52  ;;  %v2327_v33 = vpop.eup %1682  ;;  %v1006_v36 = vsub.f32 %v2613_v1, %v932_v29  ;;  %v1007_v20 = vsub.f32 %v2614_v60, %v932_v29  ;;  %v1206_v17 = vadd.f32 %v2325_v52, %v2323_v19 }
 0x46f   : > { %2612 = vst [vmem:[#allocation10_spill] sm:$0xff] %v2327_v33  ;;  %v2333_v22 = vpop.eup %1684  ;;  %v935_v63 = vpop.xlane.xlu1 %934 }
 0x470   : > { %2615 = vst [vmem:[#allocation11_spill] sm:$0xff] %v2333_v22  ;;  %v1110_v30 = vmul.f32 1.442695, %v1006_v36  ;;  %v1112_v5 = vmul.f32 1.442695, %v1007_v20  ;;  %1207 = vadd.xlane.f32.xlu0 %v1206_v17  ;;  %v1008_v46 = vsub.f32 %v2616_v4, %v935_v63  ;;  %v1009_v59 = vsub.f32 %v2617_v49, %v935_v63  ;;  %v2618_v17 = vld [vmem:[#allocation15_spill] sm:$0xff] }
 0x471   : > { %v1209_v58 = vadd.f32 %v2333_v22, %v2327_v33  ;;  %v2619_v49 = vld [vmem:[#allocation16_spill] sm:$0xff]  ;;  %v2621_v33 = vld [vmem:[#allocation18_spill] sm:$0xff] }
 0x472   : > { %1694 = vpow2.f32 %v1110_v30  ;;  %v1114_v1 = vmul.f32 1.442695, %v1008_v46  ;;  %v1116_v39 = vmul.f32 1.442695, %v1009_v59 }
 0x473   : > { %1696 = vpow2.f32 %v1112_v5  ;;  %1210 = vadd.xlane.f32.xlu1 %v1209_v58 }
 0x474   : > { %v2339_v29 = vpop.eup %1686  ;;  %1698 = vpow2.f32 %v1114_v1  ;;  %v2620_v1 = vld [vmem:[#allocation17_spill] sm:$0xff] }
 0x475   : > { %v2341_v60 = vpop.eup %1688  ;;  %1700 = vpow2.f32 %v1116_v39  ;;  %v938_v36 = vpop.xlane.xlu0 %937 }
 0x476   : > { %v2343_v20 = vpop.eup %1690  ;;  %v1010_v4 = vsub.f32 %v2618_v17, %v938_v36  ;;  %v1011_v63 = vsub.f32 %v2619_v49, %v938_v36  ;;  %v1212_v30 = vadd.f32 %v2341_v60, %v2339_v29 }
 0x477   : > { %v2349_v46 = vpop.eup %1692  ;;  %v941_v5 = vpop.xlane.xlu1 %940 }
 0x478   : > { %v1118_v58 = vmul.f32 1.442695, %v1010_v4  ;;  %v1120_v59 = vmul.f32 1.442695, %v1011_v63  ;;  %1213 = vadd.xlane.f32.xlu0 %v1212_v30  ;;  %v1012_v19 = vsub.f32 %v2620_v1, %v941_v5  ;;  %v1013_v39 = vsub.f32 %v2621_v33, %v941_v5 }
 0x479   : > { %v1215_v22 = vadd.f32 %v2349_v46, %v2343_v20 }
 0x47a   : > { %1702 = vpow2.f32 %v1118_v58  ;;  %v1122_v17 = vmul.f32 1.442695, %v1012_v19  ;;  %v1124_v52 = vmul.f32 1.442695, %v1013_v39 }
 0x47b   : > { %1704 = vpow2.f32 %v1120_v59  ;;  %1216 = vadd.xlane.f32.xlu1 %v1215_v22 }
 0x47c   : > { %v2355_v36 = vpop.eup %1694  ;;  %1706 = vpow2.f32 %v1122_v17 }
 0x47d   : > { %2622 = vst [vmem:[#allocation12_spill] sm:$0xff] %v2355_v36  ;;  %v2357_v49 = vpop.eup %1696  ;;  %1708 = vpow2.f32 %v1124_v52 }
 0x47e   : > { %v2359_v4 = vpop.eup %1698  ;;  %v1218_v63 = vadd.f32 %v2357_v49, %v2355_v36 }
 0x47f   : > { %2623 = vst [vmem:[#allocation13_spill] sm:$0xff] %v2359_v4  ;;  %v2363_v33 = vpop.eup %1700 }
 0x480   : > { %2624 = vst [vmem:[#allocation14_spill] sm:$0xff] %v2363_v33  ;;  %1219 = vadd.xlane.f32.xlu0 %v1218_v63  ;;  %v1221_v19 = vadd.f32 %v2363_v33, %v2359_v4 }
 0x482   : > { %1222 = vadd.xlane.f32.xlu1 %v1221_v19 }
 0x484   : > { %v2367_v30 = vpop.eup %1702 }
 0x485   : > { %2625 = vst [vmem:[#allocation15_spill] sm:$0xff] %v2367_v30  ;;  %v2369_v22 = vpop.eup %1704 }
 0x486   : > { %2626 = vst [vmem:[#allocation16_spill] sm:$0xff] %v2369_v22  ;;  %v2371_v5 = vpop.eup %1706  ;;  %v1224_v52 = vadd.f32 %v2369_v22, %v2367_v30 }
 0x487   : > { %2627 = vst [vmem:[#allocation17_spill] sm:$0xff] %v2371_v5  ;;  %v2375_v58 = vpop.eup %1708 }
 0x488   : > { %2628 = vst [vmem:[#allocation18_spill] sm:$0xff] %v2375_v58  ;;  %1225 = vadd.xlane.f32.xlu0 %v1224_v52  ;;  %v1227_v59 = vadd.f32 %v2375_v58, %v2371_v5 }
 0x48a   : > { %1228 = vadd.xlane.f32.xlu1 %v1227_v59 }
 0x4bd   : > { %v1160_v1 = vpop.xlane.xlu0 %1159 }
 0x4be   : > { %1710 = vrcp.f32 %v1160_v1 }
 0x4c0   : > { %v1163_v39 = vpop.xlane.xlu1 %1162 }
 0x4c1   : > { %1712 = vrcp.f32 %v1163_v39  ;;  %v944_v17 = vpop.xlane.xlu0 %943 }
 0x4c2   : > { %v1014_v63 = vsub.f32 %v2139_v10, %v944_v17  ;;  %v1015_v19 = vsub.f32 %v2143_v62, %v944_v17 }
 0x4c4   : > { %v1126_v36 = vmul.f32 1.442695, %v1014_v63  ;;  %v1128_v4 = vmul.f32 1.442695, %v1015_v19  ;;  %v947_v33 = vpop.xlane.xlu1 %946 }
 0x4c5   : > { %v1016_v30 = vsub.f32 %v2153_v12, %v947_v33  ;;  %v1017_v52 = vsub.f32 %v2155_v28, %v947_v33  ;;  %v1166_v22 = vpop.xlane.xlu0 %1165 }
 0x4c6   : > { %1714 = vpow2.f32 %v1126_v36 }
 0x4c7   : > { %1716 = vpow2.f32 %v1128_v4  ;;  %v1130_v59 = vmul.f32 1.442695, %v1016_v30  ;;  %v1132_v5 = vmul.f32 1.442695, %v1017_v52 }
 0x4c8   : > { %v1711_v1 = vpop.eup %1710  ;;  %1718 = vrcp.f32 %v1166_v22  ;;  %v1169_v39 = vpop.xlane.xlu1 %1168 }
 0x4c9   : > { %1720 = vpow2.f32 %v1130_v59  ;;  %v950_v58 = vpop.xlane.xlu0 %949  ;;  %v1287_v12 = vmul.f32 %v1711_v1, %v2137_v3  ;;  %v1286_v28 = vmul.f32 %v1711_v1, %v2135_v15 }
 0x4ca   : > { %1722 = vpow2.f32 %v1132_v5  ;;  %v1018_v10 = vsub.f32 %v2166_v37, %v950_v58  ;;  %v1019_v62 = vsub.f32 %v2173_v18, %v950_v58 }
 0x4cb   : > { %v1713_v17 = vpop.eup %1712  ;;  %1724 = vrcp.f32 %v1169_v39 }
 0x4cc   : > { %v1134_v36 = vmul.f32 1.442695, %v1018_v10  ;;  %v1136_v4 = vmul.f32 1.442695, %v1019_v62  ;;  %v953_v33 = vpop.xlane.xlu1 %952  ;;  %v1289_v30 = vmul.f32 %v1713_v17, %v2149_v26  ;;  %v1288_v22 = vmul.f32 %v1713_v17, %v2141_v23 }
 0x4cd   : > { %v1020_v63 = vsub.f32 %v2184_v48, %v953_v33  ;;  %v1021_v5 = vsub.f32 %v2187_v41, %v953_v33  ;;  %v1172_v37 = vpop.xlane.xlu0 %1171 }
 0x4ce   : > { %1726 = vpow2.f32 %v1134_v36  ;;  %v1353_v18 = vpack.c.bf16 %v1289_v30, %v1287_v12  ;;  %v1352_v58 = vpack.c.bf16 %v1288_v22, %v1286_v28 }
 0x4cf   : > { %1728 = vpow2.f32 %v1136_v4  ;;  %v1138_v19 = vmul.f32 1.442695, %v1020_v63  ;;  %v1140_v3 = vmul.f32 1.442695, %v1021_v5 }
 0x4d0   : > { %v2391_v52 = vpop.eup %1714  ;;  %1730 = vrcp.f32 %v1172_v37  ;;  %1384 = vmatprep.subr.bf16.mxu0 %v1353_v18  ;;  %v1175_v15 = vpop.xlane.xlu1 %1174 }
 0x4d1   : > { %v2393_v59 = vpop.eup %1716  ;;  %1732 = vpow2.f32 %v1138_v19  ;;  %1385 = vmatpush1.bf16.xpose.msra.mxu0 %v1352_v58  ;;  %v956_v23 = vpop.xlane.xlu0 %955 }
 0x4d2   : > { %v1719_v26 = vpop.eup %1718  ;;  %1734 = vpow2.f32 %v1140_v3  ;;  %v1022_v48 = vsub.f32 %v2198_v50, %v956_v23  ;;  %v1023_v41 = vsub.f32 %v2205_v0, %v956_v23  ;;  %v1230_v1 = vadd.f32 %v2393_v59, %v2391_v52 }
 0x4d3   : > { %v2399_v39 = vpop.eup %1720  ;;  %1736 = vrcp.f32 %v1175_v15  ;;  %v1291_v33 = vmul.f32 %v1719_v26, %v2163_v35  ;;  %v1290_v22 = vmul.f32 %v1719_v26, %v2161_v54 }
 0x4d4   : > { %v2401_v10 = vpop.eup %1722  ;;  %v1142_v62 = vmul.f32 1.442695, %v1022_v48  ;;  %v1144_v17 = vmul.f32 1.442695, %v1023_v41  ;;  %1231 = vadd.xlane.f32.xlu0 %v1230_v1  ;;  %v959_v12 = vpop.xlane.xlu1 %958 }
 0x4d5   : > { %v1725_v28 = vpop.eup %1724  ;;  %v1024_v36 = vsub.f32 %v2216_v9, %v959_v12  ;;  %v1025_v4 = vsub.f32 %v2219_v51, %v959_v12  ;;  %v1178_v50 = vpop.xlane.xlu0 %1177  ;;  %v1233_v0 = vadd.f32 %v2401_v10, %v2399_v39 }
 0x4d6   : > { %1738 = vpow2.f32 %v1142_v62  ;;  %v1293_v30 = vmul.f32 %v1725_v28, %v2179_v27  ;;  %v1292_v63 = vmul.f32 %v1725_v28, %v2170_v16 }
 0x4d7   : > { %1740 = vpow2.f32 %v1144_v17  ;;  %v1146_v5 = vmul.f32 1.442695, %v1024_v36  ;;  %v1148_v37 = vmul.f32 1.442695, %v1025_v4  ;;  %1234 = vadd.xlane.f32.xlu1 %v1233_v0 }
 0x4d8   : > { %v2411_v9 = vpop.eup %1726  ;;  %1742 = vrcp.f32 %v1178_v50  ;;  %v1355_v51 = vpack.c.bf16 %v1293_v30, %v1291_v33  ;;  %v1181_v18 = vpop.xlane.xlu1 %1180  ;;  %v1354_v58 = vpack.c.bf16 %v1292_v63, %v1290_v22 }
 0x4d9   : > { %v2413_v19 = vpop.eup %1728  ;;  %1744 = vpow2.f32 %v1146_v5  ;;  %v962_v35 = vpop.xlane.xlu0 %961 }
 0x4da   : > { %v1731_v3 = vpop.eup %1730  ;;  %1746 = vpow2.f32 %v1148_v37  ;;  %1386 = vmatprep.subr.bf16.mxu0 %v1355_v51  ;;  %v1026_v54 = vsub.f32 %v2230_v8, %v962_v35  ;;  %v1027_v16 = vsub.f32 %v2237_v31, %v962_v35  ;;  %v1236_v27 = vadd.f32 %v2413_v19, %v2411_v9 }
 0x4db   : > { %v2419_v15 = vpop.eup %1732  ;;  %1748 = vrcp.f32 %v1181_v18  ;;  %1387 = vmatpush1.bf16.xpose.msra.mxu0 %v1354_v58  ;;  %v1295_v12 = vmul.f32 %v1731_v3, %v2195_v47  ;;  %v1294_v36 = vmul.f32 %v1731_v3, %v2193_v45 }
 0x4dc   : > { %v2421_v23 = vpop.eup %1734  ;;  %v1150_v26 = vmul.f32 1.442695, %v1026_v54  ;;  %v1152_v48 = vmul.f32 1.442695, %v1027_v16  ;;  %1237 = vadd.xlane.f32.xlu0 %v1236_v27  ;;  %v965_v41 = vpop.xlane.xlu1 %964 }
 0x4dd   : > { %v1737_v1 = vpop.eup %1736  ;;  %v1028_v62 = vsub.f32 %v2248_v7, %v965_v41  ;;  %v1029_v8 = vsub.f32 %v2251_v61, %v965_v41  ;;  %v1184_v17 = vpop.xlane.xlu0 %1183  ;;  %v1239_v31 = vadd.f32 %v2421_v23, %v2419_v15 }
 0x4de   : > { %1750 = vpow2.f32 %v1150_v26  ;;  %v1297_v28 = vmul.f32 %v1737_v1, %v2211_v21  ;;  %v1296_v4 = vmul.f32 %v1737_v1, %v2202_v14 }
 0x4df   : > { %1752 = vpow2.f32 %v1152_v48  ;;  %v1154_v50 = vmul.f32 1.442695, %v1028_v62  ;;  %v1156_v0 = vmul.f32 1.442695, %v1029_v8  ;;  %1240 = vadd.xlane.f32.xlu1 %v1239_v31 }
 0x4e0   : > { %v2431_v7 = vpop.eup %1738  ;;  %1754 = vrcp.f32 %v1184_v17  ;;  %v1357_v61 = vpack.c.bf16 %v1297_v28, %v1295_v12  ;;  %v1187_v33 = vpop.xlane.xlu1 %1186  ;;  %v1356_v30 = vpack.c.bf16 %v1296_v4, %v1294_v36 }
 0x4e1   : > { %v2433_v22 = vpop.eup %1740  ;;  %1756 = vpow2.f32 %v1154_v50 }
 0x4e2   : > { %v1743_v47 = vpop.eup %1742  ;;  %1758 = vpow2.f32 %v1156_v0  ;;  %1388 = vmatprep.subr.bf16.mxu0 %v1357_v61  ;;  %v1242_v45 = vadd.f32 %v2433_v22, %v2431_v7 }
 0x4e3   : > { %v2437_v14 = vpop.eup %1744  ;;  %1760 = vrcp.f32 %v1187_v33  ;;  %1389 = vmatpush1.bf16.xpose.msra.mxu0 %v1356_v30  ;;  %v1299_v51 = vmul.f32 %v1743_v47, %v2227_v57  ;;  %v1298_v58 = vmul.f32 %v1743_v47, %v2225_v55 }
 0x4e4   : > { %v2439_v21 = vpop.eup %1746  ;;  %1243 = vadd.xlane.f32.xlu0 %v1242_v45 }
 0x4e5   : > { %v1749_v63 = vpop.eup %1748  ;;  %v1190_v5 = vpop.xlane.xlu0 %1189  ;;  %v1245_v37 = vadd.f32 %v2439_v21, %v2437_v14 }
 0x4e6   : > { %v1301_v18 = vmul.f32 %v1749_v63, %v2243_v40  ;;  %v1300_v35 = vmul.f32 %v1749_v63, %v2234_v11  ;;  %1762 = vrcp.f32 %v1190_v5 }
 0x4e7   : > { %1246 = vadd.xlane.f32.xlu1 %v1245_v37  ;;  %v2474_v37 = vpop.f32.mrb[8].mxu0 }
 0x4e8   : > { %v2447_v3 = vpop.eup %1750  ;;  %v1359_v54 = vpack.c.bf16 %v1301_v18, %v1299_v51  ;;  %v1193_v16 = vpop.xlane.xlu1 %1192  ;;  %v1358_v27 = vpack.c.bf16 %v1300_v35, %v1298_v58 }
 0x4e9   : > { %v2449_v26 = vpop.eup %1752  ;;  %1764 = vrcp.f32 %v1193_v16  ;;  %v2476_v18 = vpop.f32.mrb[9].mxu0 }
 0x4ea   : > { %v1755_v48 = vpop.eup %1754  ;;  %1390 = vmatprep.subr.bf16.mxu0 %v1359_v54  ;;  %v1248_v57 = vadd.f32 %v2449_v26, %v2447_v3 }
 0x4eb   : > { %v2453_v40 = vpop.eup %1756  ;;  %1391 = vmatpush1.bf16.xpose.msra.mxu0 %v1358_v27  ;;  %v1303_v62 = vmul.f32 %v1755_v48, %v2259_v6  ;;  %v1302_v17 = vmul.f32 %v1755_v48, %v2257_v2  ;;  %v1432_v27 = vld [vmem:[%s2552_s6 + $0x8] sm:$0xff] }
 0x4ec   : > { %v2455_v55 = vpop.eup %1758  ;;  %1249 = vadd.xlane.f32.xlu0 %v1248_v57  ;;  %v2629_v57 = vld [vmem:[#allocation7_spill] sm:$0xff] }
 0x4ed   : > { %v1761_v11 = vpop.eup %1760  ;;  %v1196_v41 = vpop.xlane.xlu0 %1195  ;;  %v1251_v1 = vadd.f32 %v2455_v55, %v2453_v40 }
 0x4ee   : > { %v1305_v8 = vmul.f32 %v1761_v11, %v2269_v24  ;;  %v1304_v31 = vmul.f32 %v1761_v11, %v2263_v42  ;;  %1766 = vrcp.f32 %v1196_v41  ;;  %v2630_v41 = vld [vmem:[#allocation19_spill] sm:$0xff] }
 0x4ef   : > { %1252 = vadd.xlane.f32.xlu1 %v1251_v1 }
 0x4f0   : > { %v1361_v12 = vpack.c.bf16 %v1305_v8, %v1303_v62  ;;  %v1199_v28 = vpop.xlane.xlu1 %1198  ;;  %v1360_v36 = vpack.c.bf16 %v1304_v31, %v1302_v17  ;;  %v1763_v4 = vpop.eup %1762  ;;  %v2631_v8 = vld [vmem:[#allocation6_spill] sm:$0xff] }
 0x4f1   : > { %1768 = vrcp.f32 %v1199_v28  ;;  %v1307_v0 = vmul.f32 %v1763_v4, %v2277_v44  ;;  %v1306_v2 = vmul.f32 %v1763_v4, %v2275_v25  ;;  %v364_v25 = vld [vmem:[%s2550_s4 + $0x28] sm:$0xff] }
 0x4f2   : > { %1392 = vmatprep.subr.bf16.mxu0 %v1361_v12 }
 0x4f3   : > { %v1765_v50 = vpop.eup %1764  ;;  %1393 = vmatpush1.bf16.xpose.msra.mxu0 %v1360_v36 }
 0x4f4   : > { %v1309_v6 = vmul.f32 %v1765_v50, %v2285_v53  ;;  %v1308_v24 = vmul.f32 %v1765_v50, %v2279_v56  ;;  %v2632_v50 = vld [vmem:[#allocation9_spill] sm:$0xff] }
 0x4f5   : > { %v1202_v61 = vpop.xlane.xlu0 %1201 }
 0x4f6   : > { %v1363_v42 = vpack.c.bf16 %v1309_v6, %v1307_v0  ;;  %1770 = vrcp.f32 %v1202_v61  ;;  %v1362_v33 = vpack.c.bf16 %v1308_v24, %v1306_v2  ;;  %v2634_v24 = vld [vmem:[#allocation10_spill] sm:$0xff] }
 0x4f8   : > { %1394 = vmatprep.subr.bf16.mxu0 %v1363_v42  ;;  %v1205_v30 = vpop.xlane.xlu1 %1204  ;;  %v1767_v47 = vpop.eup %1766  ;;  %v2635_v42 = vld [vmem:[#allocation8_spill] sm:$0xff] }
 0x4f9   : > { %1772 = vrcp.f32 %v1205_v30  ;;  %v1311_v63 = vmul.f32 %v1767_v47, %v2293_v34  ;;  %v1310_v56 = vmul.f32 %v1767_v47, %v2291_v32  ;;  %v363_v34 = vld [vmem:[%s2550_s4 + $0x20] sm:$0xff] }
 0x4fa   : > { %v1431_v32 = vld [vmem:[%s2552_s6] sm:$0xff] }
 0x4fb   : > { %v1769_v45 = vpop.eup %1768  ;;  %1395 = vmatpush1.bf16.xpose.msra.mxu0 %v1362_v33 }
 0x4fc   : > { %v1313_v44 = vmul.f32 %v1769_v45, %v2301_v13  ;;  %v1312_v53 = vmul.f32 %v1769_v45, %v2295_v38  ;;  %v2481_v13 = vpop.f32.mrb[10].mxu0 }
 0x4fd   : > { %v1208_v5 = vpop.xlane.xlu0 %1207  ;;  %v2483_v35 = vpop.f32.mrb[11].mxu0 }
 0x4fe   : > { %v1365_v51 = vpack.c.bf16 %v1313_v44, %v1311_v63  ;;  %1774 = vrcp.f32 %v1208_v5  ;;  %v1364_v58 = vpack.c.bf16 %v1312_v53, %v1310_v56 }
 0x500   : > { %392 = vperm.xlu1 %1605, %v364_v25   ;;  %1396 = vmatprep.subr.bf16.mxu0 %v1365_v51  ;;  %v1211_v38 = vpop.xlane.xlu1 %1210  ;;  %v1771_v54 = vpop.eup %1770 }
 0x501   : > { %1776 = vrcp.f32 %v1211_v38  ;;  %v1315_v48 = vmul.f32 %v1771_v54, %v2309_v43  ;;  %v1314_v17 = vmul.f32 %v1771_v54, %v2631_v8  ;;  %v2633_v43 = vld [vmem:[#allocation11_spill] sm:$0xff] }
 0x502   : > { %387 = vperm.xlu0 %1604, %v363_v34  }
 0x503   : > { %v1773_v16 = vpop.eup %1772  ;;  %1397 = vmatpush1.bf16.xpose.msra.mxu0 %v1364_v58 }
 0x504   : > { %1435 = vperm.xlu1 %1605, %v1431_v32   ;;  %v1317_v11 = vmul.f32 %v1773_v16, %v2629_v57  ;;  %v1316_v1 = vmul.f32 %v1773_v16, %v2630_v41 }
 0x505   : > { %v1214_v62 = vpop.xlane.xlu0 %1213 }
 0x506   : > { %1440 = vperm.xlu0 %1604, %v1432_v27   ;;  %v1367_v31 = vpack.c.bf16 %v1317_v11, %v1315_v48  ;;  %1778 = vrcp.f32 %v1214_v62  ;;  %v1366_v12 = vpack.c.bf16 %v1316_v1, %v1314_v17  ;;  %v2636_v27 = vld [vmem:[#allocation14_spill] sm:$0xff]  ;;  %v2637_v48 = vld [vmem:[#allocation13_spill] sm:$0xff]  ;;  %v2639_v62 = vld [vmem:[#allocation16_spill] sm:$0xff] }
 0x507   : > { %v2640_v17 = vld [vmem:[#allocation18_spill] sm:$0xff] }
 0x508   : > { %1398 = vmatprep.subr.bf16.mxu0 %v1367_v31  ;;  %v1217_v28 = vpop.xlane.xlu1 %1216  ;;  %v1775_v36 = vpop.eup %1774 }
 0x509   : > { %1780 = vrcp.f32 %v1217_v28  ;;  %v1319_v0 = vmul.f32 %v1775_v36, %v2632_v50  ;;  %v1318_v33 = vmul.f32 %v1775_v36, %v2635_v42 }
 0x50b   : > { %v1777_v4 = vpop.eup %1776  ;;  %1399 = vmatpush1.bf16.xpose.msra.mxu0 %v1366_v12  ;;  %v2641_v12 = vld [vmem:[#allocation17_spill] sm:$0xff] }
 0x50c   : > { %v1321_v6 = vmul.f32 %v1777_v4, %v2633_v43  ;;  %v1320_v61 = vmul.f32 %v1777_v4, %v2634_v24 }
 0x50d   : > { %v1220_v2 = vpop.xlane.xlu0 %1219 }
 0x50e   : > { %1782 = vrcp.f32 %v1220_v2  ;;  %v1369_v30 = vpack.c.bf16 %v1321_v6, %v1319_v0  ;;  %v1368_v45 = vpack.c.bf16 %v1320_v61, %v1318_v33 }
 0x50f   : > { %v1223_v47 = vpop.xlane.xlu1 %1222 }
 0x510   : > { %1400 = vmatprep.subr.bf16.mxu0 %v1369_v30  ;;  %1784 = vrcp.f32 %v1223_v47  ;;  %v1779_v63 = vpop.eup %1778 }
 0x511   : > { %v1323_v53 = vmul.f32 %v1779_v63, %v2341_v60  ;;  %v1322_v51 = vmul.f32 %v1779_v63, %v2339_v29 }
 0x513   : > { %v1781_v44 = vpop.eup %1780  ;;  %1401 = vmatpush1.bf16.xpose.msra.mxu0 %v1368_v45 }
 0x514   : > { %v1325_v5 = vmul.f32 %v1781_v44, %v2349_v46  ;;  %v1324_v25 = vmul.f32 %v1781_v44, %v2343_v20  ;;  %v2638_v20 = vld [vmem:[#allocation12_spill] sm:$0xff] }
 0x515   : > { %v1226_v56 = vpop.xlane.xlu0 %1225 }
 0x516   : > { %1786 = vrcp.f32 %v1226_v56  ;;  %v1371_v58 = vpack.c.bf16 %v1325_v5, %v1323_v53  ;;  %v1370_v38 = vpack.c.bf16 %v1324_v25, %v1322_v51 }
 0x517   : > { %v1229_v34 = vpop.xlane.xlu1 %1228 }
 0x518   : > { %v1783_v54 = vpop.eup %1782  ;;  %1402 = vmatprep.subr.bf16.mxu0 %v1371_v58  ;;  %1788 = vrcp.f32 %v1229_v34 }
 0x519   : > { %v1327_v16 = vmul.f32 %v1783_v54, %v2357_v49  ;;  %v1326_v11 = vmul.f32 %v1783_v54, %v2638_v20  ;;  %v2642_v49 = vld [vmem:[#allocation15_spill] sm:$0xff] }
 0x51a   : > { %v1785_v32 = vpop.eup %1784 }
 0x51b   : > { %1403 = vmatpush1.bf16.xpose.msra.mxu0 %v1370_v38  ;;  %v1329_v60 = vmul.f32 %v1785_v32, %v2636_v27  ;;  %v1328_v46 = vmul.f32 %v1785_v32, %v2637_v48 }
 0x51d   : > { %v1373_v57 = vpack.c.bf16 %v1329_v60, %v1327_v16  ;;  %v1372_v29 = vpack.c.bf16 %v1328_v46, %v1326_v11 }
 0x51f   : > { %1404 = vmatprep.subr.bf16.mxu0 %v1373_v57 }
 0x520   : > { %v1787_v41 = vpop.eup %1786 }
 0x521   : > { %v1331_v8 = vmul.f32 %v1787_v41, %v2639_v62  ;;  %v1330_v4 = vmul.f32 %v1787_v41, %v2642_v49 }
 0x522   : > { %v1789_v1 = vpop.eup %1788 }
 0x523   : > { %1405 = vmatpush1.bf16.xpose.msra.mxu0 %v1372_v29  ;;  %v1333_v31 = vmul.f32 %v1789_v1, %v2640_v17  ;;  %v1332_v28 = vmul.f32 %v1789_v1, %v2641_v12 }
 0x525   : > { %v1375_v36 = vpack.c.bf16 %v1333_v31, %v1331_v8  ;;  %v1374_v50 = vpack.c.bf16 %v1332_v28, %v1330_v4  ;;  %v2643_v4 = vld [vmem:[#allocation2_spill] sm:$0xff] }
 0x527   : > { %1406 = vmatprep.subr.bf16.mxu0 %v1375_v36 }
 0x52b   : > { %1407 = vmatpush1.bf16.xpose.msra.mxu0 %v1374_v50 }
 0x561   : > { %v1232_v0 = vpop.xlane.xlu0 %1231 }
 0x562   : > { %1790 = vrcp.f32 %v1232_v0 }
 0x564   : > { %v1235_v43 = vpop.xlane.xlu1 %1234 }
 0x565   : > { %1792 = vrcp.f32 %v1235_v43 }
 0x569   : > { %v1238_v6 = vpop.xlane.xlu0 %1237 }
 0x56a   : > { %1794 = vrcp.f32 %v1238_v6  ;;  %v2644_v6 = vld [vmem:[#allocation3_spill] sm:$0xff] }
 0x56c   : > { %v1241_v24 = vpop.xlane.xlu1 %1240  ;;  %v1791_v61 = vpop.eup %1790 }
 0x56d   : > { %1796 = vrcp.f32 %v1241_v24  ;;  %v1335_v42 = vmul.f32 %v1791_v61, %v2393_v59  ;;  %v1334_v30 = vmul.f32 %v1791_v61, %v2391_v52 }
 0x56f   : > { %v1793_v2 = vpop.eup %1792 }
 0x570   : > { %v1337_v33 = vmul.f32 %v1793_v2, %v2401_v10  ;;  %v1336_v47 = vmul.f32 %v1793_v2, %v2399_v39  ;;  %v2645_v2 = vld [vmem:[#allocation4_spill] sm:$0xff] }
 0x571   : > { %v1244_v45 = vpop.xlane.xlu0 %1243 }
 0x572   : > { %v1377_v63 = vpack.c.bf16 %v1337_v33, %v1335_v42  ;;  %v1376_v44 = vpack.c.bf16 %v1336_v47, %v1334_v30  ;;  %1798 = vrcp.f32 %v1244_v45  ;;  %v2646_v33 = vld [vmem:[#allocation5_spill] sm:$0xff] }
 0x574   : > { %1408 = vmatprep.subr.bf16.mxu0 %v1377_v63  ;;  %v1247_v53 = vpop.xlane.xlu1 %1246  ;;  %v1795_v5 = vpop.eup %1794 }
 0x575   : > { %1800 = vrcp.f32 %v1247_v53  ;;  %1409 = vmatpush1.bf16.xpose.msra.mxu0 %v1376_v44  ;;  %v1339_v56 = vmul.f32 %v1795_v5, %v2413_v19  ;;  %v1338_v10 = vmul.f32 %v1795_v5, %v2411_v9 }
 0x577   : > { %v1797_v25 = vpop.eup %1796 }
 0x578   : > { %v1341_v59 = vmul.f32 %v1797_v25, %v2421_v23  ;;  %v1340_v52 = vmul.f32 %v1797_v25, %v2419_v15 }
 0x579   : > { %v1250_v51 = vpop.xlane.xlu0 %1249 }
 0x57a   : > { %v1379_v39 = vpack.c.bf16 %v1341_v59, %v1339_v56  ;;  %v1378_v58 = vpack.c.bf16 %v1340_v52, %v1338_v10  ;;  %1802 = vrcp.f32 %v1250_v51 }
 0x57c   : > { %1410 = vmatprep.subr.bf16.mxu0 %v1379_v39  ;;  %v1253_v34 = vpop.xlane.xlu1 %1252  ;;  %v1799_v38 = vpop.eup %1798 }
 0x57d   : > { %1804 = vrcp.f32 %v1253_v34  ;;  %1411 = vmatpush1.bf16.xpose.msra.mxu0 %v1378_v58  ;;  %v1343_v16 = vmul.f32 %v1799_v38, %v2433_v22  ;;  %v1342_v23 = vmul.f32 %v1799_v38, %v2431_v7 }
 0x57f   : > { %v1801_v54 = vpop.eup %1800 }
 0x580   : > { %v393_v32 = vpop.permute.xlu1 %392  ;;  %v1345_v19 = vmul.f32 %v1801_v54, %v2439_v21  ;;  %v1344_v9 = vmul.f32 %v1801_v54, %v2437_v14 }
 0x581   : > { %v479_v15 = vadd.f32 %v2481_v13, %v393_v32  ;;  %v481_v27 = vadd.f32 %v2483_v35, %v393_v32  ;;  %v388_v60 = vpop.permute.xlu0 %387 }
 0x582   : > { %v475_v48 = vadd.f32 %v2474_v37, %v388_v60  ;;  %v477_v46 = vadd.f32 %v2476_v18, %v388_v60  ;;  %v1381_v57 = vpack.c.bf16 %v1345_v19, %v1343_v16  ;;  %v1380_v20 = vpack.c.bf16 %v1344_v9, %v1342_v23 }
 0x584   : > { %v1350_v11 = vpack.c.bf16 %v479_v15, %v475_v48  ;;  %v1351_v29 = vpack.c.bf16 %v481_v27, %v477_v46  ;;  %1412 = vmatprep.subr.bf16.mxu0 %v1381_v57  ;;  %v1803_v22 = vpop.eup %1802 }
 0x585   : > { %1413 = vmatpush1.bf16.xpose.msra.mxu0 %v1380_v20  ;;  %v1347_v14 = vmul.f32 %v1803_v22, %v2449_v26  ;;  %v1346_v13 = vmul.f32 %v1803_v22, %v2447_v3  ;;  %v1609_v26 = vld [vmem:[%s2551_s5] sm:$0xff]   ;;  %v1436_v3 = vpop.permute.xlu1 %1435  ;;  %v1441_v28 = vpop.permute.xlu0 %1440 }
 0x586   : > { %1416 = vmatprep.mubr.bf16.mxu0 %v1351_v29 }
 0x587   : > { %v1805_v7 = vpop.eup %1804 }
 0x588   : > { %v1349_v21 = vmul.f32 %v1805_v7, %v2455_v55  ;;  %v1348_v35 = vmul.f32 %v1805_v7, %v2453_v40 }
 0x58a   : > { %v1383_v37 = vpack.c.bf16 %v1349_v21, %v1347_v14  ;;  %v1382_v18 = vpack.c.bf16 %v1348_v35, %v1346_v13 }
 0x58c   : > { %1414 = vmatprep.subr.bf16.mxu0 %v1383_v37 }
 0x58d   : > { %1415 = vmatpush1.bf16.xpose.msra.mxu0 %v1382_v18 }
 0x594   : > { %1417 = vmatmul.mubr.bf16.vlgmr.msra.gmra.mrb[12].mxu0 %v1350_v11 }
 0x667   : > { %v1418_v41 = vpop.f32.mrb[12].mxu0 }
 0x668   : > { %v1420_v1 = vpop.f32.mrb[13].mxu0 }
 0x669   : > { %v1422_v62 = vpop.f32.mrb[14].mxu0 }
 0x66a   : > { %v1429_v8 = vpack.c.bf16 %v1422_v62, %v1418_v41  ;;  %v1424_v17 = vpop.f32.mrb[15].mxu0 }
 0x66b   : > { %v1430_v31 = vpack.c.bf16 %v1424_v17, %v1420_v1 }
 0x66d   : > { %1451 = vmatprep.subr.bf16.mxu1 %v1430_v31 }
 0x66e   : > { %1452 = vmatpush1.bf16.msra.mxu1 %v1429_v8 }
 0x671   : > { %1589 = vmatmul.mubr.msk.bf16.vlgmr.msra.gmra.mrb[64].mxu1 %vm410_vm0, %v1609_v26 }
 0x744   : > { %v1485_v40 = vpop.f32.mrb[64].mxu1 }
 0x745   : > { %v1486_v55 = vadd.f32 %v1485_v40, %v1436_v3  ;;  %v1487_v12 = vpop.f32.mrb[65].mxu1 }
 0x746   : > { %v1488_v36 = vadd.f32 %v1487_v12, %v1436_v3  ;;  %v1489_v49 = vpop.f32.mrb[66].mxu1 }
 0x747   : > { %v1494_v50 = vadd.f32 %v1486_v55, %v2643_v4  ;;  %v1490_v0 = vadd.f32 %v1489_v49, %v1441_v28  ;;  %v1491_v43 = vpop.f32.mrb[67].mxu1 }
 0x748   : > { %v1495_v24 = vadd.f32 %v1488_v36, %v2644_v6  ;;  %v1492_v61 = vadd.f32 %v1491_v43, %v1441_v28 }
 0x749   : > { %1498 = vst [vmem:[%s278_s21] sm:$0xff] %v1494_v50  ;;  %v1496_v42 = vadd.f32 %v1490_v0, %v2645_v2 }
 0x74a   : > { %1499 = vst [vmem:[%s278_s21 + $0x8] sm:$0xff] %v1495_v24  ;;  %v1497_v30 = vadd.f32 %v1492_v61, %v2646_v33 }
 0x74b   : > { %1500 = vst [vmem:[%s278_s21 + $0x10] sm:$0xff] %v1496_v42 }
 0x74c   : > { %1501 = vst [vmem:[%s278_s21 + $0x18] sm:$0xff] %v1497_v30 }
 0x74d PF: > { %s17_s24 = sadd.s32 1, %s1812_s24  }
 0x74e   : > { %p14_p4 = scmp.ge.s32.totalorder %s17_s24, 4  }
 0x750   :  { %16 = sbr.rel (!%p14_p4) target bundleno = 1 (0x1), region = 78 }

</bundles_post_ra>
